<compile_context>
chip_gen: v7x
topology: tpu7x:2x2x1
jax: 0.10.0
libtpu: 0.0.40
codegen_flags: <defaults>
</compile_context>

<pallas_src>
import math

import jax
import jax.numpy as jnp
from jax.experimental import pallas as pl
from jax.experimental.pallas import tpu as pltpu

# ---- model hyper-parameters (small, consistent with CoDecoder.__init__) ----
D_MODEL = 32
D_FFN = 64
N_HEAD = 4
DEPTH = 2
D_HEAD = D_MODEL // N_HEAD

# ---- example problem sizes ----
B = 2
LQ = 8    # srv_mat sequence length (queries)
LK = 8    # usr_mat sequence length (keys / values)

LN_EPS = 1e-5
_SM_SCALE = 1.0 / math.sqrt(D_HEAD)

# rows of the packed per-layer (D_MODEL,)-vector array
_BO, _B2, _G1, _BE1, _G2, _BE2 = range(6)


def _layer_norm(h, gamma, beta):
    mu = jnp.mean(h, axis=-1, keepdims=True)
    var = jnp.mean((h - mu) ** 2, axis=-1, keepdims=True)
    return (h - mu) * jax.lax.rsqrt(var + LN_EPS) * gamma + beta


def co_decoder_kernel(usr_ref, srv_ref, mask_ref,
                      wqkv_ref, bqkv_ref, wo_ref, w1_ref, b1_ref, w2_ref,
                      vec_ref, out_ref):
    """Fully fused CoDecoder forward: all DEPTH layers x all B batch rows, one launch.

    Packed parameter layouts (prepared wrapper-side, head-major):
      wqkv_ref: (DEPTH*3, N_HEAD, D_MODEL, D_HEAD)   rows: [q,k,v] per layer
      bqkv_ref: (DEPTH*3, N_HEAD, 1, D_HEAD)
      wo_ref:   (DEPTH, N_HEAD, D_HEAD, D_MODEL)
      w1_ref:   (DEPTH, D_MODEL, D_FFN)   b1_ref: (DEPTH, 1, D_FFN)
      w2_ref:   (DEPTH, D_FFN, D_MODEL)
      vec_ref:  (DEPTH, 6, D_MODEL)       rows: [bo, b2, g1, be1, g2, be2]
    """
    for b in range(B):                                   # static unroll, B = 2
        usr = usr_ref[b]                                  # (LK, D_MODEL)
        x = srv_ref[b]                                    # (LQ, D_MODEL)
        # hoisted per-batch broadcasts (usr / mask are layer-invariant)
        usr_h = jnp.broadcast_to(usr[None], (N_HEAD, LK, D_MODEL))
        mask_h = jnp.broadcast_to(mask_ref[b][None], (N_HEAD, LQ, LK))

        for l in range(DEPTH):                            # static unroll, DEPTH = 2
            vl = vec_ref[l]                               # (6, D_MODEL)
            b1 = b1_ref[l]                                # (1, D_FFN)

            # ---- multi-head cross attention, batched over heads (no lane slicing) ----
            x_h = jnp.broadcast_to(x[None], (N_HEAD, LQ, D_MODEL))
            q = jnp.einsum('hqm,hmd->hqd', x_h, wqkv_ref[3 * l + 0],
                           preferred_element_type=jnp.float32) + bqkv_ref[3 * l + 0]
            k = jnp.einsum('hkm,hmd->hkd', usr_h, wqkv_ref[3 * l + 1],
                           preferred_element_type=jnp.float32) + bqkv_ref[3 * l + 1]
            v = jnp.einsum('hkm,hmd->hkd', usr_h, wqkv_ref[3 * l + 2],
                           preferred_element_type=jnp.float32) + bqkv_ref[3 * l + 2]

            s = jnp.einsum('hqd,hkd->hqk', q, k,
                           preferred_element_type=jnp.float32) * _SM_SCALE + mask_h
            s = s - jnp.max(s, axis=-1, keepdims=True)
            p = jnp.exp(s)
            p = p * pl.reciprocal(jnp.sum(p, axis=-1, keepdims=True), approx=True)
            o = jnp.einsum('hqk,hkd->hqd', p, v,
                           preferred_element_type=jnp.float32)      # (H, LQ, D_HEAD)

            # output projection: contract head-dim per head, then reduce over heads
            attn = jnp.sum(jnp.einsum('hqd,hdn->hqn', o, wo_ref[l],
                                      preferred_element_type=jnp.float32), axis=0)
            attn = attn + vl[_BO:_BO + 1]                 # (LQ, D_MODEL)
            # TODO(synk): dropout omitted (inference semantics, p treated as 0)

            # ---- residual + LayerNorm 1 ----
            h1n = _layer_norm(x + attn, vl[_G1:_G1 + 1], vl[_BE1:_BE1 + 1])

            # ---- position-wise FFN (ReLU) ----
            f = jnp.dot(h1n, w1_ref[l], preferred_element_type=jnp.float32) + b1
            f = jnp.maximum(f, 0.0)
            f = jnp.dot(f, w2_ref[l], preferred_element_type=jnp.float32) + vl[_B2:_B2 + 1]

            # ---- residual + LayerNorm 2 ----
            x = _layer_norm(h1n + f, vl[_G2:_G2 + 1], vl[_BE2:_BE2 + 1])

        out_ref[b] = x.astype(out_ref.dtype)


def co_decoder(usr_mat, srv_mat, mask, packed):
    """CoDecoder.forward: x = srv_mat; for layer in net: x = layer(usr_mat, x, mask)."""
    wqkv, bqkv, wo, w1, b1, w2, vec = packed
    inputs = (usr_mat, srv_mat, mask, wqkv, bqkv, wo, w1, b1, w2, vec)
    return pl.pallas_call(
        co_decoder_kernel,
        out_shape=jax.ShapeDtypeStruct((B, LQ, D_MODEL), jnp.float32),
        in_specs=[pl.BlockSpec(memory_space=pltpu.MemorySpace.VMEM)
                  for _ in range(len(inputs))],
        out_specs=pl.BlockSpec(memory_space=pltpu.MemorySpace.VMEM),
    )(*inputs)


def init_layer_params(key):
    ks = jax.random.split(key, 6)
    s = 0.02
    return dict(
        wq=s * jax.random.normal(ks[0], (D_MODEL, D_MODEL), jnp.float32),
        wk=s * jax.random.normal(ks[1], (D_MODEL, D_MODEL), jnp.float32),
        wv=s * jax.random.normal(ks[2], (D_MODEL, D_MODEL), jnp.float32),
        wo=s * jax.random.normal(ks[3], (D_MODEL, D_MODEL), jnp.float32),
        w1=s * jax.random.normal(ks[4], (D_MODEL, D_FFN), jnp.float32),
        w2=s * jax.random.normal(ks[5], (D_FFN, D_MODEL), jnp.float32),
        bq=jnp.zeros((D_MODEL,), jnp.float32),
        bk=jnp.zeros((D_MODEL,), jnp.float32),
        bv=jnp.zeros((D_MODEL,), jnp.float32),
        bo=jnp.zeros((D_MODEL,), jnp.float32),
        b1=jnp.zeros((D_FFN,), jnp.float32),
        b2=jnp.zeros((D_MODEL,), jnp.float32),
        g1=jnp.ones((D_MODEL,), jnp.float32),
        be1=jnp.zeros((D_MODEL,), jnp.float32),
        g2=jnp.ones((D_MODEL,), jnp.float32),
        be2=jnp.zeros((D_MODEL,), jnp.float32),
    )


def pack_params(layers):
    """Pre-shape / concatenate per-layer params wrapper-side so the kernel sees a
    handful of head-major stacked arrays instead of 16*DEPTH tiny tensors."""
    def per_head_w(w):   # (D_MODEL, D_MODEL) -> (N_HEAD, D_MODEL, D_HEAD)
        return w.reshape(D_MODEL, N_HEAD, D_HEAD).transpose(1, 0, 2)

    def per_head_b(bias):  # (D_MODEL,) -> (N_HEAD, 1, D_HEAD)
        return bias.reshape(N_HEAD, 1, D_HEAD)

    wqkv = jnp.stack([per_head_w(p[n]) for p in layers for n in ('wq', 'wk', 'wv')])
    bqkv = jnp.stack([per_head_b(p[n]) for p in layers for n in ('bq', 'bk', 'bv')])
    wo = jnp.stack([p['wo'].reshape(N_HEAD, D_HEAD, D_MODEL) for p in layers])
    w1 = jnp.stack([p['w1'] for p in layers])
    b1 = jnp.stack([p['b1'].reshape(1, D_FFN) for p in layers])
    w2 = jnp.stack([p['w2'] for p in layers])
    vec = jnp.stack([jnp.stack([p['bo'], p['b2'], p['g1'], p['be1'], p['g2'], p['be2']])
                     for p in layers])
    return wqkv, bqkv, wo, w1, b1, w2, vec


if __name__ == "__main__":
    key = jax.random.PRNGKey(0)
    k_usr, k_srv, k_mask, k_params = jax.random.split(key, 4)

    usr_mat = jax.random.normal(k_usr, (B, LK, D_MODEL), jnp.float32)
    srv_mat = jax.random.normal(k_srv, (B, LQ, D_MODEL), jnp.float32)

    # boolean keep-mask -> additive mask (0 keep / -1e9 blocked)
    keep = jax.random.bernoulli(k_mask, p=0.8, shape=(B, LQ, LK))
    keep = keep.at[:, :, 0].set(True)            # every query attends to >= 1 key
    mask = jnp.where(keep, 0.0, -1e9).astype(jnp.float32)

    layer_keys = jax.random.split(k_params, DEPTH)
    packed = pack_params([init_layer_params(k) for k in layer_keys])

    out = co_decoder(usr_mat, srv_mat, mask, packed)
    jax.block_until_ready(out)
    assert out.shape == (B, LQ, D_MODEL)
    print("KERNEL_OK")
</pallas_src>

<mosaic_0001>
module attributes {stable_mosaic.version = 11 : i64} {
  func.func @co_decoder_kernel(%arg0: memref<2x8x32xf32, #tpu.memory_space<vmem>>, %arg1: memref<2x8x32xf32, #tpu.memory_space<vmem>>, %arg2: memref<2x8x8xf32, #tpu.memory_space<vmem>>, %arg3: memref<6x4x32x8xf32, #tpu.memory_space<vmem>>, %arg4: memref<6x4x1x8xf32, #tpu.memory_space<vmem>>, %arg5: memref<2x4x8x32xf32, #tpu.memory_space<vmem>>, %arg6: memref<2x32x64xf32, #tpu.memory_space<vmem>>, %arg7: memref<2x1x64xf32, #tpu.memory_space<vmem>>, %arg8: memref<2x64x32xf32, #tpu.memory_space<vmem>>, %arg9: memref<2x6x32xf32, #tpu.memory_space<vmem>>, %arg10: memref<2x8x32xf32, #tpu.memory_space<vmem>>) attributes {dimension_semantics = [], scalar_prefetch = 0 : i64, scratch_operands = 0 : i64, tpu.core_type = #tpu.core_type<tc>} {
    %c0 = arith.constant 0 : index
    %c0_0 = arith.constant 0 : index
    %c0_1 = arith.constant 0 : index
    %0 = vector.load %arg0[%c0, %c0_0, %c0_1] : memref<2x8x32xf32, #tpu.memory_space<vmem>>, vector<1x8x32xf32>
    %1 = vector.shape_cast %0 : vector<1x8x32xf32> to vector<8x32xf32>
    %c0_2 = arith.constant 0 : index
    %c0_3 = arith.constant 0 : index
    %c0_4 = arith.constant 0 : index
    %2 = vector.load %arg1[%c0_2, %c0_3, %c0_4] : memref<2x8x32xf32, #tpu.memory_space<vmem>>, vector<1x8x32xf32>
    %3 = vector.shape_cast %2 : vector<1x8x32xf32> to vector<8x32xf32>
    %4 = vector.shape_cast %1 : vector<8x32xf32> to vector<1x8x32xf32>
    %5 = vector.shape_cast %4 : vector<1x8x32xf32> to vector<1x8x32xf32>
    %6 = vector.broadcast %5 : vector<1x8x32xf32> to vector<4x8x32xf32>
    %c0_5 = arith.constant 0 : index
    %c0_6 = arith.constant 0 : index
    %c0_7 = arith.constant 0 : index
    %7 = vector.load %arg2[%c0_5, %c0_6, %c0_7] : memref<2x8x8xf32, #tpu.memory_space<vmem>>, vector<1x8x8xf32>
    %8 = vector.shape_cast %7 : vector<1x8x8xf32> to vector<8x8xf32>
    %9 = vector.shape_cast %8 : vector<8x8xf32> to vector<1x8x8xf32>
    %10 = vector.shape_cast %9 : vector<1x8x8xf32> to vector<1x8x8xf32>
    %11 = vector.broadcast %10 : vector<1x8x8xf32> to vector<4x8x8xf32>
    %c0_8 = arith.constant 0 : index
    %c0_9 = arith.constant 0 : index
    %c0_10 = arith.constant 0 : index
    %12 = vector.load %arg9[%c0_8, %c0_9, %c0_10] : memref<2x6x32xf32, #tpu.memory_space<vmem>>, vector<1x6x32xf32>
    %13 = vector.shape_cast %12 : vector<1x6x32xf32> to vector<6x32xf32>
    %c0_11 = arith.constant 0 : index
    %c0_12 = arith.constant 0 : index
    %c0_13 = arith.constant 0 : index
    %14 = vector.load %arg7[%c0_11, %c0_12, %c0_13] : memref<2x1x64xf32, #tpu.memory_space<vmem>>, vector<1x1x64xf32>
    %15 = vector.shape_cast %14 : vector<1x1x64xf32> to vector<1x64xf32>
    %16 = vector.shape_cast %3 : vector<8x32xf32> to vector<1x8x32xf32>
    %17 = vector.shape_cast %16 : vector<1x8x32xf32> to vector<1x8x32xf32>
    %18 = vector.broadcast %17 : vector<1x8x32xf32> to vector<4x8x32xf32>
    %c0_14 = arith.constant 0 : index
    %c0_15 = arith.constant 0 : index
    %c0_16 = arith.constant 0 : index
    %c0_17 = arith.constant 0 : index
    %19 = vector.load %arg3[%c0_14, %c0_15, %c0_16, %c0_17] : memref<6x4x32x8xf32, #tpu.memory_space<vmem>>, vector<1x4x32x8xf32>
    %20 = vector.shape_cast %19 : vector<1x4x32x8xf32> to vector<4x32x8xf32>
    "tpu.trace_start"() <{level = 10 : i32, message = "hqm,hmd->hqd"}> : () -> ()
    %cst = arith.constant dense<0.000000e+00> : vector<4x8x8xf32>
    %21 = tpu.matmul %18, %20, %cst {dimension_numbers = #tpu.dot_dimension_numbers<[2], [1], [1], [2], [0, 0, 0, 1, 1, 2], [0], [0]>} : vector<4x8x32xf32>, vector<4x32x8xf32>, vector<4x8x8xf32> -> vector<4x8x8xf32>
    "tpu.trace_stop"() : () -> ()
    %c0_18 = arith.constant 0 : index
    %c0_19 = arith.constant 0 : index
    %c0_20 = arith.constant 0 : index
    %c0_21 = arith.constant 0 : index
    %22 = vector.load %arg4[%c0_18, %c0_19, %c0_20, %c0_21] : memref<6x4x1x8xf32, #tpu.memory_space<vmem>>, vector<1x4x1x8xf32>
    %23 = vector.shape_cast %22 : vector<1x4x1x8xf32> to vector<4x1x8xf32>
    %24 = vector.broadcast %23 : vector<4x1x8xf32> to vector<4x8x8xf32>
    %25 = arith.addf %21, %24 : vector<4x8x8xf32>
    %c1 = arith.constant 1 : index
    %c0_22 = arith.constant 0 : index
    %c0_23 = arith.constant 0 : index
    %c0_24 = arith.constant 0 : index
    %26 = vector.load %arg3[%c1, %c0_22, %c0_23, %c0_24] : memref<6x4x32x8xf32, #tpu.memory_space<vmem>>, vector<1x4x32x8xf32>
    %27 = vector.shape_cast %26 : vector<1x4x32x8xf32> to vector<4x32x8xf32>
    "tpu.trace_start"() <{level = 10 : i32, message = "hkm,hmd->hkd"}> : () -> ()
    %cst_25 = arith.constant dense<0.000000e+00> : vector<4x8x8xf32>
    %28 = tpu.matmul %6, %27, %cst_25 {dimension_numbers = #tpu.dot_dimension_numbers<[2], [1], [1], [2], [0, 0, 0, 1, 1, 2], [0], [0]>} : vector<4x8x32xf32>, vector<4x32x8xf32>, vector<4x8x8xf32> -> vector<4x8x8xf32>
    "tpu.trace_stop"() : () -> ()
    %c1_26 = arith.constant 1 : index
    %c0_27 = arith.constant 0 : index
    %c0_28 = arith.constant 0 : index
    %c0_29 = arith.constant 0 : index
    %29 = vector.load %arg4[%c1_26, %c0_27, %c0_28, %c0_29] : memref<6x4x1x8xf32, #tpu.memory_space<vmem>>, vector<1x4x1x8xf32>
    %30 = vector.shape_cast %29 : vector<1x4x1x8xf32> to vector<4x1x8xf32>
    %31 = vector.broadcast %30 : vector<4x1x8xf32> to vector<4x8x8xf32>
    %32 = arith.addf %28, %31 : vector<4x8x8xf32>
    %c2 = arith.constant 2 : index
    %c0_30 = arith.constant 0 : index
    %c0_31 = arith.constant 0 : index
    %c0_32 = arith.constant 0 : index
    %33 = vector.load %arg3[%c2, %c0_30, %c0_31, %c0_32] : memref<6x4x32x8xf32, #tpu.memory_space<vmem>>, vector<1x4x32x8xf32>
    %34 = vector.shape_cast %33 : vector<1x4x32x8xf32> to vector<4x32x8xf32>
    "tpu.trace_start"() <{level = 10 : i32, message = "hkm,hmd->hkd"}> : () -> ()
    %cst_33 = arith.constant dense<0.000000e+00> : vector<4x8x8xf32>
    %35 = tpu.matmul %6, %34, %cst_33 {dimension_numbers = #tpu.dot_dimension_numbers<[2], [1], [1], [2], [0, 0, 0, 1, 1, 2], [0], [0]>} : vector<4x8x32xf32>, vector<4x32x8xf32>, vector<4x8x8xf32> -> vector<4x8x8xf32>
    "tpu.trace_stop"() : () -> ()
    %c2_34 = arith.constant 2 : index
    %c0_35 = arith.constant 0 : index
    %c0_36 = arith.constant 0 : index
    %c0_37 = arith.constant 0 : index
    %36 = vector.load %arg4[%c2_34, %c0_35, %c0_36, %c0_37] : memref<6x4x1x8xf32, #tpu.memory_space<vmem>>, vector<1x4x1x8xf32>
    %37 = vector.shape_cast %36 : vector<1x4x1x8xf32> to vector<4x1x8xf32>
    %38 = vector.broadcast %37 : vector<4x1x8xf32> to vector<4x8x8xf32>
    %39 = arith.addf %35, %38 : vector<4x8x8xf32>
    "tpu.trace_start"() <{level = 10 : i32, message = "hqd,hkd->hqk"}> : () -> ()
    %cst_38 = arith.constant dense<0.000000e+00> : vector<4x8x8xf32>
    %40 = tpu.matmul %25, %32, %cst_38 {dimension_numbers = #tpu.dot_dimension_numbers<[2], [2], [1], [1], [0, 0, 0, 1, 1, 1], [0], [0]>} : vector<4x8x8xf32>, vector<4x8x8xf32>, vector<4x8x8xf32> -> vector<4x8x8xf32>
    "tpu.trace_stop"() : () -> ()
    %cst_39 = arith.constant 0.353553385 : f32
    %41 = vector.broadcast %cst_39 : f32 to vector<4x8x8xf32>
    %42 = arith.mulf %40, %41 : vector<4x8x8xf32>
    %43 = arith.addf %42, %11 : vector<4x8x8xf32>
    %cst_40 = arith.constant dense<0xFF800000> : vector<4x8xf32>
    %44 = vector.multi_reduction <maximumf>, %43, %cst_40 [2] : vector<4x8x8xf32> to vector<4x8xf32>
    %45 = vector.shape_cast %44 : vector<4x8xf32> to vector<4x8x1xf32>
    %46 = vector.broadcast %45 : vector<4x8x1xf32> to vector<4x8x8xf32>
    %47 = arith.subf %43, %46 : vector<4x8x8xf32>
    %48 = math.exp %47 : vector<4x8x8xf32>
    %cst_41 = arith.constant dense<0.000000e+00> : vector<4x8xf32>
    %49 = vector.multi_reduction <add>, %48, %cst_41 [2] : vector<4x8x8xf32> to vector<4x8xf32>
    %50 = vector.shape_cast %49 : vector<4x8xf32> to vector<4x8x1xf32>
    %51 = tpu.reciprocal %50 {approx = true} : vector<4x8x1xf32> -> vector<4x8x1xf32>
    %52 = vector.broadcast %51 : vector<4x8x1xf32> to vector<4x8x8xf32>
    %53 = arith.mulf %48, %52 : vector<4x8x8xf32>
    "tpu.trace_start"() <{level = 10 : i32, message = "hqk,hkd->hqd"}> : () -> ()
    %cst_42 = arith.constant dense<0.000000e+00> : vector<4x8x8xf32>
    %54 = tpu.matmul %53, %39, %cst_42 {dimension_numbers = #tpu.dot_dimension_numbers<[2], [1], [1], [2], [0, 0, 0, 1, 1, 2], [0], [0]>} : vector<4x8x8xf32>, vector<4x8x8xf32>, vector<4x8x8xf32> -> vector<4x8x8xf32>
    "tpu.trace_stop"() : () -> ()
    %c0_43 = arith.constant 0 : index
    %c0_44 = arith.constant 0 : index
    %c0_45 = arith.constant 0 : index
    %c0_46 = arith.constant 0 : index
    %55 = vector.load %arg5[%c0_43, %c0_44, %c0_45, %c0_46] : memref<2x4x8x32xf32, #tpu.memory_space<vmem>>, vector<1x4x8x32xf32>
    %56 = vector.shape_cast %55 : vector<1x4x8x32xf32> to vector<4x8x32xf32>
    "tpu.trace_start"() <{level = 10 : i32, message = "hqd,hdn->hqn"}> : () -> ()
    %cst_47 = arith.constant dense<0.000000e+00> : vector<4x8x32xf32>
    %57 = tpu.matmul %54, %56, %cst_47 {dimension_numbers = #tpu.dot_dimension_numbers<[2], [1], [1], [2], [0, 0, 0, 1, 1, 2], [0], [0]>} : vector<4x8x8xf32>, vector<4x8x32xf32>, vector<4x8x32xf32> -> vector<4x8x32xf32>
    "tpu.trace_stop"() : () -> ()
    %cst_48 = arith.constant dense<0.000000e+00> : vector<8x32xf32>
    %58 = vector.multi_reduction <add>, %57, %cst_48 [0] : vector<4x8x32xf32> to vector<8x32xf32>
    %59 = vector.extract_strided_slice %13 {offsets = [0, 0], sizes = [1, 32], strides = [1, 1]} : vector<6x32xf32> to vector<1x32xf32>
    %60 = vector.broadcast %59 : vector<1x32xf32> to vector<8x32xf32>
    %61 = arith.addf %58, %60 : vector<8x32xf32>
    %62 = arith.addf %3, %61 : vector<8x32xf32>
    %63 = vector.extract_strided_slice %13 {offsets = [2, 0], sizes = [1, 32], strides = [1, 1]} : vector<6x32xf32> to vector<1x32xf32>
    %64 = vector.extract_strided_slice %13 {offsets = [3, 0], sizes = [1, 32], strides = [1, 1]} : vector<6x32xf32> to vector<1x32xf32>
    %cst_49 = arith.constant dense<0.000000e+00> : vector<8xf32>
    %65 = vector.multi_reduction <add>, %62, %cst_49 [1] : vector<8x32xf32> to vector<8xf32>
    %66 = vector.shape_cast %65 : vector<8xf32> to vector<8x1xf32>
    %cst_50 = arith.constant 3.200000e+01 : f32
    %67 = vector.broadcast %cst_50 : f32 to vector<8x1xf32>
    %68 = arith.divf %66, %67 : vector<8x1xf32>
    %69 = vector.broadcast %68 : vector<8x1xf32> to vector<8x32xf32>
    %70 = arith.subf %62, %69 : vector<8x32xf32>
    %71 = arith.mulf %70, %70 : vector<8x32xf32>
    %cst_51 = arith.constant dense<0.000000e+00> : vector<8xf32>
    %72 = vector.multi_reduction <add>, %71, %cst_51 [1] : vector<8x32xf32> to vector<8xf32>
    %73 = vector.shape_cast %72 : vector<8xf32> to vector<8x1xf32>
    %cst_52 = arith.constant 3.200000e+01 : f32
    %74 = vector.broadcast %cst_52 : f32 to vector<8x1xf32>
    %75 = arith.divf %73, %74 : vector<8x1xf32>
    %76 = vector.broadcast %68 : vector<8x1xf32> to vector<8x32xf32>
    %77 = arith.subf %62, %76 : vector<8x32xf32>
    %cst_53 = arith.constant 9.99999974E-6 : f32
    %78 = vector.broadcast %cst_53 : f32 to vector<8x1xf32>
    %79 = arith.addf %75, %78 : vector<8x1xf32>
    %80 = math.rsqrt %79 : vector<8x1xf32>
    %81 = vector.broadcast %80 : vector<8x1xf32> to vector<8x32xf32>
    %82 = arith.mulf %77, %81 : vector<8x32xf32>
    %83 = vector.broadcast %63 : vector<1x32xf32> to vector<8x32xf32>
    %84 = arith.mulf %82, %83 : vector<8x32xf32>
    %85 = vector.broadcast %64 : vector<1x32xf32> to vector<8x32xf32>
    %86 = arith.addf %84, %85 : vector<8x32xf32>
    %c0_54 = arith.constant 0 : index
    %c0_55 = arith.constant 0 : index
    %c0_56 = arith.constant 0 : index
    %87 = vector.load %arg6[%c0_54, %c0_55, %c0_56] : memref<2x32x64xf32, #tpu.memory_space<vmem>>, vector<1x32x64xf32>
    %88 = vector.shape_cast %87 : vector<1x32x64xf32> to vector<32x64xf32>
    %cst_57 = arith.constant dense<0.000000e+00> : vector<8x64xf32>
    %89 = tpu.matmul %86, %88, %cst_57 {dimension_numbers = #tpu.dot_dimension_numbers<[1], [0], [0], [1], [0, 0, 1, 1], [], []>} : vector<8x32xf32>, vector<32x64xf32>, vector<8x64xf32> -> vector<8x64xf32>
    %90 = vector.broadcast %15 : vector<1x64xf32> to vector<8x64xf32>
    %91 = arith.addf %89, %90 : vector<8x64xf32>
    %cst_58 = arith.constant 0.000000e+00 : f32
    %92 = vector.broadcast %cst_58 : f32 to vector<8x64xf32>
    %93 = arith.maximumf %91, %92 : vector<8x64xf32>
    %c0_59 = arith.constant 0 : index
    %c0_60 = arith.constant 0 : index
    %c0_61 = arith.constant 0 : index
    %94 = vector.load %arg8[%c0_59, %c0_60, %c0_61] : memref<2x64x32xf32, #tpu.memory_space<vmem>>, vector<1x64x32xf32>
    %95 = vector.shape_cast %94 : vector<1x64x32xf32> to vector<64x32xf32>
    %cst_62 = arith.constant dense<0.000000e+00> : vector<8x32xf32>
    %96 = tpu.matmul %93, %95, %cst_62 {dimension_numbers = #tpu.dot_dimension_numbers<[1], [0], [0], [1], [0, 0, 1, 1], [], []>} : vector<8x64xf32>, vector<64x32xf32>, vector<8x32xf32> -> vector<8x32xf32>
    %97 = vector.extract_strided_slice %13 {offsets = [1, 0], sizes = [1, 32], strides = [1, 1]} : vector<6x32xf32> to vector<1x32xf32>
    %98 = vector.broadcast %97 : vector<1x32xf32> to vector<8x32xf32>
    %99 = arith.addf %96, %98 : vector<8x32xf32>
    %100 = arith.addf %86, %99 : vector<8x32xf32>
    %101 = vector.extract_strided_slice %13 {offsets = [4, 0], sizes = [1, 32], strides = [1, 1]} : vector<6x32xf32> to vector<1x32xf32>
    %102 = vector.extract_strided_slice %13 {offsets = [5, 0], sizes = [1, 32], strides = [1, 1]} : vector<6x32xf32> to vector<1x32xf32>
    %cst_63 = arith.constant dense<0.000000e+00> : vector<8xf32>
    %103 = vector.multi_reduction <add>, %100, %cst_63 [1] : vector<8x32xf32> to vector<8xf32>
    %104 = vector.shape_cast %103 : vector<8xf32> to vector<8x1xf32>
    %cst_64 = arith.constant 3.200000e+01 : f32
    %105 = vector.broadcast %cst_64 : f32 to vector<8x1xf32>
    %106 = arith.divf %104, %105 : vector<8x1xf32>
    %107 = vector.broadcast %106 : vector<8x1xf32> to vector<8x32xf32>
    %108 = arith.subf %100, %107 : vector<8x32xf32>
    %109 = arith.mulf %108, %108 : vector<8x32xf32>
    %cst_65 = arith.constant dense<0.000000e+00> : vector<8xf32>
    %110 = vector.multi_reduction <add>, %109, %cst_65 [1] : vector<8x32xf32> to vector<8xf32>
    %111 = vector.shape_cast %110 : vector<8xf32> to vector<8x1xf32>
    %cst_66 = arith.constant 3.200000e+01 : f32
    %112 = vector.broadcast %cst_66 : f32 to vector<8x1xf32>
    %113 = arith.divf %111, %112 : vector<8x1xf32>
    %114 = vector.broadcast %106 : vector<8x1xf32> to vector<8x32xf32>
    %115 = arith.subf %100, %114 : vector<8x32xf32>
    %cst_67 = arith.constant 9.99999974E-6 : f32
    %116 = vector.broadcast %cst_67 : f32 to vector<8x1xf32>
    %117 = arith.addf %113, %116 : vector<8x1xf32>
    %118 = math.rsqrt %117 : vector<8x1xf32>
    %119 = vector.broadcast %118 : vector<8x1xf32> to vector<8x32xf32>
    %120 = arith.mulf %115, %119 : vector<8x32xf32>
    %121 = vector.broadcast %101 : vector<1x32xf32> to vector<8x32xf32>
    %122 = arith.mulf %120, %121 : vector<8x32xf32>
    %123 = vector.broadcast %102 : vector<1x32xf32> to vector<8x32xf32>
    %124 = arith.addf %122, %123 : vector<8x32xf32>
    %c1_68 = arith.constant 1 : index
    %c0_69 = arith.constant 0 : index
    %c0_70 = arith.constant 0 : index
    %125 = vector.load %arg9[%c1_68, %c0_69, %c0_70] : memref<2x6x32xf32, #tpu.memory_space<vmem>>, vector<1x6x32xf32>
    %126 = vector.shape_cast %125 : vector<1x6x32xf32> to vector<6x32xf32>
    %c1_71 = arith.constant 1 : index
    %c0_72 = arith.constant 0 : index
    %c0_73 = arith.constant 0 : index
    %127 = vector.load %arg7[%c1_71, %c0_72, %c0_73] : memref<2x1x64xf32, #tpu.memory_space<vmem>>, vector<1x1x64xf32>
    %128 = vector.shape_cast %127 : vector<1x1x64xf32> to vector<1x64xf32>
    %129 = vector.shape_cast %124 : vector<8x32xf32> to vector<1x8x32xf32>
    %130 = vector.shape_cast %129 : vector<1x8x32xf32> to vector<1x8x32xf32>
    %131 = vector.broadcast %130 : vector<1x8x32xf32> to vector<4x8x32xf32>
    %c3 = arith.constant 3 : index
    %c0_74 = arith.constant 0 : index
    %c0_75 = arith.constant 0 : index
    %c0_76 = arith.constant 0 : index
    %132 = vector.load %arg3[%c3, %c0_74, %c0_75, %c0_76] : memref<6x4x32x8xf32, #tpu.memory_space<vmem>>, vector<1x4x32x8xf32>
    %133 = vector.shape_cast %132 : vector<1x4x32x8xf32> to vector<4x32x8xf32>
    "tpu.trace_start"() <{level = 10 : i32, message = "hqm,hmd->hqd"}> : () -> ()
    %cst_77 = arith.constant dense<0.000000e+00> : vector<4x8x8xf32>
    %134 = tpu.matmul %131, %133, %cst_77 {dimension_numbers = #tpu.dot_dimension_numbers<[2], [1], [1], [2], [0, 0, 0, 1, 1, 2], [0], [0]>} : vector<4x8x32xf32>, vector<4x32x8xf32>, vector<4x8x8xf32> -> vector<4x8x8xf32>
    "tpu.trace_stop"() : () -> ()
    %c3_78 = arith.constant 3 : index
    %c0_79 = arith.constant 0 : index
    %c0_80 = arith.constant 0 : index
    %c0_81 = arith.constant 0 : index
    %135 = vector.load %arg4[%c3_78, %c0_79, %c0_80, %c0_81] : memref<6x4x1x8xf32, #tpu.memory_space<vmem>>, vector<1x4x1x8xf32>
    %136 = vector.shape_cast %135 : vector<1x4x1x8xf32> to vector<4x1x8xf32>
    %137 = vector.broadcast %136 : vector<4x1x8xf32> to vector<4x8x8xf32>
    %138 = arith.addf %134, %137 : vector<4x8x8xf32>
    %c4 = arith.constant 4 : index
    %c0_82 = arith.constant 0 : index
    %c0_83 = arith.constant 0 : index
    %c0_84 = arith.constant 0 : index
    %139 = vector.load %arg3[%c4, %c0_82, %c0_83, %c0_84] : memref<6x4x32x8xf32, #tpu.memory_space<vmem>>, vector<1x4x32x8xf32>
    %140 = vector.shape_cast %139 : vector<1x4x32x8xf32> to vector<4x32x8xf32>
    "tpu.trace_start"() <{level = 10 : i32, message = "hkm,hmd->hkd"}> : () -> ()
    %cst_85 = arith.constant dense<0.000000e+00> : vector<4x8x8xf32>
    %141 = tpu.matmul %6, %140, %cst_85 {dimension_numbers = #tpu.dot_dimension_numbers<[2], [1], [1], [2], [0, 0, 0, 1, 1, 2], [0], [0]>} : vector<4x8x32xf32>, vector<4x32x8xf32>, vector<4x8x8xf32> -> vector<4x8x8xf32>
    "tpu.trace_stop"() : () -> ()
    %c4_86 = arith.constant 4 : index
    %c0_87 = arith.constant 0 : index
    %c0_88 = arith.constant 0 : index
    %c0_89 = arith.constant 0 : index
    %142 = vector.load %arg4[%c4_86, %c0_87, %c0_88, %c0_89] : memref<6x4x1x8xf32, #tpu.memory_space<vmem>>, vector<1x4x1x8xf32>
    %143 = vector.shape_cast %142 : vector<1x4x1x8xf32> to vector<4x1x8xf32>
    %144 = vector.broadcast %143 : vector<4x1x8xf32> to vector<4x8x8xf32>
    %145 = arith.addf %141, %144 : vector<4x8x8xf32>
    %c5 = arith.constant 5 : index
    %c0_90 = arith.constant 0 : index
    %c0_91 = arith.constant 0 : index
    %c0_92 = arith.constant 0 : index
    %146 = vector.load %arg3[%c5, %c0_90, %c0_91, %c0_92] : memref<6x4x32x8xf32, #tpu.memory_space<vmem>>, vector<1x4x32x8xf32>
    %147 = vector.shape_cast %146 : vector<1x4x32x8xf32> to vector<4x32x8xf32>
    "tpu.trace_start"() <{level = 10 : i32, message = "hkm,hmd->hkd"}> : () -> ()
    %cst_93 = arith.constant dense<0.000000e+00> : vector<4x8x8xf32>
    %148 = tpu.matmul %6, %147, %cst_93 {dimension_numbers = #tpu.dot_dimension_numbers<[2], [1], [1], [2], [0, 0, 0, 1, 1, 2], [0], [0]>} : vector<4x8x32xf32>, vector<4x32x8xf32>, vector<4x8x8xf32> -> vector<4x8x8xf32>
    "tpu.trace_stop"() : () -> ()
    %c5_94 = arith.constant 5 : index
    %c0_95 = arith.constant 0 : index
    %c0_96 = arith.constant 0 : index
    %c0_97 = arith.constant 0 : index
    %149 = vector.load %arg4[%c5_94, %c0_95, %c0_96, %c0_97] : memref<6x4x1x8xf32, #tpu.memory_space<vmem>>, vector<1x4x1x8xf32>
    %150 = vector.shape_cast %149 : vector<1x4x1x8xf32> to vector<4x1x8xf32>
    %151 = vector.broadcast %150 : vector<4x1x8xf32> to vector<4x8x8xf32>
    %152 = arith.addf %148, %151 : vector<4x8x8xf32>
    "tpu.trace_start"() <{level = 10 : i32, message = "hqd,hkd->hqk"}> : () -> ()
    %cst_98 = arith.constant dense<0.000000e+00> : vector<4x8x8xf32>
    %153 = tpu.matmul %138, %145, %cst_98 {dimension_numbers = #tpu.dot_dimension_numbers<[2], [2], [1], [1], [0, 0, 0, 1, 1, 1], [0], [0]>} : vector<4x8x8xf32>, vector<4x8x8xf32>, vector<4x8x8xf32> -> vector<4x8x8xf32>
    "tpu.trace_stop"() : () -> ()
    %cst_99 = arith.constant 0.353553385 : f32
    %154 = vector.broadcast %cst_99 : f32 to vector<4x8x8xf32>
    %155 = arith.mulf %153, %154 : vector<4x8x8xf32>
    %156 = arith.addf %155, %11 : vector<4x8x8xf32>
    %cst_100 = arith.constant dense<0xFF800000> : vector<4x8xf32>
    %157 = vector.multi_reduction <maximumf>, %156, %cst_100 [2] : vector<4x8x8xf32> to vector<4x8xf32>
    %158 = vector.shape_cast %157 : vector<4x8xf32> to vector<4x8x1xf32>
    %159 = vector.broadcast %158 : vector<4x8x1xf32> to vector<4x8x8xf32>
    %160 = arith.subf %156, %159 : vector<4x8x8xf32>
    %161 = math.exp %160 : vector<4x8x8xf32>
    %cst_101 = arith.constant dense<0.000000e+00> : vector<4x8xf32>
    %162 = vector.multi_reduction <add>, %161, %cst_101 [2] : vector<4x8x8xf32> to vector<4x8xf32>
    %163 = vector.shape_cast %162 : vector<4x8xf32> to vector<4x8x1xf32>
    %164 = tpu.reciprocal %163 {approx = true} : vector<4x8x1xf32> -> vector<4x8x1xf32>
    %165 = vector.broadcast %164 : vector<4x8x1xf32> to vector<4x8x8xf32>
    %166 = arith.mulf %161, %165 : vector<4x8x8xf32>
    "tpu.trace_start"() <{level = 10 : i32, message = "hqk,hkd->hqd"}> : () -> ()
    %cst_102 = arith.constant dense<0.000000e+00> : vector<4x8x8xf32>
    %167 = tpu.matmul %166, %152, %cst_102 {dimension_numbers = #tpu.dot_dimension_numbers<[2], [1], [1], [2], [0, 0, 0, 1, 1, 2], [0], [0]>} : vector<4x8x8xf32>, vector<4x8x8xf32>, vector<4x8x8xf32> -> vector<4x8x8xf32>
    "tpu.trace_stop"() : () -> ()
    %c1_103 = arith.constant 1 : index
    %c0_104 = arith.constant 0 : index
    %c0_105 = arith.constant 0 : index
    %c0_106 = arith.constant 0 : index
    %168 = vector.load %arg5[%c1_103, %c0_104, %c0_105, %c0_106] : memref<2x4x8x32xf32, #tpu.memory_space<vmem>>, vector<1x4x8x32xf32>
    %169 = vector.shape_cast %168 : vector<1x4x8x32xf32> to vector<4x8x32xf32>
    "tpu.trace_start"() <{level = 10 : i32, message = "hqd,hdn->hqn"}> : () -> ()
    %cst_107 = arith.constant dense<0.000000e+00> : vector<4x8x32xf32>
    %170 = tpu.matmul %167, %169, %cst_107 {dimension_numbers = #tpu.dot_dimension_numbers<[2], [1], [1], [2], [0, 0, 0, 1, 1, 2], [0], [0]>} : vector<4x8x8xf32>, vector<4x8x32xf32>, vector<4x8x32xf32> -> vector<4x8x32xf32>
    "tpu.trace_stop"() : () -> ()
    %cst_108 = arith.constant dense<0.000000e+00> : vector<8x32xf32>
    %171 = vector.multi_reduction <add>, %170, %cst_108 [0] : vector<4x8x32xf32> to vector<8x32xf32>
    %172 = vector.extract_strided_slice %126 {offsets = [0, 0], sizes = [1, 32], strides = [1, 1]} : vector<6x32xf32> to vector<1x32xf32>
    %173 = vector.broadcast %172 : vector<1x32xf32> to vector<8x32xf32>
    %174 = arith.addf %171, %173 : vector<8x32xf32>
    %175 = arith.addf %124, %174 : vector<8x32xf32>
    %176 = vector.extract_strided_slice %126 {offsets = [2, 0], sizes = [1, 32], strides = [1, 1]} : vector<6x32xf32> to vector<1x32xf32>
    %177 = vector.extract_strided_slice %126 {offsets = [3, 0], sizes = [1, 32], strides = [1, 1]} : vector<6x32xf32> to vector<1x32xf32>
    %cst_109 = arith.constant dense<0.000000e+00> : vector<8xf32>
    %178 = vector.multi_reduction <add>, %175, %cst_109 [1] : vector<8x32xf32> to vector<8xf32>
    %179 = vector.shape_cast %178 : vector<8xf32> to vector<8x1xf32>
    %cst_110 = arith.constant 3.200000e+01 : f32
    %180 = vector.broadcast %cst_110 : f32 to vector<8x1xf32>
    %181 = arith.divf %179, %180 : vector<8x1xf32>
    %182 = vector.broadcast %181 : vector<8x1xf32> to vector<8x32xf32>
    %183 = arith.subf %175, %182 : vector<8x32xf32>
    %184 = arith.mulf %183, %183 : vector<8x32xf32>
    %cst_111 = arith.constant dense<0.000000e+00> : vector<8xf32>
    %185 = vector.multi_reduction <add>, %184, %cst_111 [1] : vector<8x32xf32> to vector<8xf32>
    %186 = vector.shape_cast %185 : vector<8xf32> to vector<8x1xf32>
    %cst_112 = arith.constant 3.200000e+01 : f32
    %187 = vector.broadcast %cst_112 : f32 to vector<8x1xf32>
    %188 = arith.divf %186, %187 : vector<8x1xf32>
    %189 = vector.broadcast %181 : vector<8x1xf32> to vector<8x32xf32>
    %190 = arith.subf %175, %189 : vector<8x32xf32>
    %cst_113 = arith.constant 9.99999974E-6 : f32
    %191 = vector.broadcast %cst_113 : f32 to vector<8x1xf32>
    %192 = arith.addf %188, %191 : vector<8x1xf32>
    %193 = math.rsqrt %192 : vector<8x1xf32>
    %194 = vector.broadcast %193 : vector<8x1xf32> to vector<8x32xf32>
    %195 = arith.mulf %190, %194 : vector<8x32xf32>
    %196 = vector.broadcast %176 : vector<1x32xf32> to vector<8x32xf32>
    %197 = arith.mulf %195, %196 : vector<8x32xf32>
    %198 = vector.broadcast %177 : vector<1x32xf32> to vector<8x32xf32>
    %199 = arith.addf %197, %198 : vector<8x32xf32>
    %c1_114 = arith.constant 1 : index
    %c0_115 = arith.constant 0 : index
    %c0_116 = arith.constant 0 : index
    %200 = vector.load %arg6[%c1_114, %c0_115, %c0_116] : memref<2x32x64xf32, #tpu.memory_space<vmem>>, vector<1x32x64xf32>
    %201 = vector.shape_cast %200 : vector<1x32x64xf32> to vector<32x64xf32>
    %cst_117 = arith.constant dense<0.000000e+00> : vector<8x64xf32>
    %202 = tpu.matmul %199, %201, %cst_117 {dimension_numbers = #tpu.dot_dimension_numbers<[1], [0], [0], [1], [0, 0, 1, 1], [], []>} : vector<8x32xf32>, vector<32x64xf32>, vector<8x64xf32> -> vector<8x64xf32>
    %203 = vector.broadcast %128 : vector<1x64xf32> to vector<8x64xf32>
    %204 = arith.addf %202, %203 : vector<8x64xf32>
    %cst_118 = arith.constant 0.000000e+00 : f32
    %205 = vector.broadcast %cst_118 : f32 to vector<8x64xf32>
    %206 = arith.maximumf %204, %205 : vector<8x64xf32>
    %c1_119 = arith.constant 1 : index
    %c0_120 = arith.constant 0 : index
    %c0_121 = arith.constant 0 : index
    %207 = vector.load %arg8[%c1_119, %c0_120, %c0_121] : memref<2x64x32xf32, #tpu.memory_space<vmem>>, vector<1x64x32xf32>
    %208 = vector.shape_cast %207 : vector<1x64x32xf32> to vector<64x32xf32>
    %cst_122 = arith.constant dense<0.000000e+00> : vector<8x32xf32>
    %209 = tpu.matmul %206, %208, %cst_122 {dimension_numbers = #tpu.dot_dimension_numbers<[1], [0], [0], [1], [0, 0, 1, 1], [], []>} : vector<8x64xf32>, vector<64x32xf32>, vector<8x32xf32> -> vector<8x32xf32>
    %210 = vector.extract_strided_slice %126 {offsets = [1, 0], sizes = [1, 32], strides = [1, 1]} : vector<6x32xf32> to vector<1x32xf32>
    %211 = vector.broadcast %210 : vector<1x32xf32> to vector<8x32xf32>
    %212 = arith.addf %209, %211 : vector<8x32xf32>
    %213 = arith.addf %199, %212 : vector<8x32xf32>
    %214 = vector.extract_strided_slice %126 {offsets = [4, 0], sizes = [1, 32], strides = [1, 1]} : vector<6x32xf32> to vector<1x32xf32>
    %215 = vector.extract_strided_slice %126 {offsets = [5, 0], sizes = [1, 32], strides = [1, 1]} : vector<6x32xf32> to vector<1x32xf32>
    %cst_123 = arith.constant dense<0.000000e+00> : vector<8xf32>
    %216 = vector.multi_reduction <add>, %213, %cst_123 [1] : vector<8x32xf32> to vector<8xf32>
    %217 = vector.shape_cast %216 : vector<8xf32> to vector<8x1xf32>
    %cst_124 = arith.constant 3.200000e+01 : f32
    %218 = vector.broadcast %cst_124 : f32 to vector<8x1xf32>
    %219 = arith.divf %217, %218 : vector<8x1xf32>
    %220 = vector.broadcast %219 : vector<8x1xf32> to vector<8x32xf32>
    %221 = arith.subf %213, %220 : vector<8x32xf32>
    %222 = arith.mulf %221, %221 : vector<8x32xf32>
    %cst_125 = arith.constant dense<0.000000e+00> : vector<8xf32>
    %223 = vector.multi_reduction <add>, %222, %cst_125 [1] : vector<8x32xf32> to vector<8xf32>
    %224 = vector.shape_cast %223 : vector<8xf32> to vector<8x1xf32>
    %cst_126 = arith.constant 3.200000e+01 : f32
    %225 = vector.broadcast %cst_126 : f32 to vector<8x1xf32>
    %226 = arith.divf %224, %225 : vector<8x1xf32>
    %227 = vector.broadcast %219 : vector<8x1xf32> to vector<8x32xf32>
    %228 = arith.subf %213, %227 : vector<8x32xf32>
    %cst_127 = arith.constant 9.99999974E-6 : f32
    %229 = vector.broadcast %cst_127 : f32 to vector<8x1xf32>
    %230 = arith.addf %226, %229 : vector<8x1xf32>
    %231 = math.rsqrt %230 : vector<8x1xf32>
    %232 = vector.broadcast %231 : vector<8x1xf32> to vector<8x32xf32>
    %233 = arith.mulf %228, %232 : vector<8x32xf32>
    %234 = vector.broadcast %214 : vector<1x32xf32> to vector<8x32xf32>
    %235 = arith.mulf %233, %234 : vector<8x32xf32>
    %236 = vector.broadcast %215 : vector<1x32xf32> to vector<8x32xf32>
    %237 = arith.addf %235, %236 : vector<8x32xf32>
    %c0_128 = arith.constant 0 : index
    %c0_129 = arith.constant 0 : index
    %c0_130 = arith.constant 0 : index
    %238 = vector.load %arg10[%c0_128, %c0_129, %c0_130] : memref<2x8x32xf32, #tpu.memory_space<vmem>>, vector<1x8x32xf32>
    %239 = vector.shape_cast %238 : vector<1x8x32xf32> to vector<8x32xf32>
    %240 = vector.shape_cast %237 : vector<8x32xf32> to vector<1x8x32xf32>
    tpu.vector_store %arg10[%c0_128, %c0_129, %c0_130], %240 {strides = array<i32>} : memref<2x8x32xf32, #tpu.memory_space<vmem>>, vector<1x8x32xf32>,
    %c1_131 = arith.constant 1 : index
    %c0_132 = arith.constant 0 : index
    %c0_133 = arith.constant 0 : index
    %241 = vector.load %arg0[%c1_131, %c0_132, %c0_133] : memref<2x8x32xf32, #tpu.memory_space<vmem>>, vector<1x8x32xf32>
    %242 = vector.shape_cast %241 : vector<1x8x32xf32> to vector<8x32xf32>
    %c1_134 = arith.constant 1 : index
    %c0_135 = arith.constant 0 : index
    %c0_136 = arith.constant 0 : index
    %243 = vector.load %arg1[%c1_134, %c0_135, %c0_136] : memref<2x8x32xf32, #tpu.memory_space<vmem>>, vector<1x8x32xf32>
    %244 = vector.shape_cast %243 : vector<1x8x32xf32> to vector<8x32xf32>
    %245 = vector.shape_cast %242 : vector<8x32xf32> to vector<1x8x32xf32>
    %246 = vector.shape_cast %245 : vector<1x8x32xf32> to vector<1x8x32xf32>
    %247 = vector.broadcast %246 : vector<1x8x32xf32> to vector<4x8x32xf32>
    %c1_137 = arith.constant 1 : index
    %c0_138 = arith.constant 0 : index
    %c0_139 = arith.constant 0 : index
    %248 = vector.load %arg2[%c1_137, %c0_138, %c0_139] : memref<2x8x8xf32, #tpu.memory_space<vmem>>, vector<1x8x8xf32>
    %249 = vector.shape_cast %248 : vector<1x8x8xf32> to vector<8x8xf32>
    %250 = vector.shape_cast %249 : vector<8x8xf32> to vector<1x8x8xf32>
    %251 = vector.shape_cast %250 : vector<1x8x8xf32> to vector<1x8x8xf32>
    %252 = vector.broadcast %251 : vector<1x8x8xf32> to vector<4x8x8xf32>
    %c0_140 = arith.constant 0 : index
    %c0_141 = arith.constant 0 : index
    %c0_142 = arith.constant 0 : index
    %253 = vector.load %arg9[%c0_140, %c0_141, %c0_142] : memref<2x6x32xf32, #tpu.memory_space<vmem>>, vector<1x6x32xf32>
    %254 = vector.shape_cast %253 : vector<1x6x32xf32> to vector<6x32xf32>
    %c0_143 = arith.constant 0 : index
    %c0_144 = arith.constant 0 : index
    %c0_145 = arith.constant 0 : index
    %255 = vector.load %arg7[%c0_143, %c0_144, %c0_145] : memref<2x1x64xf32, #tpu.memory_space<vmem>>, vector<1x1x64xf32>
    %256 = vector.shape_cast %255 : vector<1x1x64xf32> to vector<1x64xf32>
    %257 = vector.shape_cast %244 : vector<8x32xf32> to vector<1x8x32xf32>
    %258 = vector.shape_cast %257 : vector<1x8x32xf32> to vector<1x8x32xf32>
    %259 = vector.broadcast %258 : vector<1x8x32xf32> to vector<4x8x32xf32>
    %c0_146 = arith.constant 0 : index
    %c0_147 = arith.constant 0 : index
    %c0_148 = arith.constant 0 : index
    %c0_149 = arith.constant 0 : index
    %260 = vector.load %arg3[%c0_146, %c0_147, %c0_148, %c0_149] : memref<6x4x32x8xf32, #tpu.memory_space<vmem>>, vector<1x4x32x8xf32>
    %261 = vector.shape_cast %260 : vector<1x4x32x8xf32> to vector<4x32x8xf32>
    "tpu.trace_start"() <{level = 10 : i32, message = "hqm,hmd->hqd"}> : () -> ()
    %cst_150 = arith.constant dense<0.000000e+00> : vector<4x8x8xf32>
    %262 = tpu.matmul %259, %261, %cst_150 {dimension_numbers = #tpu.dot_dimension_numbers<[2], [1], [1], [2], [0, 0, 0, 1, 1, 2], [0], [0]>} : vector<4x8x32xf32>, vector<4x32x8xf32>, vector<4x8x8xf32> -> vector<4x8x8xf32>
    "tpu.trace_stop"() : () -> ()
    %c0_151 = arith.constant 0 : index
    %c0_152 = arith.constant 0 : index
    %c0_153 = arith.constant 0 : index
    %c0_154 = arith.constant 0 : index
    %263 = vector.load %arg4[%c0_151, %c0_152, %c0_153, %c0_154] : memref<6x4x1x8xf32, #tpu.memory_space<vmem>>, vector<1x4x1x8xf32>
    %264 = vector.shape_cast %263 : vector<1x4x1x8xf32> to vector<4x1x8xf32>
    %265 = vector.broadcast %264 : vector<4x1x8xf32> to vector<4x8x8xf32>
    %266 = arith.addf %262, %265 : vector<4x8x8xf32>
    %c1_155 = arith.constant 1 : index
    %c0_156 = arith.constant 0 : index
    %c0_157 = arith.constant 0 : index
    %c0_158 = arith.constant 0 : index
    %267 = vector.load %arg3[%c1_155, %c0_156, %c0_157, %c0_158] : memref<6x4x32x8xf32, #tpu.memory_space<vmem>>, vector<1x4x32x8xf32>
    %268 = vector.shape_cast %267 : vector<1x4x32x8xf32> to vector<4x32x8xf32>
    "tpu.trace_start"() <{level = 10 : i32, message = "hkm,hmd->hkd"}> : () -> ()
    %cst_159 = arith.constant dense<0.000000e+00> : vector<4x8x8xf32>
    %269 = tpu.matmul %247, %268, %cst_159 {dimension_numbers = #tpu.dot_dimension_numbers<[2], [1], [1], [2], [0, 0, 0, 1, 1, 2], [0], [0]>} : vector<4x8x32xf32>, vector<4x32x8xf32>, vector<4x8x8xf32> -> vector<4x8x8xf32>
    "tpu.trace_stop"() : () -> ()
    %c1_160 = arith.constant 1 : index
    %c0_161 = arith.constant 0 : index
    %c0_162 = arith.constant 0 : index
    %c0_163 = arith.constant 0 : index
    %270 = vector.load %arg4[%c1_160, %c0_161, %c0_162, %c0_163] : memref<6x4x1x8xf32, #tpu.memory_space<vmem>>, vector<1x4x1x8xf32>
    %271 = vector.shape_cast %270 : vector<1x4x1x8xf32> to vector<4x1x8xf32>
    %272 = vector.broadcast %271 : vector<4x1x8xf32> to vector<4x8x8xf32>
    %273 = arith.addf %269, %272 : vector<4x8x8xf32>
    %c2_164 = arith.constant 2 : index
    %c0_165 = arith.constant 0 : index
    %c0_166 = arith.constant 0 : index
    %c0_167 = arith.constant 0 : index
    %274 = vector.load %arg3[%c2_164, %c0_165, %c0_166, %c0_167] : memref<6x4x32x8xf32, #tpu.memory_space<vmem>>, vector<1x4x32x8xf32>
    %275 = vector.shape_cast %274 : vector<1x4x32x8xf32> to vector<4x32x8xf32>
    "tpu.trace_start"() <{level = 10 : i32, message = "hkm,hmd->hkd"}> : () -> ()
    %cst_168 = arith.constant dense<0.000000e+00> : vector<4x8x8xf32>
    %276 = tpu.matmul %247, %275, %cst_168 {dimension_numbers = #tpu.dot_dimension_numbers<[2], [1], [1], [2], [0, 0, 0, 1, 1, 2], [0], [0]>} : vector<4x8x32xf32>, vector<4x32x8xf32>, vector<4x8x8xf32> -> vector<4x8x8xf32>
    "tpu.trace_stop"() : () -> ()
    %c2_169 = arith.constant 2 : index
    %c0_170 = arith.constant 0 : index
    %c0_171 = arith.constant 0 : index
    %c0_172 = arith.constant 0 : index
    %277 = vector.load %arg4[%c2_169, %c0_170, %c0_171, %c0_172] : memref<6x4x1x8xf32, #tpu.memory_space<vmem>>, vector<1x4x1x8xf32>
    %278 = vector.shape_cast %277 : vector<1x4x1x8xf32> to vector<4x1x8xf32>
    %279 = vector.broadcast %278 : vector<4x1x8xf32> to vector<4x8x8xf32>
    %280 = arith.addf %276, %279 : vector<4x8x8xf32>
    "tpu.trace_start"() <{level = 10 : i32, message = "hqd,hkd->hqk"}> : () -> ()
    %cst_173 = arith.constant dense<0.000000e+00> : vector<4x8x8xf32>
    %281 = tpu.matmul %266, %273, %cst_173 {dimension_numbers = #tpu.dot_dimension_numbers<[2], [2], [1], [1], [0, 0, 0, 1, 1, 1], [0], [0]>} : vector<4x8x8xf32>, vector<4x8x8xf32>, vector<4x8x8xf32> -> vector<4x8x8xf32>
    "tpu.trace_stop"() : () -> ()
    %cst_174 = arith.constant 0.353553385 : f32
    %282 = vector.broadcast %cst_174 : f32 to vector<4x8x8xf32>
    %283 = arith.mulf %281, %282 : vector<4x8x8xf32>
    %284 = arith.addf %283, %252 : vector<4x8x8xf32>
    %cst_175 = arith.constant dense<0xFF800000> : vector<4x8xf32>
    %285 = vector.multi_reduction <maximumf>, %284, %cst_175 [2] : vector<4x8x8xf32> to vector<4x8xf32>
    %286 = vector.shape_cast %285 : vector<4x8xf32> to vector<4x8x1xf32>
    %287 = vector.broadcast %286 : vector<4x8x1xf32> to vector<4x8x8xf32>
    %288 = arith.subf %284, %287 : vector<4x8x8xf32>
    %289 = math.exp %288 : vector<4x8x8xf32>
    %cst_176 = arith.constant dense<0.000000e+00> : vector<4x8xf32>
    %290 = vector.multi_reduction <add>, %289, %cst_176 [2] : vector<4x8x8xf32> to vector<4x8xf32>
    %291 = vector.shape_cast %290 : vector<4x8xf32> to vector<4x8x1xf32>
    %292 = tpu.reciprocal %291 {approx = true} : vector<4x8x1xf32> -> vector<4x8x1xf32>
    %293 = vector.broadcast %292 : vector<4x8x1xf32> to vector<4x8x8xf32>
    %294 = arith.mulf %289, %293 : vector<4x8x8xf32>
    "tpu.trace_start"() <{level = 10 : i32, message = "hqk,hkd->hqd"}> : () -> ()
    %cst_177 = arith.constant dense<0.000000e+00> : vector<4x8x8xf32>
    %295 = tpu.matmul %294, %280, %cst_177 {dimension_numbers = #tpu.dot_dimension_numbers<[2], [1], [1], [2], [0, 0, 0, 1, 1, 2], [0], [0]>} : vector<4x8x8xf32>, vector<4x8x8xf32>, vector<4x8x8xf32> -> vector<4x8x8xf32>
    "tpu.trace_stop"() : () -> ()
    %c0_178 = arith.constant 0 : index
    %c0_179 = arith.constant 0 : index
    %c0_180 = arith.constant 0 : index
    %c0_181 = arith.constant 0 : index
    %296 = vector.load %arg5[%c0_178, %c0_179, %c0_180, %c0_181] : memref<2x4x8x32xf32, #tpu.memory_space<vmem>>, vector<1x4x8x32xf32>
    %297 = vector.shape_cast %296 : vector<1x4x8x32xf32> to vector<4x8x32xf32>
    "tpu.trace_start"() <{level = 10 : i32, message = "hqd,hdn->hqn"}> : () -> ()
    %cst_182 = arith.constant dense<0.000000e+00> : vector<4x8x32xf32>
    %298 = tpu.matmul %295, %297, %cst_182 {dimension_numbers = #tpu.dot_dimension_numbers<[2], [1], [1], [2], [0, 0, 0, 1, 1, 2], [0], [0]>} : vector<4x8x8xf32>, vector<4x8x32xf32>, vector<4x8x32xf32> -> vector<4x8x32xf32>
    "tpu.trace_stop"() : () -> ()
    %cst_183 = arith.constant dense<0.000000e+00> : vector<8x32xf32>
    %299 = vector.multi_reduction <add>, %298, %cst_183 [0] : vector<4x8x32xf32> to vector<8x32xf32>
    %300 = vector.extract_strided_slice %254 {offsets = [0, 0], sizes = [1, 32], strides = [1, 1]} : vector<6x32xf32> to vector<1x32xf32>
    %301 = vector.broadcast %300 : vector<1x32xf32> to vector<8x32xf32>
    %302 = arith.addf %299, %301 : vector<8x32xf32>
    %303 = arith.addf %244, %302 : vector<8x32xf32>
    %304 = vector.extract_strided_slice %254 {offsets = [2, 0], sizes = [1, 32], strides = [1, 1]} : vector<6x32xf32> to vector<1x32xf32>
    %305 = vector.extract_strided_slice %254 {offsets = [3, 0], sizes = [1, 32], strides = [1, 1]} : vector<6x32xf32> to vector<1x32xf32>
    %cst_184 = arith.constant dense<0.000000e+00> : vector<8xf32>
    %306 = vector.multi_reduction <add>, %303, %cst_184 [1] : vector<8x32xf32> to vector<8xf32>
    %307 = vector.shape_cast %306 : vector<8xf32> to vector<8x1xf32>
    %cst_185 = arith.constant 3.200000e+01 : f32
    %308 = vector.broadcast %cst_185 : f32 to vector<8x1xf32>
    %309 = arith.divf %307, %308 : vector<8x1xf32>
    %310 = vector.broadcast %309 : vector<8x1xf32> to vector<8x32xf32>
    %311 = arith.subf %303, %310 : vector<8x32xf32>
    %312 = arith.mulf %311, %311 : vector<8x32xf32>
    %cst_186 = arith.constant dense<0.000000e+00> : vector<8xf32>
    %313 = vector.multi_reduction <add>, %312, %cst_186 [1] : vector<8x32xf32> to vector<8xf32>
    %314 = vector.shape_cast %313 : vector<8xf32> to vector<8x1xf32>
    %cst_187 = arith.constant 3.200000e+01 : f32
    %315 = vector.broadcast %cst_187 : f32 to vector<8x1xf32>
    %316 = arith.divf %314, %315 : vector<8x1xf32>
    %317 = vector.broadcast %309 : vector<8x1xf32> to vector<8x32xf32>
    %318 = arith.subf %303, %317 : vector<8x32xf32>
    %cst_188 = arith.constant 9.99999974E-6 : f32
    %319 = vector.broadcast %cst_188 : f32 to vector<8x1xf32>
    %320 = arith.addf %316, %319 : vector<8x1xf32>
    %321 = math.rsqrt %320 : vector<8x1xf32>
    %322 = vector.broadcast %321 : vector<8x1xf32> to vector<8x32xf32>
    %323 = arith.mulf %318, %322 : vector<8x32xf32>
    %324 = vector.broadcast %304 : vector<1x32xf32> to vector<8x32xf32>
    %325 = arith.mulf %323, %324 : vector<8x32xf32>
    %326 = vector.broadcast %305 : vector<1x32xf32> to vector<8x32xf32>
    %327 = arith.addf %325, %326 : vector<8x32xf32>
    %c0_189 = arith.constant 0 : index
    %c0_190 = arith.constant 0 : index
    %c0_191 = arith.constant 0 : index
    %328 = vector.load %arg6[%c0_189, %c0_190, %c0_191] : memref<2x32x64xf32, #tpu.memory_space<vmem>>, vector<1x32x64xf32>
    %329 = vector.shape_cast %328 : vector<1x32x64xf32> to vector<32x64xf32>
    %cst_192 = arith.constant dense<0.000000e+00> : vector<8x64xf32>
    %330 = tpu.matmul %327, %329, %cst_192 {dimension_numbers = #tpu.dot_dimension_numbers<[1], [0], [0], [1], [0, 0, 1, 1], [], []>} : vector<8x32xf32>, vector<32x64xf32>, vector<8x64xf32> -> vector<8x64xf32>
    %331 = vector.broadcast %256 : vector<1x64xf32> to vector<8x64xf32>
    %332 = arith.addf %330, %331 : vector<8x64xf32>
    %cst_193 = arith.constant 0.000000e+00 : f32
    %333 = vector.broadcast %cst_193 : f32 to vector<8x64xf32>
    %334 = arith.maximumf %332, %333 : vector<8x64xf32>
    %c0_194 = arith.constant 0 : index
    %c0_195 = arith.constant 0 : index
    %c0_196 = arith.constant 0 : index
    %335 = vector.load %arg8[%c0_194, %c0_195, %c0_196] : memref<2x64x32xf32, #tpu.memory_space<vmem>>, vector<1x64x32xf32>
    %336 = vector.shape_cast %335 : vector<1x64x32xf32> to vector<64x32xf32>
    %cst_197 = arith.constant dense<0.000000e+00> : vector<8x32xf32>
    %337 = tpu.matmul %334, %336, %cst_197 {dimension_numbers = #tpu.dot_dimension_numbers<[1], [0], [0], [1], [0, 0, 1, 1], [], []>} : vector<8x64xf32>, vector<64x32xf32>, vector<8x32xf32> -> vector<8x32xf32>
    %338 = vector.extract_strided_slice %254 {offsets = [1, 0], sizes = [1, 32], strides = [1, 1]} : vector<6x32xf32> to vector<1x32xf32>
    %339 = vector.broadcast %338 : vector<1x32xf32> to vector<8x32xf32>
    %340 = arith.addf %337, %339 : vector<8x32xf32>
    %341 = arith.addf %327, %340 : vector<8x32xf32>
    %342 = vector.extract_strided_slice %254 {offsets = [4, 0], sizes = [1, 32], strides = [1, 1]} : vector<6x32xf32> to vector<1x32xf32>
    %343 = vector.extract_strided_slice %254 {offsets = [5, 0], sizes = [1, 32], strides = [1, 1]} : vector<6x32xf32> to vector<1x32xf32>
    %cst_198 = arith.constant dense<0.000000e+00> : vector<8xf32>
    %344 = vector.multi_reduction <add>, %341, %cst_198 [1] : vector<8x32xf32> to vector<8xf32>
    %345 = vector.shape_cast %344 : vector<8xf32> to vector<8x1xf32>
    %cst_199 = arith.constant 3.200000e+01 : f32
    %346 = vector.broadcast %cst_199 : f32 to vector<8x1xf32>
    %347 = arith.divf %345, %346 : vector<8x1xf32>
    %348 = vector.broadcast %347 : vector<8x1xf32> to vector<8x32xf32>
    %349 = arith.subf %341, %348 : vector<8x32xf32>
    %350 = arith.mulf %349, %349 : vector<8x32xf32>
    %cst_200 = arith.constant dense<0.000000e+00> : vector<8xf32>
    %351 = vector.multi_reduction <add>, %350, %cst_200 [1] : vector<8x32xf32> to vector<8xf32>
    %352 = vector.shape_cast %351 : vector<8xf32> to vector<8x1xf32>
    %cst_201 = arith.constant 3.200000e+01 : f32
    %353 = vector.broadcast %cst_201 : f32 to vector<8x1xf32>
    %354 = arith.divf %352, %353 : vector<8x1xf32>
    %355 = vector.broadcast %347 : vector<8x1xf32> to vector<8x32xf32>
    %356 = arith.subf %341, %355 : vector<8x32xf32>
    %cst_202 = arith.constant 9.99999974E-6 : f32
    %357 = vector.broadcast %cst_202 : f32 to vector<8x1xf32>
    %358 = arith.addf %354, %357 : vector<8x1xf32>
    %359 = math.rsqrt %358 : vector<8x1xf32>
    %360 = vector.broadcast %359 : vector<8x1xf32> to vector<8x32xf32>
    %361 = arith.mulf %356, %360 : vector<8x32xf32>
    %362 = vector.broadcast %342 : vector<1x32xf32> to vector<8x32xf32>
    %363 = arith.mulf %361, %362 : vector<8x32xf32>
    %364 = vector.broadcast %343 : vector<1x32xf32> to vector<8x32xf32>
    %365 = arith.addf %363, %364 : vector<8x32xf32>
    %c1_203 = arith.constant 1 : index
    %c0_204 = arith.constant 0 : index
    %c0_205 = arith.constant 0 : index
    %366 = vector.load %arg9[%c1_203, %c0_204, %c0_205] : memref<2x6x32xf32, #tpu.memory_space<vmem>>, vector<1x6x32xf32>
    %367 = vector.shape_cast %366 : vector<1x6x32xf32> to vector<6x32xf32>
    %c1_206 = arith.constant 1 : index
    %c0_207 = arith.constant 0 : index
    %c0_208 = arith.constant 0 : index
    %368 = vector.load %arg7[%c1_206, %c0_207, %c0_208] : memref<2x1x64xf32, #tpu.memory_space<vmem>>, vector<1x1x64xf32>
    %369 = vector.shape_cast %368 : vector<1x1x64xf32> to vector<1x64xf32>
    %370 = vector.shape_cast %365 : vector<8x32xf32> to vector<1x8x32xf32>
    %371 = vector.shape_cast %370 : vector<1x8x32xf32> to vector<1x8x32xf32>
    %372 = vector.broadcast %371 : vector<1x8x32xf32> to vector<4x8x32xf32>
    %c3_209 = arith.constant 3 : index
    %c0_210 = arith.constant 0 : index
    %c0_211 = arith.constant 0 : index
    %c0_212 = arith.constant 0 : index
    %373 = vector.load %arg3[%c3_209, %c0_210, %c0_211, %c0_212] : memref<6x4x32x8xf32, #tpu.memory_space<vmem>>, vector<1x4x32x8xf32>
    %374 = vector.shape_cast %373 : vector<1x4x32x8xf32> to vector<4x32x8xf32>
    "tpu.trace_start"() <{level = 10 : i32, message = "hqm,hmd->hqd"}> : () -> ()
    %cst_213 = arith.constant dense<0.000000e+00> : vector<4x8x8xf32>
    %375 = tpu.matmul %372, %374, %cst_213 {dimension_numbers = #tpu.dot_dimension_numbers<[2], [1], [1], [2], [0, 0, 0, 1, 1, 2], [0], [0]>} : vector<4x8x32xf32>, vector<4x32x8xf32>, vector<4x8x8xf32> -> vector<4x8x8xf32>
    "tpu.trace_stop"() : () -> ()
    %c3_214 = arith.constant 3 : index
    %c0_215 = arith.constant 0 : index
    %c0_216 = arith.constant 0 : index
    %c0_217 = arith.constant 0 : index
    %376 = vector.load %arg4[%c3_214, %c0_215, %c0_216, %c0_217] : memref<6x4x1x8xf32, #tpu.memory_space<vmem>>, vector<1x4x1x8xf32>
    %377 = vector.shape_cast %376 : vector<1x4x1x8xf32> to vector<4x1x8xf32>
    %378 = vector.broadcast %377 : vector<4x1x8xf32> to vector<4x8x8xf32>
    %379 = arith.addf %375, %378 : vector<4x8x8xf32>
    %c4_218 = arith.constant 4 : index
    %c0_219 = arith.constant 0 : index
    %c0_220 = arith.constant 0 : index
    %c0_221 = arith.constant 0 : index
    %380 = vector.load %arg3[%c4_218, %c0_219, %c0_220, %c0_221] : memref<6x4x32x8xf32, #tpu.memory_space<vmem>>, vector<1x4x32x8xf32>
    %381 = vector.shape_cast %380 : vector<1x4x32x8xf32> to vector<4x32x8xf32>
    "tpu.trace_start"() <{level = 10 : i32, message = "hkm,hmd->hkd"}> : () -> ()
    %cst_222 = arith.constant dense<0.000000e+00> : vector<4x8x8xf32>
    %382 = tpu.matmul %247, %381, %cst_222 {dimension_numbers = #tpu.dot_dimension_numbers<[2], [1], [1], [2], [0, 0, 0, 1, 1, 2], [0], [0]>} : vector<4x8x32xf32>, vector<4x32x8xf32>, vector<4x8x8xf32> -> vector<4x8x8xf32>
    "tpu.trace_stop"() : () -> ()
    %c4_223 = arith.constant 4 : index
    %c0_224 = arith.constant 0 : index
    %c0_225 = arith.constant 0 : index
    %c0_226 = arith.constant 0 : index
    %383 = vector.load %arg4[%c4_223, %c0_224, %c0_225, %c0_226] : memref<6x4x1x8xf32, #tpu.memory_space<vmem>>, vector<1x4x1x8xf32>
    %384 = vector.shape_cast %383 : vector<1x4x1x8xf32> to vector<4x1x8xf32>
    %385 = vector.broadcast %384 : vector<4x1x8xf32> to vector<4x8x8xf32>
    %386 = arith.addf %382, %385 : vector<4x8x8xf32>
    %c5_227 = arith.constant 5 : index
    %c0_228 = arith.constant 0 : index
    %c0_229 = arith.constant 0 : index
    %c0_230 = arith.constant 0 : index
    %387 = vector.load %arg3[%c5_227, %c0_228, %c0_229, %c0_230] : memref<6x4x32x8xf32, #tpu.memory_space<vmem>>, vector<1x4x32x8xf32>
    %388 = vector.shape_cast %387 : vector<1x4x32x8xf32> to vector<4x32x8xf32>
    "tpu.trace_start"() <{level = 10 : i32, message = "hkm,hmd->hkd"}> : () -> ()
    %cst_231 = arith.constant dense<0.000000e+00> : vector<4x8x8xf32>
    %389 = tpu.matmul %247, %388, %cst_231 {dimension_numbers = #tpu.dot_dimension_numbers<[2], [1], [1], [2], [0, 0, 0, 1, 1, 2], [0], [0]>} : vector<4x8x32xf32>, vector<4x32x8xf32>, vector<4x8x8xf32> -> vector<4x8x8xf32>
    "tpu.trace_stop"() : () -> ()
    %c5_232 = arith.constant 5 : index
    %c0_233 = arith.constant 0 : index
    %c0_234 = arith.constant 0 : index
    %c0_235 = arith.constant 0 : index
    %390 = vector.load %arg4[%c5_232, %c0_233, %c0_234, %c0_235] : memref<6x4x1x8xf32, #tpu.memory_space<vmem>>, vector<1x4x1x8xf32>
    %391 = vector.shape_cast %390 : vector<1x4x1x8xf32> to vector<4x1x8xf32>
    %392 = vector.broadcast %391 : vector<4x1x8xf32> to vector<4x8x8xf32>
    %393 = arith.addf %389, %392 : vector<4x8x8xf32>
    "tpu.trace_start"() <{level = 10 : i32, message = "hqd,hkd->hqk"}> : () -> ()
    %cst_236 = arith.constant dense<0.000000e+00> : vector<4x8x8xf32>
    %394 = tpu.matmul %379, %386, %cst_236 {dimension_numbers = #tpu.dot_dimension_numbers<[2], [2], [1], [1], [0, 0, 0, 1, 1, 1], [0], [0]>} : vector<4x8x8xf32>, vector<4x8x8xf32>, vector<4x8x8xf32> -> vector<4x8x8xf32>
    "tpu.trace_stop"() : () -> ()
    %cst_237 = arith.constant 0.353553385 : f32
    %395 = vector.broadcast %cst_237 : f32 to vector<4x8x8xf32>
    %396 = arith.mulf %394, %395 : vector<4x8x8xf32>
    %397 = arith.addf %396, %252 : vector<4x8x8xf32>
    %cst_238 = arith.constant dense<0xFF800000> : vector<4x8xf32>
    %398 = vector.multi_reduction <maximumf>, %397, %cst_238 [2] : vector<4x8x8xf32> to vector<4x8xf32>
    %399 = vector.shape_cast %398 : vector<4x8xf32> to vector<4x8x1xf32>
    %400 = vector.broadcast %399 : vector<4x8x1xf32> to vector<4x8x8xf32>
    %401 = arith.subf %397, %400 : vector<4x8x8xf32>
    %402 = math.exp %401 : vector<4x8x8xf32>
    %cst_239 = arith.constant dense<0.000000e+00> : vector<4x8xf32>
    %403 = vector.multi_reduction <add>, %402, %cst_239 [2] : vector<4x8x8xf32> to vector<4x8xf32>
    %404 = vector.shape_cast %403 : vector<4x8xf32> to vector<4x8x1xf32>
    %405 = tpu.reciprocal %404 {approx = true} : vector<4x8x1xf32> -> vector<4x8x1xf32>
    %406 = vector.broadcast %405 : vector<4x8x1xf32> to vector<4x8x8xf32>
    %407 = arith.mulf %402, %406 : vector<4x8x8xf32>
    "tpu.trace_start"() <{level = 10 : i32, message = "hqk,hkd->hqd"}> : () -> ()
    %cst_240 = arith.constant dense<0.000000e+00> : vector<4x8x8xf32>
    %408 = tpu.matmul %407, %393, %cst_240 {dimension_numbers = #tpu.dot_dimension_numbers<[2], [1], [1], [2], [0, 0, 0, 1, 1, 2], [0], [0]>} : vector<4x8x8xf32>, vector<4x8x8xf32>, vector<4x8x8xf32> -> vector<4x8x8xf32>
    "tpu.trace_stop"() : () -> ()
    %c1_241 = arith.constant 1 : index
    %c0_242 = arith.constant 0 : index
    %c0_243 = arith.constant 0 : index
    %c0_244 = arith.constant 0 : index
    %409 = vector.load %arg5[%c1_241, %c0_242, %c0_243, %c0_244] : memref<2x4x8x32xf32, #tpu.memory_space<vmem>>, vector<1x4x8x32xf32>
    %410 = vector.shape_cast %409 : vector<1x4x8x32xf32> to vector<4x8x32xf32>
    "tpu.trace_start"() <{level = 10 : i32, message = "hqd,hdn->hqn"}> : () -> ()
    %cst_245 = arith.constant dense<0.000000e+00> : vector<4x8x32xf32>
    %411 = tpu.matmul %408, %410, %cst_245 {dimension_numbers = #tpu.dot_dimension_numbers<[2], [1], [1], [2], [0, 0, 0, 1, 1, 2], [0], [0]>} : vector<4x8x8xf32>, vector<4x8x32xf32>, vector<4x8x32xf32> -> vector<4x8x32xf32>
    "tpu.trace_stop"() : () -> ()
    %cst_246 = arith.constant dense<0.000000e+00> : vector<8x32xf32>
    %412 = vector.multi_reduction <add>, %411, %cst_246 [0] : vector<4x8x32xf32> to vector<8x32xf32>
    %413 = vector.extract_strided_slice %367 {offsets = [0, 0], sizes = [1, 32], strides = [1, 1]} : vector<6x32xf32> to vector<1x32xf32>
    %414 = vector.broadcast %413 : vector<1x32xf32> to vector<8x32xf32>
    %415 = arith.addf %412, %414 : vector<8x32xf32>
    %416 = arith.addf %365, %415 : vector<8x32xf32>
    %417 = vector.extract_strided_slice %367 {offsets = [2, 0], sizes = [1, 32], strides = [1, 1]} : vector<6x32xf32> to vector<1x32xf32>
    %418 = vector.extract_strided_slice %367 {offsets = [3, 0], sizes = [1, 32], strides = [1, 1]} : vector<6x32xf32> to vector<1x32xf32>
    %cst_247 = arith.constant dense<0.000000e+00> : vector<8xf32>
    %419 = vector.multi_reduction <add>, %416, %cst_247 [1] : vector<8x32xf32> to vector<8xf32>
    %420 = vector.shape_cast %419 : vector<8xf32> to vector<8x1xf32>
    %cst_248 = arith.constant 3.200000e+01 : f32
    %421 = vector.broadcast %cst_248 : f32 to vector<8x1xf32>
    %422 = arith.divf %420, %421 : vector<8x1xf32>
    %423 = vector.broadcast %422 : vector<8x1xf32> to vector<8x32xf32>
    %424 = arith.subf %416, %423 : vector<8x32xf32>
    %425 = arith.mulf %424, %424 : vector<8x32xf32>
    %cst_249 = arith.constant dense<0.000000e+00> : vector<8xf32>
    %426 = vector.multi_reduction <add>, %425, %cst_249 [1] : vector<8x32xf32> to vector<8xf32>
    %427 = vector.shape_cast %426 : vector<8xf32> to vector<8x1xf32>
    %cst_250 = arith.constant 3.200000e+01 : f32
    %428 = vector.broadcast %cst_250 : f32 to vector<8x1xf32>
    %429 = arith.divf %427, %428 : vector<8x1xf32>
    %430 = vector.broadcast %422 : vector<8x1xf32> to vector<8x32xf32>
    %431 = arith.subf %416, %430 : vector<8x32xf32>
    %cst_251 = arith.constant 9.99999974E-6 : f32
    %432 = vector.broadcast %cst_251 : f32 to vector<8x1xf32>
    %433 = arith.addf %429, %432 : vector<8x1xf32>
    %434 = math.rsqrt %433 : vector<8x1xf32>
    %435 = vector.broadcast %434 : vector<8x1xf32> to vector<8x32xf32>
    %436 = arith.mulf %431, %435 : vector<8x32xf32>
    %437 = vector.broadcast %417 : vector<1x32xf32> to vector<8x32xf32>
    %438 = arith.mulf %436, %437 : vector<8x32xf32>
    %439 = vector.broadcast %418 : vector<1x32xf32> to vector<8x32xf32>
    %440 = arith.addf %438, %439 : vector<8x32xf32>
    %c1_252 = arith.constant 1 : index
    %c0_253 = arith.constant 0 : index
    %c0_254 = arith.constant 0 : index
    %441 = vector.load %arg6[%c1_252, %c0_253, %c0_254] : memref<2x32x64xf32, #tpu.memory_space<vmem>>, vector<1x32x64xf32>
    %442 = vector.shape_cast %441 : vector<1x32x64xf32> to vector<32x64xf32>
    %cst_255 = arith.constant dense<0.000000e+00> : vector<8x64xf32>
    %443 = tpu.matmul %440, %442, %cst_255 {dimension_numbers = #tpu.dot_dimension_numbers<[1], [0], [0], [1], [0, 0, 1, 1], [], []>} : vector<8x32xf32>, vector<32x64xf32>, vector<8x64xf32> -> vector<8x64xf32>
    %444 = vector.broadcast %369 : vector<1x64xf32> to vector<8x64xf32>
    %445 = arith.addf %443, %444 : vector<8x64xf32>
    %cst_256 = arith.constant 0.000000e+00 : f32
    %446 = vector.broadcast %cst_256 : f32 to vector<8x64xf32>
    %447 = arith.maximumf %445, %446 : vector<8x64xf32>
    %c1_257 = arith.constant 1 : index
    %c0_258 = arith.constant 0 : index
    %c0_259 = arith.constant 0 : index
    %448 = vector.load %arg8[%c1_257, %c0_258, %c0_259] : memref<2x64x32xf32, #tpu.memory_space<vmem>>, vector<1x64x32xf32>
    %449 = vector.shape_cast %448 : vector<1x64x32xf32> to vector<64x32xf32>
    %cst_260 = arith.constant dense<0.000000e+00> : vector<8x32xf32>
    %450 = tpu.matmul %447, %449, %cst_260 {dimension_numbers = #tpu.dot_dimension_numbers<[1], [0], [0], [1], [0, 0, 1, 1], [], []>} : vector<8x64xf32>, vector<64x32xf32>, vector<8x32xf32> -> vector<8x32xf32>
    %451 = vector.extract_strided_slice %367 {offsets = [1, 0], sizes = [1, 32], strides = [1, 1]} : vector<6x32xf32> to vector<1x32xf32>
    %452 = vector.broadcast %451 : vector<1x32xf32> to vector<8x32xf32>
    %453 = arith.addf %450, %452 : vector<8x32xf32>
    %454 = arith.addf %440, %453 : vector<8x32xf32>
    %455 = vector.extract_strided_slice %367 {offsets = [4, 0], sizes = [1, 32], strides = [1, 1]} : vector<6x32xf32> to vector<1x32xf32>
    %456 = vector.extract_strided_slice %367 {offsets = [5, 0], sizes = [1, 32], strides = [1, 1]} : vector<6x32xf32> to vector<1x32xf32>
    %cst_261 = arith.constant dense<0.000000e+00> : vector<8xf32>
    %457 = vector.multi_reduction <add>, %454, %cst_261 [1] : vector<8x32xf32> to vector<8xf32>
    %458 = vector.shape_cast %457 : vector<8xf32> to vector<8x1xf32>
    %cst_262 = arith.constant 3.200000e+01 : f32
    %459 = vector.broadcast %cst_262 : f32 to vector<8x1xf32>
    %460 = arith.divf %458, %459 : vector<8x1xf32>
    %461 = vector.broadcast %460 : vector<8x1xf32> to vector<8x32xf32>
    %462 = arith.subf %454, %461 : vector<8x32xf32>
    %463 = arith.mulf %462, %462 : vector<8x32xf32>
    %cst_263 = arith.constant dense<0.000000e+00> : vector<8xf32>
    %464 = vector.multi_reduction <add>, %463, %cst_263 [1] : vector<8x32xf32> to vector<8xf32>
    %465 = vector.shape_cast %464 : vector<8xf32> to vector<8x1xf32>
    %cst_264 = arith.constant 3.200000e+01 : f32
    %466 = vector.broadcast %cst_264 : f32 to vector<8x1xf32>
    %467 = arith.divf %465, %466 : vector<8x1xf32>
    %468 = vector.broadcast %460 : vector<8x1xf32> to vector<8x32xf32>
    %469 = arith.subf %454, %468 : vector<8x32xf32>
    %cst_265 = arith.constant 9.99999974E-6 : f32
    %470 = vector.broadcast %cst_265 : f32 to vector<8x1xf32>
    %471 = arith.addf %467, %470 : vector<8x1xf32>
    %472 = math.rsqrt %471 : vector<8x1xf32>
    %473 = vector.broadcast %472 : vector<8x1xf32> to vector<8x32xf32>
    %474 = arith.mulf %469, %473 : vector<8x32xf32>
    %475 = vector.broadcast %455 : vector<1x32xf32> to vector<8x32xf32>
    %476 = arith.mulf %474, %475 : vector<8x32xf32>
    %477 = vector.broadcast %456 : vector<1x32xf32> to vector<8x32xf32>
    %478 = arith.addf %476, %477 : vector<8x32xf32>
    %c1_266 = arith.constant 1 : index
    %c0_267 = arith.constant 0 : index
    %c0_268 = arith.constant 0 : index
    %479 = vector.load %arg10[%c1_266, %c0_267, %c0_268] : memref<2x8x32xf32, #tpu.memory_space<vmem>>, vector<1x8x32xf32>
    %480 = vector.shape_cast %479 : vector<1x8x32xf32> to vector<8x32xf32>
    %481 = vector.shape_cast %478 : vector<8x32xf32> to vector<1x8x32xf32>
    tpu.vector_store %arg10[%c1_266, %c0_267, %c0_268], %481 {strides = array<i32>} : memref<2x8x32xf32, #tpu.memory_space<vmem>>, vector<1x8x32xf32>,
    return
  }
}

</mosaic_0001>

<bundles_post_ra>
// kernel: tpu_custom_call.1
= control target key start
LH: loop header
LB: loop body
LE: loop exit
PB: predicated region body
PF: predicated region fallthrough
CT: control target
= control target key end

     0   :  { %v10852_v3 = vmov 0.0|0.0   ;;  %vm10853_vm0 = vmmov 0   ;;  %v10854_v11 = vmov 0.0   ;;  %vm85_vm1 = vcmask 261120   ;;  %s12638_s0 = inlined_call_operand.vmem [shape: f32[2,8,32], index: 0, kind: input, shape index: {}]   ;;  %s12639_s1 = inlined_call_operand.vmem [shape: f32[2,8,32], index: 1, kind: input, shape index: {}]   ;;  %s12640_s2 = inlined_call_operand.vmem [shape: f32[2,8,8], index: 2, kind: input, shape index: {}]   ;;  %s12641_s3 = inlined_call_operand.vmem [shape: f32[6,4,32,8], index: 3, kind: input, shape index: {}]   ;;  %s12642_s4 = inlined_call_operand.vmem [shape: f32[6,4,1,8], index: 4, kind: input, shape index: {}]   ;;  %s12643_s5 = inlined_call_operand.vmem [shape: f32[2,4,8,32], index: 5, kind: input, shape index: {}]   ;;  %s12644_s6 = inlined_call_operand.vmem [shape: f32[2,32,64], index: 6, kind: input, shape index: {}]   ;;  %s12645_s7 = inlined_call_operand.vmem [shape: f32[2,1,64], index: 7, kind: input, shape index: {}]   ;;  %s12646_s8 = inlined_call_operand.vmem [shape: f32[2,64,32], index: 8, kind: input, shape index: {}]   ;;  %s12647_s9 = inlined_call_operand.vmem [shape: f32[2,6,32], index: 9, kind: input, shape index: {}]   ;;  %s12648_s10 = inlined_call_operand.hbm [shape: f32[2,8,32], index: 10, kind: output, shape index: {}]  }
   0x1   :  { %v41_v0 = vld [vmem:[%s12641_s3] sm:$0xff]  ;;  %v42_v1 = vld [vmem:[%s12641_s3 + $0x8] sm:$0xff]  ;;  %10380 = vmatprep.subr.bf16.mxu0 %v10852_v3  ;;  %10386 = vmatprep.subr.bf16.mxu1 %v10852_v3  ;;  %v43_v6 = vld [vmem:[%s12641_s3 + $0x10] sm:$0xff] }
   0x2   :  { %v45_v2 = vld [vmem:[%s12641_s3 + $0x20] sm:$0xff]  ;;  %v10381_v4 = vpack.c.bf16 %v42_v1, %v41_v0  ;;  %v46_v5 = vld [vmem:[%s12641_s3 + $0x28] sm:$0xff]  ;;  %v44_v7 = vld [vmem:[%s12641_s3 + $0x18] sm:$0xff]  ;;  %9500 = vmatprep.mubr.msk.f32.mxu0 %vm10853_vm0, %v10854_v11  ;;  %9511 = vmatprep.mubr.msk.f32.mxu1 %vm10853_vm0, %v10854_v11 }
   0x3   :  { %v10387_v8 = vpack.c.bf16 %v46_v5, %v45_v2  ;;  %v47_v9 = vld [vmem:[%s12641_s3 + $0x30] sm:$0xff]  ;;  %v48_v10 = vld [vmem:[%s12641_s3 + $0x38] sm:$0xff]  ;;  %v10384_v12 = vpack.c.bf16 %v44_v7, %v43_v6  ;;  %v49_v14 = vld [vmem:[%s12641_s3 + $0x40] sm:$0xff] }
   0x4   :  { %10382 = vmatpush3.bf16.msra.mxu0 %v10381_v4  ;;  %v10390_v13 = vpack.c.bf16 %v48_v10, %v47_v9  ;;  %v50_v15 = vld [vmem:[%s12641_s3 + $0x48] sm:$0xff]  ;;  %v53_v16 = vld [vmem:[%s12641_s3 + $0x60] sm:$0xff]  ;;  %v51_v21 = vld [vmem:[%s12641_s3 + $0x50] sm:$0xff] }
   0x5   :  { %10388 = vmatpush3.bf16.msra.mxu1 %v10387_v8  ;;  %10383 = vmatprep.subr.bf16.mxu0 %v10852_v3  ;;  %v54_v17 = vld [vmem:[%s12641_s3 + $0x68] sm:$0xff]  ;;  %v10960_v18 = vld [vmem:[%s12639_s1] sm:$0xff]  ;;  %v10393_v19 = vpack.c.bf16 %v50_v15, %v49_v14  ;;  %v52_v22 = vld [vmem:[%s12641_s3 + $0x58] sm:$0xff] }
   0x6   :  { %10389 = vmatprep.subr.bf16.mxu1 %v10852_v3  ;;  %v10399_v20 = vpack.c.bf16 %v54_v17, %v53_v16  ;;  %v55_v23 = vld [vmem:[%s12641_s3 + $0x70] sm:$0xff]  ;;  %v56_v24 = vld [vmem:[%s12641_s3 + $0x78] sm:$0xff]  ;;  %v10396_v25 = vpack.c.bf16 %v52_v22, %v51_v21  ;;  %v8697_v27 = vld [vmem:[%s12641_s3 + $0x80] sm:$0xff] }
   0x7   :  { %v10402_v26 = vpack.c.bf16 %v56_v24, %v55_v23  ;;  %v8698_v28 = vld [vmem:[%s12641_s3 + $0x88] sm:$0xff] }
   0x8   :  { %10385 = vmatpush3.bf16.msra.mxu0 %v10384_v12 }
   0x9   :  { %10391 = vmatpush3.bf16.msra.mxu1 %v10390_v13  ;;  %10392 = vmatprep.subr.bf16.mxu0 %v10852_v3 }
   0xa   :  { %10398 = vmatprep.subr.bf16.mxu1 %v10852_v3 }
   0xb   :  { %9501 = vmatmul.mubr.msk.f32.vlgmr.msra.gmra.mrb[0].mxu0 %vm85_vm1, %v10960_v18 }
   0xc   :  { %9512 = vmatmul.mubr.msk.f32.vlgmr.msra.gmra.mrb[0].mxu1 %vm85_vm1, %v10960_v18  ;;  %10394 = vmatpush3.bf16.msra.mxu0 %v10393_v19 }
   0xd   :  { %10400 = vmatpush3.bf16.msra.mxu1 %v10399_v20  ;;  %10395 = vmatprep.subr.bf16.mxu0 %v10852_v3 }
   0xe   :  { %15 = vsyncpa [#allocation3], 0  ;;  %10401 = vmatprep.subr.bf16.mxu1 %v10852_v3  ;;  %9522 = vmatprep.mubr.msk.f32.mxu0 %vm10853_vm0, %v10854_v11  ;;  %v8701_v29 = vld [vmem:[%s12641_s3 + $0xa0] sm:$0xff]  ;;  %v8702_v30 = vld [vmem:[%s12641_s3 + $0xa8] sm:$0xff]  ;;  %v10405_v31 = vpack.c.bf16 %v8698_v28, %v8697_v27  ;;  %vm1024_vm2 = vcmask 64512   ;;  %vm2102_vm3 = vcmask 523264  }
   0xf   :  { %9533 = vmatprep.mubr.msk.f32.mxu1 %vm10853_vm0, %v10854_v11  ;;  %v10411_v32 = vpack.c.bf16 %v8702_v30, %v8701_v29  ;;  %v8699_v33 = vld [vmem:[%s12641_s3 + $0x90] sm:$0xff]  ;;  %v8700_v34 = vld [vmem:[%s12641_s3 + $0x98] sm:$0xff]  ;;  %v8705_v39 = vld [vmem:[%s12641_s3 + $0xc0] sm:$0xff] }
  0x10   :  { %10397 = vmatpush3.bf16.msra.mxu0 %v10396_v25  ;;  %v8703_v35 = vld [vmem:[%s12641_s3 + $0xb0] sm:$0xff]  ;;  %v8704_v36 = vld [vmem:[%s12641_s3 + $0xb8] sm:$0xff]  ;;  %v10408_v37 = vpack.c.bf16 %v8700_v34, %v8699_v33  ;;  %v8706_v40 = vld [vmem:[%s12641_s3 + $0xc8] sm:$0xff] }
  0x11   :  { %10403 = vmatpush3.bf16.msra.mxu1 %v10402_v26  ;;  %10404 = vmatprep.subr.bf16.mxu0 %v10852_v3  ;;  %v10414_v38 = vpack.c.bf16 %v8704_v36, %v8703_v35  ;;  %v8709_v41 = vld [vmem:[%s12641_s3 + $0xe0] sm:$0xff]  ;;  %v8710_v42 = vld [vmem:[%s12641_s3 + $0xe8] sm:$0xff]  ;;  %v10417_v44 = vpack.c.bf16 %v8706_v40, %v8705_v39  ;;  %v8707_v46 = vld [vmem:[%s12641_s3 + $0xd0] sm:$0xff] }
  0x12   :  { %10410 = vmatprep.subr.bf16.mxu1 %v10852_v3  ;;  %v11037_v43 = vld [vmem:[%s12638_s0] sm:$0xff]  ;;  %v10423_v45 = vpack.c.bf16 %v8710_v42, %v8709_v41  ;;  %v8708_v47 = vld [vmem:[%s12641_s3 + $0xd8] sm:$0xff]  ;;  %v8711_v48 = vld [vmem:[%s12641_s3 + $0xf0] sm:$0xff] }
  0x13   :  { %9523 = vmatmul.mubr.msk.f32.vlgmr.msra.gmra.mrb[2].mxu0 %vm85_vm1, %v10960_v18  ;;  %v8712_v49 = vld [vmem:[%s12641_s3 + $0xf8] sm:$0xff]  ;;  %v10420_v50 = vpack.c.bf16 %v8708_v47, %v8707_v46  ;;  %v8725_v52 = vld [vmem:[%s12641_s3 + $0x100] sm:$0xff]  ;;  %v8726_v53 = vld [vmem:[%s12641_s3 + $0x108] sm:$0xff] }
  0x14   :  { %9534 = vmatmul.mubr.msk.f32.vlgmr.msra.gmra.mrb[2].mxu1 %vm85_vm1, %v10960_v18  ;;  %10406 = vmatpush3.bf16.msra.mxu0 %v10405_v31  ;;  %v10426_v51 = vpack.c.bf16 %v8712_v49, %v8711_v48  ;;  %v10429_v54 = vpack.c.bf16 %v8726_v53, %v8725_v52  ;;  %v8727_v55 = vld [vmem:[%s12641_s3 + $0x110] sm:$0xff]  ;;  %v8728_v56 = vld [vmem:[%s12641_s3 + $0x118] sm:$0xff]  ;;  %v8729_v58 = vld [vmem:[%s12641_s3 + $0x120] sm:$0xff] }
  0x15   :  { %10412 = vmatpush3.bf16.msra.mxu1 %v10411_v32  ;;  %10407 = vmatprep.subr.bf16.mxu0 %v10852_v3  ;;  %v10432_v57 = vpack.c.bf16 %v8728_v56, %v8727_v55  ;;  %v8730_v59 = vld [vmem:[%s12641_s3 + $0x128] sm:$0xff]  ;;  %v8733_v60 = vld [vmem:[%s12641_s3 + $0x140] sm:$0xff]  ;;  %v8731_v0 = vld [vmem:[%s12641_s3 + $0x130] sm:$0xff] }
  0x16   :  { %10413 = vmatprep.subr.bf16.mxu1 %v10852_v3  ;;  %9544 = vmatprep.mubr.msk.f32.mxu0 %vm10853_vm0, %v10854_v11  ;;  %v10435_v61 = vpack.c.bf16 %v8730_v59, %v8729_v58  ;;  %v8734_v62 = vld [vmem:[%s12641_s3 + $0x148] sm:$0xff]  ;;  %v8732_v1 = vld [vmem:[%s12641_s3 + $0x138] sm:$0xff]  ;;  %v8735_v2 = vld [vmem:[%s12641_s3 + $0x150] sm:$0xff] }
  0x17   :  { %9555 = vmatprep.mubr.msk.f32.mxu1 %vm10853_vm0, %v10854_v11  ;;  %v10441_v63 = vpack.c.bf16 %v8734_v62, %v8733_v60  ;;  %v10438_v4 = vpack.c.bf16 %v8732_v1, %v8731_v0  ;;  %v8736_v5 = vld [vmem:[%s12641_s3 + $0x158] sm:$0xff]  ;;  %v8737_v7 = vld [vmem:[%s12641_s3 + $0x160] sm:$0xff]  ;;  %v8738_v8 = vld [vmem:[%s12641_s3 + $0x168] sm:$0xff] }
  0x18   :  { %10409 = vmatpush3.bf16.msra.mxu0 %v10408_v37  ;;  %v10444_v6 = vpack.c.bf16 %v8736_v5, %v8735_v2  ;;  %v10447_v9 = vpack.c.bf16 %v8738_v8, %v8737_v7  ;;  %v8739_v10 = vld [vmem:[%s12641_s3 + $0x170] sm:$0xff]  ;;  %v8740_v12 = vld [vmem:[%s12641_s3 + $0x178] sm:$0xff]  ;;  %v8717_v23 = vld [vmem:[%s12642_s4 + $0x4] ss:$0 sm:$0xff] }
  0x19   :  { %10415 = vmatpush3.bf16.msra.mxu1 %v10414_v38  ;;  %10416 = vmatprep.subr.bf16.mxu0 %v10852_v3  ;;  %v10450_v13 = vpack.c.bf16 %v8740_v12, %v8739_v10  ;;  %v8718_v25 = vld [vmem:[%s12642_s4 + $0x5] ss:$0 sm:$0xff]  ;;  %v8689_v26 = vld [vmem:[%s12642_s4] ss:$0 sm:$0xff]  ;;  %v8690_v33 = vld [vmem:[%s12642_s4 + $0x1] ss:$0 sm:$0xff] }
  0x1a   :  { %10422 = vmatprep.subr.bf16.mxu1 %v10852_v3  ;;  %v8719_v34 = vld [vmem:[%s12642_s4 + $0x6] ss:$0 sm:$0xff]  ;;  %v8720_v35 = vld [vmem:[%s12642_s4 + $0x7] ss:$0 sm:$0xff]  ;;  %v8691_v38 = vld [vmem:[%s12642_s4 + $0x2] ss:$0 sm:$0xff] }
  0x1b   :  { %9545 = vmatmul.mubr.msk.f32.vlgmr.msra.gmra.mrb[4].mxu0 %vm85_vm1, %v11037_v43  ;;  %v8692_v42 = vld [vmem:[%s12642_s4 + $0x3] ss:$0 sm:$0xff]  ;;  %v8745_v48 = vld [vmem:[%s12642_s4 + $0x8] ss:$0 sm:$0xff]  ;;  %v8746_v52 = vld [vmem:[%s12642_s4 + $0x9] ss:$0 sm:$0xff] }
  0x1c   :  { %9556 = vmatmul.mubr.msk.f32.vlgmr.msra.gmra.mrb[4].mxu1 %vm85_vm1, %v11037_v43  ;;  %10418 = vmatpush3.bf16.msra.mxu0 %v10417_v44 }
  0x1d   :  { %10424 = vmatpush3.bf16.msra.mxu1 %v10423_v45  ;;  %10419 = vmatprep.subr.bf16.mxu0 %v10852_v3 }
  0x1e   :  { %10425 = vmatprep.subr.bf16.mxu1 %v10852_v3  ;;  %9566 = vmatprep.mubr.msk.f32.mxu0 %vm10853_vm0, %v10854_v11 }
  0x1f   :  { %9577 = vmatprep.mubr.msk.f32.mxu1 %vm10853_vm0, %v10854_v11 }
  0x20   :  { %10421 = vmatpush3.bf16.msra.mxu0 %v10420_v50 }
  0x21   :  { %10427 = vmatpush3.bf16.msra.mxu1 %v10426_v51  ;;  %10428 = vmatprep.subr.bf16.mxu0 %v10852_v3 }
  0x22   :  { %10434 = vmatprep.subr.bf16.mxu1 %v10852_v3 }
  0x23   :  { %9567 = vmatmul.mubr.msk.f32.vlgmr.msra.gmra.mrb[6].mxu0 %vm85_vm1, %v11037_v43 }
  0x24   :  { %9578 = vmatmul.mubr.msk.f32.vlgmr.msra.gmra.mrb[6].mxu1 %vm85_vm1, %v11037_v43  ;;  %10430 = vmatpush3.bf16.msra.mxu0 %v10429_v54 }
  0x25   :  { %10431 = vmatprep.subr.bf16.mxu0 %v10852_v3  ;;  %9588 = vmatprep.mubr.msk.f32.mxu0 %vm10853_vm0, %v10854_v11 }
  0x26   :  { %9599 = vmatprep.mubr.msk.f32.mxu1 %vm10853_vm0, %v10854_v11  ;;  %10436 = vmatpush3.bf16.msra.mxu1 %v10435_v61  ;;  %v11204_v61 = vld [vmem:[%s12640_s2] sm:$0xff] }
  0x27   :  { %10437 = vmatprep.subr.bf16.mxu1 %v10852_v3 }
  0x28   :  { %10433 = vmatpush3.bf16.msra.mxu0 %v10432_v57 }
  0x29   :  { %10440 = vmatprep.subr.bf16.mxu0 %v10852_v3 }
  0x2a   :  { %10439 = vmatpush3.bf16.msra.mxu1 %v10438_v4 }
  0x2b   :  { %9589 = vmatmul.mubr.msk.f32.vlgmr.msra.gmra.mrb[8].mxu0 %vm85_vm1, %v11037_v43  ;;  %10446 = vmatprep.subr.bf16.mxu1 %v10852_v3 }
  0x2c   :  { %10442 = vmatpush3.bf16.msra.mxu0 %v10441_v63  ;;  %9610 = vmatprep.mubr.msk.f32.mxu0 %vm10853_vm0, %v10854_v11 }
  0x2d   :  { %10443 = vmatprep.subr.bf16.mxu0 %v10852_v3  ;;  %9600 = vmatmul.mubr.msk.f32.vlgmr.msra.gmra.mrb[8].mxu1 %vm85_vm1, %v11037_v43 }
  0x2e   :  { %10448 = vmatpush3.bf16.msra.mxu1 %v10447_v9  ;;  %9621 = vmatprep.mubr.msk.f32.mxu1 %vm10853_vm0, %v10854_v11 }
  0x2f   :  { %10449 = vmatprep.subr.bf16.mxu1 %v10852_v3 }
  0x30   :  { %10445 = vmatpush3.bf16.msra.mxu0 %v10444_v6 }
  0x31   :  { %9624 = vmatprep.subr.mxu0 %v10854_v11 }
  0x32   :  { %10451 = vmatpush3.bf16.msra.mxu1 %v10450_v13 }
  0x33   :  { %9611 = vmatmul.mubr.msk.f32.vlgmr.msra.gmra.mrb[10].mxu0 %vm85_vm1, %v11037_v43  ;;  %9639 = vmatprep.subr.mxu1 %v10854_v11 }
  0x34   :  { %9626 = vmatprep.mubr.msk.f32.mxu0 %vm10853_vm0, %v10854_v11 }
  0x35   :  { %9622 = vmatmul.mubr.msk.f32.vlgmr.msra.gmra.mrb[10].mxu1 %vm85_vm1, %v11037_v43 }
  0x36   :  { %9641 = vmatprep.mubr.msk.f32.mxu1 %vm10853_vm0, %v10854_v11 }
  0xde   :  { %v155_v14 = vpop.f32.mrb[0].mxu0 }
  0xdf   :  { %v9502_v15 = vpop.f32.mrb[1].mxu0  ;;  %v225_v16 = vpop.f32.mrb[0].mxu1  ;;  %v156_v32 = vadd.f32 %v8689_v26, %v155_v14 }
  0xe0   :  { %v9513_v17 = vpop.f32.mrb[1].mxu1  ;;  %v226_v36 = vadd.f32 %v8690_v33, %v225_v16 }
  0xe6   :  { %v295_v19 = vpop.f32.mrb[2].mxu0 }
  0xe7   :  { %v9524_v20 = vpop.f32.mrb[3].mxu0  ;;  %v365_v21 = vpop.f32.mrb[2].mxu1  ;;  %v296_v46 = vadd.f32 %v8691_v38, %v295_v19 }
  0xe8   :  { %v9535_v22 = vpop.f32.mrb[3].mxu1  ;;  %v366_v47 = vadd.f32 %v8692_v42, %v365_v21 }
  0xee   :  { %v484_v24 = vpop.f32.mrb[4].mxu0 }
  0xef   :  { %v485_v27 = vadd.f32 %v8717_v23, %v484_v24  ;;  %v9546_v28 = vpop.f32.mrb[5].mxu0  ;;  %v554_v29 = vpop.f32.mrb[4].mxu1 }
  0xf0   :  { %v9557_v30 = vpop.f32.mrb[5].mxu1  ;;  %v555_v31 = vadd.f32 %v8718_v25, %v554_v29 }
  0xf1   :  { %9625 = vmatpush3.xpose.msk.msra.mxu0 %vm1024_vm2, %v485_v27 }
  0xf2   :  { %9629 = vmatprep.subr.mxu0 %v10854_v11 }
  0xf4   :  { %9627 = vmatmul.mubr.msk.f32.vlgmr.msra.gmra.mrb[12].mxu0 %vm1024_vm2, %v156_v32 }
  0xf5   :  { %9630 = vmatpush3.xpose.msk.msra.mxu0 %vm1024_vm2, %v555_v31  ;;  %9631 = vmatprep.mubr.msk.f32.mxu0 %vm10853_vm0, %v10854_v11 }
  0xf6   :  { %v624_v37 = vpop.f32.mrb[6].mxu0  ;;  %9634 = vmatprep.subr.mxu0 %v10854_v11 }
  0xf7   :  { %v625_v39 = vadd.f32 %v8719_v34, %v624_v37  ;;  %v694_v40 = vpop.f32.mrb[6].mxu1  ;;  %v9568_v41 = vpop.f32.mrb[7].mxu0 }
  0xf8   :  { %v695_v44 = vadd.f32 %v8720_v35, %v694_v40  ;;  %9632 = vmatmul.mubr.msk.f32.vlgmr.msra.gmra.mrb[14].mxu0 %vm1024_vm2, %v226_v36  ;;  %v9579_v45 = vpop.f32.mrb[7].mxu1 }
  0xf9   :  { %9635 = vmatpush3.xpose.msk.msra.mxu0 %vm1024_vm2, %v625_v39  ;;  %9636 = vmatprep.mubr.msk.f32.mxu0 %vm10853_vm0, %v10854_v11 }
  0xfa   :  { %9640 = vmatpush3.xpose.msk.msra.mxu1 %vm1024_vm2, %v695_v44  ;;  %9644 = vmatprep.subr.mxu0 %v10854_v11  ;;  %v8747_v44 = vld [vmem:[%s12642_s4 + $0xa] ss:$0 sm:$0xff] }
  0xfb   :  { %9649 = vmatprep.subr.mxu1 %v10854_v11 }
  0xfc   :  { %9637 = vmatmul.mubr.msk.f32.vlgmr.msra.gmra.mrb[16].mxu0 %vm1024_vm2, %v296_v46 }
  0xfd   :  { %9642 = vmatmul.mubr.msk.f32.vlgmr.msra.gmra.mrb[12].mxu1 %vm1024_vm2, %v366_v47  ;;  %9646 = vmatprep.mubr.msk.f32.mxu0 %vm10853_vm0, %v10854_v11 }
  0xfe   :  { %9651 = vmatprep.mubr.msk.f32.mxu1 %vm10853_vm0, %v10854_v11  ;;  %v810_v49 = vpop.f32.mrb[8].mxu0 }
  0xff   :  { %v811_v50 = vadd.f32 %v8745_v48, %v810_v49  ;;  %v9590_v51 = vpop.f32.mrb[9].mxu0  ;;  %v8748_v49 = vld [vmem:[%s12642_s4 + $0xb] ss:$0 sm:$0xff] }
 0x100   :  { %v880_v53 = vpop.f32.mrb[8].mxu1 }
 0x101   :  { %9645 = vmatpush3.msra.mxu0 %v811_v50  ;;  %v881_v54 = vadd.f32 %v8746_v52, %v880_v53  ;;  %v9601_v56 = vpop.f32.mrb[9].mxu1 }
 0x102   :  { %9654 = vmatprep.subr.mxu0 %v10854_v11 }
 0x103   :  { %9650 = vmatpush3.msra.mxu1 %v881_v54 }
 0x104   :  { %9659 = vmatprep.subr.mxu1 %v10854_v11 }
 0x106   :  { %v11196_v55 = vpop.f32.mrb[10].mxu0 }
 0x107   :  { %v9612_v57 = vpop.f32.mrb[11].mxu0  ;;  %v951_v48 = vadd.f32 %v8747_v44, %v11196_v55  ;;  %v2091_v44 = vld [vmem:[%s12646_s8 + $0x8] sm:$0xff] }
 0x108   :  { %v11199_v58 = vpop.f32.mrb[10].mxu1  ;;  %v1673_v57 = vld [vmem:[%s12643_s5] sm:$0xff] }
 0x109   :  { %v9623_v59 = vpop.f32.mrb[11].mxu1  ;;  %v1021_v52 = vadd.f32 %v8748_v49, %v11199_v58  ;;  %v1674_v58 = vld [vmem:[%s12643_s5 + $0x8] sm:$0xff]  ;;  %v2094_v49 = vld [vmem:[%s12646_s8 + $0x20] sm:$0xff] }
 0x10a   :  { %v1675_v59 = vld [vmem:[%s12643_s5 + $0x10] sm:$0xff] }
 0x1c7   :  { %v1097_v60 = vpop.f32.mrb[12].mxu0 }
 0x1c8   :  { %v1329_v62 = vmul.f32 0.35355338, %v1097_v60  ;;  %v9628_v63 = vpop.f32.mrb[13].mxu0 }
 0x1c9   :  { %v1676_v63 = vld [vmem:[%s12643_s5 + $0x18] sm:$0xff] }
 0x1ca   :  { %v1333_v0 = vadd.f32 %v1329_v62, %v11204_v61 }
 0x1cb   :  { %v1173_v1 = vpop.f32.mrb[14].mxu0 }
 0x1cc   :  { %v1330_v2 = vmul.f32 0.35355338, %v1173_v1  ;;  %v9633_v4 = vpop.f32.mrb[15].mxu0  ;;  %v1337_v5 = vsel %vm1024_vm2, %v1333_v0, -inf }
 0x1cd   :  { %1338 = vmax.xlane.f32.xlu0 %v1337_v5 }
 0x1ce   :  { %v1334_v6 = vadd.f32 %v1330_v2, %v11204_v61 }
 0x1cf   :  { %v1249_v7 = vpop.f32.mrb[16].mxu0 }
 0x1d0   :  { %v1331_v8 = vmul.f32 0.35355338, %v1249_v7  ;;  %v1325_v9 = vpop.f32.mrb[12].mxu1  ;;  %v9638_v10 = vpop.f32.mrb[17].mxu0  ;;  %v1340_v12 = vsel %vm1024_vm2, %v1334_v6, -inf }
 0x1d1   :  { %v1332_v13 = vmul.f32 0.35355338, %v1325_v9  ;;  %v9643_v14 = vpop.f32.mrb[13].mxu1  ;;  %1341 = vmax.xlane.f32.xlu0 %v1340_v12 }
 0x1d2   :  { %v1335_v15 = vadd.f32 %v1331_v8, %v11204_v61  ;;  %v1976_v8 = vlaneseq }
 0x1d3   :  { %v1336_v17 = vadd.f32 %v1332_v13, %v11204_v61 }
 0x1d4   :  { %v1343_v16 = vsel %vm1024_vm2, %v1335_v15, -inf  ;;  %v11268_v12 = vshrl.u32 %v1976_v8, 7 }
 0x1d5   :  { %1344 = vmax.xlane.f32.xlu1 %v1343_v16  ;;  %v1346_v19 = vsel %vm1024_vm2, %v1336_v17, -inf }
 0x1d9   :  { %1347 = vmax.xlane.f32.xlu1 %v1346_v19  ;;  %v11273_v19 = vsub.s32 0, %v11268_v12 }
 0x25a   :  { %v1339_v20 = vpop.xlane.xlu0 %1338 }
 0x25b   :  { %v1349_v21 = vsub.f32 %v1333_v0, %v1339_v20 }
 0x25d   :  { %v1353_v22 = vmul.f32 1.442695, %v1349_v21 }
 0x25e   :  { %v1342_v23 = vpop.xlane.xlu0 %1341 }
 0x25f   :  { %10746 = vpow2.f32 %v1353_v22  ;;  %v1350_v24 = vsub.f32 %v1334_v6, %v1342_v23  ;;  %v11279_v22 = vld [vmem:[%s12647_s9] sm:$0x3f] }
 0x261   :  { %v1355_v25 = vmul.f32 1.442695, %v1350_v24 }
 0x262   :  { %v1345_v26 = vpop.xlane.xlu1 %1344 }
 0x263   :  { %10748 = vpow2.f32 %v1355_v25  ;;  %v1351_v27 = vsub.f32 %v1335_v15, %v1345_v26  ;;  %v1979_v25 = vrot.slane %v11279_v22, %v11273_v19 }
 0x265   :  { %v1357_v28 = vmul.f32 1.442695, %v1351_v27 }
 0x266   :  { %v1348_v29 = vpop.xlane.xlu1 %1347 }
 0x267   :  { %10750 = vpow2.f32 %v1357_v28  ;;  %v1352_v30 = vsub.f32 %v1336_v17, %v1348_v29 }
 0x269   :  { %v10747_v31 = vpop.eup %10746  ;;  %v1359_v32 = vmul.f32 1.442695, %v1352_v30 }
 0x26a   :  { %v1361_v33 = vsel %vm1024_vm2, %v10747_v31, 0.0 }
 0x26b   :  { %10752 = vpow2.f32 %v1359_v32  ;;  %1362 = vadd.xlane.f32.xlu0 %v1361_v33 }
 0x26d   :  { %v10749_v34 = vpop.eup %10748 }
 0x26e   :  { %v1364_v35 = vsel %vm1024_vm2, %v10749_v34, 0.0 }
 0x26f   :  { %1365 = vadd.xlane.f32.xlu1 %v1364_v35 }
 0x271   :  { %v10751_v36 = vpop.eup %10750 }
 0x272   :  { %v1367_v37 = vsel %vm1024_vm2, %v10751_v36, 0.0 }
 0x273   :  { %1368 = vadd.xlane.f32.xlu0 %v1367_v37  ;;  %v2006_v37 = vld [vmem:[%s12644_s6] sm:$0xff] }
 0x275   :  { %v10753_v38 = vpop.eup %10752 }
 0x276   :  { %v1370_v39 = vsel %vm1024_vm2, %v10753_v38, 0.0 }
 0x277   :  { %1371 = vadd.xlane.f32.xlu1 %v1370_v39 }
 0x2f8   :  { %v1363_v40 = vpop.xlane.xlu0 %1362 }
 0x2f9   :  { %10754 = vrcp.f32 %v1363_v40  ;;  %v2009_v40 = vld [vmem:[%s12644_s6 + $0x18] sm:$0xff] }
 0x2fc   :  { %v1366_v41 = vpop.xlane.xlu1 %1365 }
 0x2fd   :  { %10756 = vrcp.f32 %v1366_v41 }
 0x300   :  { %v1369_v42 = vpop.xlane.xlu0 %1368 }
 0x301   :  { %10758 = vrcp.f32 %v1369_v42  ;;  %v2090_v42 = vld [vmem:[%s12646_s8] sm:$0xff] }
 0x303   :  { %v10755_v45 = vpop.eup %10754 }
 0x304   :  { %v1377_v46 = vmul.f32 %v10755_v45, %v10747_v31  ;;  %v1372_v47 = vpop.xlane.xlu1 %1371  ;;  %v2092_v45 = vld [vmem:[%s12646_s8 + $0x10] sm:$0xff] }
 0x305   :  { %10760 = vrcp.f32 %v1372_v47  ;;  %v2093_v47 = vld [vmem:[%s12646_s8 + $0x18] sm:$0xff] }
 0x306   :  { %9647 = vmatmul.mubr.msk.f32.vlgmr.msra.gmra.mrb[18].mxu0 %vm1024_vm2, %v1377_v46  ;;  %v10459_v46 = vpack.c.bf16 %v2091_v44, %v2090_v42 }
 0x307   :  { %v10757_v50 = vpop.eup %10756  ;;  %9655 = vmatpush3.msra.mxu0 %v951_v48  ;;  %9656 = vmatprep.mubr.msk.f32.mxu0 %vm10853_vm0, %v10854_v11  ;;  %v10462_v48 = vpack.c.bf16 %v2093_v47, %v2092_v45  ;;  %v8778_v45 = vld [vmem:[%s12641_s3 + $0x1a0] sm:$0xff] }
 0x308   :  { %v1378_v51 = vmul.f32 %v10757_v50, %v10749_v34  ;;  %9664 = vmatprep.subr.mxu0 %v10854_v11  ;;  %v2095_v50 = vld [vmem:[%s12646_s8 + $0x28] sm:$0xff] }
 0x30a   :  { %9652 = vmatmul.mubr.msk.f32.vlgmr.msra.gmra.mrb[14].mxu1 %vm1024_vm2, %v1378_v51  ;;  %v10465_v51 = vpack.c.bf16 %v2095_v50, %v2094_v49  ;;  %v8803_v49 = vld [vmem:[%s12641_s3 + $0x208] sm:$0xff] }
 0x30b   :  { %v10759_v53 = vpop.eup %10758  ;;  %9660 = vmatpush3.msra.mxu1 %v1021_v52  ;;  %9661 = vmatprep.mubr.msk.f32.mxu1 %vm10853_vm0, %v10854_v11 }
 0x30c   :  { %v1379_v54 = vmul.f32 %v10759_v53, %v10751_v36  ;;  %9669 = vmatprep.subr.mxu1 %v10854_v11 }
 0x30e   :  { %9657 = vmatmul.mubr.msk.f32.vlgmr.msra.gmra.mrb[20].mxu0 %vm1024_vm2, %v1379_v54 }
 0x30f   :  { %v10761_v55 = vpop.eup %10760  ;;  %9666 = vmatprep.mubr.msk.f32.mxu0 %vm10853_vm0, %v10854_v11  ;;  %9665 = vmatpush3.msra.mxu0 %v1673_v57 }
 0x310   :  { %v1380_v56 = vmul.f32 %v10761_v55, %v10753_v38  ;;  %9674 = vmatprep.subr.mxu0 %v10854_v11  ;;  %v2007_v38 = vld [vmem:[%s12644_s6 + $0x8] sm:$0xff]  ;;  %v11323_v55 = vsub.s32 2, %v11268_v12 }
 0x311   :  { %v10453_v39 = vpack.c.bf16 %v2007_v38, %v2006_v37 }
 0x312   :  { %9662 = vmatmul.mubr.msk.f32.vlgmr.msra.gmra.mrb[16].mxu1 %vm1024_vm2, %v1380_v56  ;;  %v11326_v56 = vsub.s32 3, %v11268_v12  ;;  %v1999_v57 = vrot.slane %v11279_v22, %v11323_v55 }
 0x313   :  { %9671 = vmatprep.mubr.msk.f32.mxu1 %vm10853_vm0, %v10854_v11  ;;  %9670 = vmatpush3.msra.mxu1 %v1674_v58 }
 0x314   :  { %9679 = vmatprep.subr.mxu1 %v10854_v11 }
 0x3d9   :  { %v1450_v60 = vpop.f32.mrb[18].mxu0 }
 0x3da   :  { %v9648_v62 = vpop.f32.mrb[19].mxu0  ;;  %9667 = vmatmul.mubr.msk.f32.vlgmr.msra.gmra.mrb[22].mxu0 %vm1024_vm2, %v1450_v60  ;;  %v2004_v60 = vrot.slane %v11279_v22, %v11326_v56 }
 0x3db   :  { %9675 = vmatpush3.msra.mxu0 %v1675_v59  ;;  %9676 = vmatprep.mubr.msk.f32.mxu0 %vm10853_vm0, %v10854_v11 }
 0x3dc   :  { %10452 = vmatprep.subr.bf16.mxu0 %v10852_v3 }
 0x3dd   :  { %v1523_v0 = vpop.f32.mrb[14].mxu1 }
 0x3de   :  { %v9653_v1 = vpop.f32.mrb[15].mxu1  ;;  %9672 = vmatmul.mubr.msk.f32.vlgmr.msra.gmra.mrb[18].mxu1 %vm1024_vm2, %v1523_v0  ;;  %v2096_v0 = vld [vmem:[%s12646_s8 + $0x30] sm:$0xff] }
 0x3df   :  { %9680 = vmatpush3.msra.mxu1 %v1676_v63  ;;  %9681 = vmatprep.mubr.msk.f32.mxu1 %vm10853_vm0, %v10854_v11  ;;  %v2097_v1 = vld [vmem:[%s12646_s8 + $0x38] sm:$0xff] }
 0x3e0   :  { %10458 = vmatprep.subr.bf16.mxu1 %v10852_v3 }
 0x3e1   :  { %v1596_v2 = vpop.f32.mrb[20].mxu0 }
 0x3e2   :  { %v9658_v4 = vpop.f32.mrb[21].mxu0  ;;  %9677 = vmatmul.mubr.msk.f32.vlgmr.msra.gmra.mrb[24].mxu0 %vm1024_vm2, %v1596_v2  ;;  %v10468_v2 = vpack.c.bf16 %v2097_v1, %v2096_v0  ;;  %v8810_v0 = vld [vmem:[%s12641_s3 + $0x240] sm:$0xff]  ;;  %v8811_v1 = vld [vmem:[%s12641_s3 + $0x248] sm:$0xff] }
 0x3e3   :  { %9692 = vmatprep.mubr.msk.f32.mxu0 %vm10853_vm0, %v10854_v11  ;;  %10454 = vmatpush3.bf16.msra.mxu0 %v10453_v39  ;;  %v8769_v4 = vld [vmem:[%s12645_s7] ss:$0 sm:$0xff] }
 0x3e4   :  { %10455 = vmatprep.subr.bf16.mxu0 %v10852_v3 }
 0x3e5   :  { %v1669_v5 = vpop.f32.mrb[16].mxu1 }
 0x3e6   :  { %v9663_v6 = vpop.f32.mrb[17].mxu1  ;;  %9682 = vmatmul.mubr.msk.f32.vlgmr.msra.gmra.mrb[20].mxu1 %vm1024_vm2, %v1669_v5 }
 0x3e7   :  { %9711 = vmatprep.mubr.msk.f32.mxu1 %vm10853_vm0, %v10854_v11  ;;  %10460 = vmatpush3.bf16.msra.mxu1 %v10459_v46 }
 0x3e8   :  { %10461 = vmatprep.subr.bf16.mxu1 %v10852_v3 }
 0x3eb   :  { %10463 = vmatpush3.bf16.msra.mxu1 %v10462_v48  ;;  %v8779_v48 = vld [vmem:[%s12641_s3 + $0x1a8] sm:$0xff] }
 0x3ec   :  { %10464 = vmatprep.subr.bf16.mxu1 %v10852_v3 }
 0x3ef   :  { %10466 = vmatpush3.bf16.msra.mxu1 %v10465_v51  ;;  %v10477_v51 = vpack.c.bf16 %v8779_v48, %v8778_v45  ;;  %v8840_v45 = vld [vmem:[%s12641_s3 + $0x2d0] sm:$0xff] }
 0x3f0   :  { %10467 = vmatprep.subr.bf16.mxu1 %v10852_v3 }
 0x3f3   :  { %10469 = vmatpush3.bf16.msra.mxu1 %v10468_v2 }
 0x3f4   :  { %10482 = vmatprep.subr.bf16.mxu1 %v10852_v3 }
 0x4ad   :  { %v1746_v7 = vpop.f32.mrb[22].mxu0 }
 0x4ae   :  { %v9668_v9 = vpop.f32.mrb[23].mxu0  ;;  %v1969_v13 = vsel %vm85_vm1, %v1746_v7, 0.0 }
 0x4af   :  { %v11349_v9 = vsub.s32 1, %v11268_v12 }
 0x4b1   :  { %v1819_v10 = vpop.f32.mrb[18].mxu1 }
 0x4b2   :  { %v1970_v14 = vsel %vm85_vm1, %v1819_v10, 0.0  ;;  %v9673_v15 = vpop.f32.mrb[19].mxu1  ;;  %v2101_v10 = vrot.slane %v11279_v22, %v11349_v9 }
 0x4b3   :  { %v1971_v16 = vadd.f32 %v1970_v14, %v1969_v13 }
 0x4b5   :  { %v1892_v17 = vpop.f32.mrb[24].mxu0 }
 0x4b6   :  { %v1972_v20 = vsel %vm85_vm1, %v1892_v17, 0.0  ;;  %v9678_v21 = vpop.f32.mrb[25].mxu0 }
 0x4b7   :  { %v1973_v23 = vadd.f32 %v1972_v20, %v1971_v16 }
 0x4b9   :  { %v1965_v24 = vpop.f32.mrb[20].mxu1 }
 0x4ba   :  { %v1974_v26 = vsel %vm85_vm1, %v1965_v24, 0.0  ;;  %v9683_v27 = vpop.f32.mrb[21].mxu1 }
 0x4bb   :  { %v1975_v28 = vadd.f32 %v1974_v26, %v1973_v23  ;;  %v8774_v26 = vld [vmem:[%s12641_s3 + $0x180] sm:$0xff]  ;;  %v8775_v27 = vld [vmem:[%s12641_s3 + $0x188] sm:$0xff] }
 0x4bd   :  { %v1980_v29 = vadd.f32 %v1979_v25, %v1975_v28  ;;  %v8782_v28 = vld [vmem:[%s12641_s3 + $0x1c0] sm:$0xff] }
 0x4bf   :  { %v1981_v30 = vadd.f32 %v1980_v29, %v10960_v18  ;;  %v2008_v18 = vld [vmem:[%s12644_s6 + $0x10] sm:$0xff]  ;;  %v10471_v29 = vpack.c.bf16 %v8775_v27, %v8774_v26  ;;  %v8833_v26 = vld [vmem:[%s12641_s3 + $0x298] sm:$0xff] }
 0x4c0   :  { %v10456_v41 = vpack.c.bf16 %v2009_v40, %v2008_v18  ;;  %v11384_v40 = vsub.s32 4, %v11268_v12 }
 0x4c1   :  { %v1982_v31 = vsel %vm85_vm1, %v1981_v30, 0.0 }
 0x4c2   :  { %1983 = vadd.xlane.f32.xlu0 %v1982_v31  ;;  %10457 = vmatpush3.bf16.msra.mxu0 %v10456_v41  ;;  %v11387_v41 = vsub.s32 5, %v11268_v12  ;;  %v2193_v42 = vrot.slane %v11279_v22, %v11384_v40  ;;  %v8802_v12 = vld [vmem:[%s12641_s3 + $0x200] sm:$0xff] }
 0x4c3   :  { %10470 = vmatprep.subr.bf16.mxu0 %v10852_v3 }
 0x4c4   :  { %v2198_v47 = vrot.slane %v11279_v22, %v11387_v41 }
 0x54f   :  { %v1984_v32 = vpop.xlane.xlu0 %1983 }
 0x550   :  { %v1986_v33 = vmul.f32 0.03125, %v1984_v32  ;;  %v8776_v32 = vld [vmem:[%s12641_s3 + $0x190] sm:$0xff] }
 0x552   :  { %v1987_v34 = vsub.f32 %v1981_v30, %v1986_v33  ;;  %v8783_v30 = vld [vmem:[%s12641_s3 + $0x1c8] sm:$0xff]  ;;  %v8777_v33 = vld [vmem:[%s12641_s3 + $0x198] sm:$0xff] }
 0x553   :  { %v10483_v31 = vpack.c.bf16 %v8783_v30, %v8782_v28  ;;  %v8814_v28 = vld [vmem:[%s12641_s3 + $0x260] sm:$0xff] }
 0x554   :  { %v1988_v35 = vmul.f32 %v1987_v34, %v1987_v34 }
 0x556   :  { %v1989_v36 = vsel %vm85_vm1, %v1988_v35, 0.0  ;;  %v10474_v35 = vpack.c.bf16 %v8777_v33, %v8776_v32  ;;  %v8839_v32 = vld [vmem:[%s12641_s3 + $0x2c8] sm:$0xff] }
 0x557   :  { %1990 = vadd.xlane.f32.xlu1 %v1989_v36  ;;  %v8785_v36 = vld [vmem:[%s12641_s3 + $0x1d8] sm:$0xff] }
 0x5e4   :  { %v1991_v52 = vpop.xlane.xlu1 %1990 }
 0x5e5   :  { %v1992_v53 = vmul.f32 0.03125, %v1991_v52  ;;  %v10495_v52 = vpack.c.bf16 %v8803_v49, %v8802_v12  ;;  %v8842_v12 = vld [vmem:[%s12641_s3 + $0x2e0] sm:$0xff]  ;;  %v8843_v49 = vld [vmem:[%s12641_s3 + $0x2e8] sm:$0xff] }
 0x5e7   :  { %v1993_v54 = vadd.f32 1e-05, %v1992_v53  ;;  %v8780_v53 = vld [vmem:[%s12641_s3 + $0x1b0] sm:$0xff] }
 0x5e9   :  { %10762 = vrsqrt.f32 %v1993_v54  ;;  %v8781_v54 = vld [vmem:[%s12641_s3 + $0x1b8] sm:$0xff] }
 0x5f3   :  { %v10763_v58 = vpop.eup %10762 }
 0x5f4   :  { %v1995_v59 = vmul.f32 %v10763_v58, %v1987_v34  ;;  %v8784_v34 = vld [vmem:[%s12641_s3 + $0x1d0] sm:$0xff]  ;;  %v8805_v58 = vld [vmem:[%s12641_s3 + $0x218] sm:$0xff] }
 0x5f5   :  { %v10486_v37 = vpack.c.bf16 %v8785_v36, %v8784_v34  ;;  %v8816_v34 = vld [vmem:[%s12641_s3 + $0x270] sm:$0xff] }
 0x5f6   :  { %v2000_v62 = vmul.f32 %v1999_v57, %v1995_v59  ;;  %v8804_v57 = vld [vmem:[%s12641_s3 + $0x210] sm:$0xff]  ;;  %v10480_v59 = vpack.c.bf16 %v8781_v54, %v8780_v53 }
 0x5f8   :  { %v2005_v63 = vadd.f32 %v2004_v60, %v2000_v62  ;;  %v10498_v60 = vpack.c.bf16 %v8805_v58, %v8804_v57  ;;  %v8786_v62 = vld [vmem:[%s12641_s3 + $0x1e0] sm:$0xff] }
 0x5fa   :  { %9693 = vmatmul.mubr.msk.f32.vlgmr.msra.gmra.mrb[26].mxu0 %vm85_vm1, %v2005_v63 }
 0x5fb   :  { %9722 = vmatprep.mubr.msk.f32.mxu0 %vm10853_vm0, %v10854_v11  ;;  %10472 = vmatpush3.bf16.msra.mxu0 %v10471_v29  ;;  %v8815_v29 = vld [vmem:[%s12641_s3 + $0x268] sm:$0xff] }
 0x5fc   :  { %10473 = vmatprep.subr.bf16.mxu0 %v10852_v3  ;;  %v10513_v33 = vpack.c.bf16 %v8815_v29, %v8814_v28  ;;  %v8825_v29 = vld [vmem:[%s12642_s4 + $0x13] ss:$0 sm:$0xff] }
 0x5ff   :  { %10475 = vmatpush3.bf16.msra.mxu0 %v10474_v35  ;;  %v8817_v35 = vld [vmem:[%s12641_s3 + $0x278] sm:$0xff] }
 0x600   :  { %10476 = vmatprep.subr.bf16.mxu0 %v10852_v3 }
 0x6cd   :  { %v2085_v5 = vpop.f32.mrb[26].mxu0 }
 0x6ce   :  { %v2086_v6 = vadd.f32 %v8769_v4, %v2085_v5  ;;  %v9694_v7 = vpop.f32.mrb[27].mxu0  ;;  %v10507_v4 = vpack.c.bf16 %v8811_v1, %v8810_v0  ;;  %v8788_v5 = vld [vmem:[%s12641_s3 + $0x1f0] sm:$0xff]  ;;  %v8794_v0 = vld [vmem:[%s12642_s4 + $0xc] ss:$0 sm:$0xff] }
 0x6cf   :  { %v8812_v7 = vld [vmem:[%s12641_s3 + $0x250] sm:$0xff] }
 0x6d0   :  { %v2089_v8 = vmax.f32 %v2086_v6, 0.0  ;;  %v8789_v6 = vld [vmem:[%s12641_s3 + $0x1f8] sm:$0xff] }
 0x6d2   :  { %9712 = vmatmul.mubr.msk.f32.vlgmr.msra.gmra.mrb[22].mxu1 %vm2102_vm3, %v2089_v8  ;;  %v8813_v8 = vld [vmem:[%s12641_s3 + $0x258] sm:$0xff] }
 0x6d3   :  { %9744 = vmatprep.mubr.msk.f32.mxu1 %vm10853_vm0, %v10854_v11  ;;  %10484 = vmatpush3.bf16.msra.mxu1 %v10483_v31  ;;  %v8838_v31 = vld [vmem:[%s12641_s3 + $0x2c0] sm:$0xff] }
 0x6d4   :  { %10485 = vmatprep.subr.bf16.mxu1 %v10852_v3  ;;  %v10531_v36 = vpack.c.bf16 %v8839_v32, %v8838_v31  ;;  %v8797_v31 = vld [vmem:[%s12642_s4 + $0xf] ss:$0 sm:$0xff] }
 0x6d7   :  { %10487 = vmatpush3.bf16.msra.mxu1 %v10486_v37  ;;  %v10516_v37 = vpack.c.bf16 %v8817_v35, %v8816_v34 }
 0x6d8   :  { %10494 = vmatprep.subr.bf16.mxu1 %v10852_v3 }
 0x7a5   :  { %v2172_v13 = vpop.f32.mrb[22].mxu1 }
 0x7a6   :  { %v2173_v14 = vadd.f32 %v2172_v13, %v2101_v10  ;;  %v9713_v15 = vpop.f32.mrb[23].mxu1  ;;  %v10492_v10 = vpack.c.bf16 %v8789_v6, %v8788_v5  ;;  %v10510_v13 = vpack.c.bf16 %v8813_v8, %v8812_v7  ;;  %v8824_v5 = vld [vmem:[%s12642_s4 + $0x12] ss:$0 sm:$0xff]  ;;  %v8796_v8 = vld [vmem:[%s12642_s4 + $0xe] ss:$0 sm:$0xff] }
 0x7a7   :  { %v8807_v15 = vld [vmem:[%s12641_s3 + $0x228] sm:$0xff] }
 0x7a8   :  { %v2176_v16 = vadd.f32 %v2173_v14, %v2005_v63  ;;  %v8787_v63 = vld [vmem:[%s12641_s3 + $0x1e8] sm:$0xff]  ;;  %v8806_v14 = vld [vmem:[%s12641_s3 + $0x220] sm:$0xff] }
 0x7a9   :  { %v10489_v2 = vpack.c.bf16 %v8787_v63, %v8786_v62 }
 0x7aa   :  { %v2177_v17 = vsel %vm85_vm1, %v2176_v16, 0.0 }
 0x7ab   :  { %2178 = vadd.xlane.f32.xlu0 %v2177_v17  ;;  %v8831_v17 = vld [vmem:[%s12641_s3 + $0x288] sm:$0xff] }
 0x838   :  { %v2179_v20 = vpop.xlane.xlu0 %2178 }
 0x839   :  { %v2180_v21 = vmul.f32 0.03125, %v2179_v20  ;;  %v10501_v20 = vpack.c.bf16 %v8807_v15, %v8806_v14 }
 0x83b   :  { %v2181_v23 = vsub.f32 %v2176_v16, %v2180_v21  ;;  %v8830_v16 = vld [vmem:[%s12641_s3 + $0x280] sm:$0xff]  ;;  %v8808_v21 = vld [vmem:[%s12641_s3 + $0x230] sm:$0xff] }
 0x83d   :  { %v2182_v24 = vmul.f32 %v2181_v23, %v2181_v23 }
 0x83f   :  { %v2183_v25 = vsel %vm85_vm1, %v2182_v24, 0.0  ;;  %v10519_v24 = vpack.c.bf16 %v8831_v17, %v8830_v16  ;;  %v8823_v16 = vld [vmem:[%s12642_s4 + $0x11] ss:$0 sm:$0xff] }
 0x840   :  { %2184 = vadd.xlane.f32.xlu1 %v2183_v25  ;;  %v8832_v25 = vld [vmem:[%s12641_s3 + $0x290] sm:$0xff] }
 0x841   :  { %v10522_v30 = vpack.c.bf16 %v8833_v26, %v8832_v25 }
 0x8cd   :  { %v2185_v38 = vpop.xlane.xlu1 %2184 }
 0x8ce   :  { %v2186_v39 = vmul.f32 0.03125, %v2185_v38  ;;  %v8834_v38 = vld [vmem:[%s12641_s3 + $0x2a0] sm:$0xff] }
 0x8d0   :  { %v2187_v18 = vadd.f32 1e-05, %v2186_v39  ;;  %v8835_v39 = vld [vmem:[%s12641_s3 + $0x2a8] sm:$0xff] }
 0x8d2   :  { %10764 = vrsqrt.f32 %v2187_v18  ;;  %v10525_v18 = vpack.c.bf16 %v8835_v39, %v8834_v38 }
 0x8dc   :  { %v10765_v44 = vpop.eup %10764 }
 0x8dd   :  { %v2189_v46 = vmul.f32 %v10765_v44, %v2181_v23  ;;  %v8809_v23 = vld [vmem:[%s12641_s3 + $0x238] sm:$0xff] }
 0x8de   :  { %v10504_v27 = vpack.c.bf16 %v8809_v23, %v8808_v21  ;;  %v8837_v44 = vld [vmem:[%s12641_s3 + $0x2b8] sm:$0xff]  ;;  %v8795_v21 = vld [vmem:[%s12642_s4 + $0xd] ss:$0 sm:$0xff] }
 0x8df   :  { %v2194_v50 = vmul.f32 %v2193_v42, %v2189_v46  ;;  %v8836_v42 = vld [vmem:[%s12641_s3 + $0x2b0] sm:$0xff] }
 0x8e0   :  { %v10528_v46 = vpack.c.bf16 %v8837_v44, %v8836_v42 }
 0x8e1   :  { %v11408_v22 = vadd.f32 %v2198_v47, %v2194_v50  ;;  %v8841_v47 = vld [vmem:[%s12641_s3 + $0x2d8] sm:$0xff]  ;;  %v10537_v50 = vpack.c.bf16 %v8843_v49, %v8842_v12 }
 0x8e2   :  { %v10534_v48 = vpack.c.bf16 %v8841_v47, %v8840_v45 }
 0x8e3   :  { %9723 = vmatmul.mubr.msk.f32.vlgmr.msra.gmra.mrb[28].mxu0 %vm85_vm1, %v11408_v22  ;;  %9745 = vmatmul.mubr.msk.f32.vlgmr.msra.gmra.mrb[24].mxu1 %vm85_vm1, %v11408_v22 }
 0x8e4   :  { %10478 = vmatpush3.bf16.msra.mxu0 %v10477_v51  ;;  %10496 = vmatpush3.bf16.msra.mxu1 %v10495_v52  ;;  %v8844_v51 = vld [vmem:[%s12641_s3 + $0x2f0] sm:$0xff]  ;;  %v8845_v52 = vld [vmem:[%s12641_s3 + $0x2f8] sm:$0xff] }
 0x8e5   :  { %10479 = vmatprep.subr.bf16.mxu0 %v10852_v3  ;;  %10497 = vmatprep.subr.bf16.mxu1 %v10852_v3  ;;  %v10540_v53 = vpack.c.bf16 %v8845_v52, %v8844_v51 }
 0x8e6   :  { %9733 = vmatprep.mubr.msk.f32.mxu0 %vm10853_vm0, %v10854_v11  ;;  %9766 = vmatprep.mubr.msk.f32.mxu1 %vm10853_vm0, %v10854_v11 }
 0x8e8   :  { %10481 = vmatpush3.bf16.msra.mxu0 %v10480_v59  ;;  %10499 = vmatpush3.bf16.msra.mxu1 %v10498_v60  ;;  %v8822_v60 = vld [vmem:[%s12642_s4 + $0x10] ss:$0 sm:$0xff] }
 0x8e9   :  { %10488 = vmatprep.subr.bf16.mxu0 %v10852_v3  ;;  %10506 = vmatprep.subr.bf16.mxu1 %v10852_v3 }
 0x8eb   :  { %9734 = vmatmul.mubr.msk.f32.vlgmr.msra.gmra.mrb[30].mxu0 %vm85_vm1, %v11408_v22  ;;  %9767 = vmatmul.mubr.msk.f32.vlgmr.msra.gmra.mrb[26].mxu1 %vm85_vm1, %v11037_v43 }
 0x8ec   :  { %10490 = vmatpush3.bf16.msra.mxu0 %v10489_v2  ;;  %10508 = vmatpush3.bf16.msra.mxu1 %v10507_v4 }
 0x8ed   :  { %10491 = vmatprep.subr.bf16.mxu0 %v10852_v3  ;;  %10509 = vmatprep.subr.bf16.mxu1 %v10852_v3 }
 0x8ee   :  { %9755 = vmatprep.mubr.msk.f32.mxu0 %vm10853_vm0, %v10854_v11  ;;  %9788 = vmatprep.mubr.msk.f32.mxu1 %vm10853_vm0, %v10854_v11 }
 0x8f0   :  { %10493 = vmatpush3.bf16.msra.mxu0 %v10492_v10  ;;  %10511 = vmatpush3.bf16.msra.mxu1 %v10510_v13 }
 0x8f1   :  { %10500 = vmatprep.subr.bf16.mxu0 %v10852_v3  ;;  %10518 = vmatprep.subr.bf16.mxu1 %v10852_v3 }
 0x8f3   :  { %9756 = vmatmul.mubr.msk.f32.vlgmr.msra.gmra.mrb[32].mxu0 %vm85_vm1, %v11408_v22  ;;  %9789 = vmatmul.mubr.msk.f32.vlgmr.msra.gmra.mrb[28].mxu1 %vm85_vm1, %v11037_v43 }
 0x8f4   :  { %10502 = vmatpush3.bf16.msra.mxu0 %v10501_v20  ;;  %9777 = vmatprep.mubr.msk.f32.mxu0 %vm10853_vm0, %v10854_v11  ;;  %v8850_v20 = vld [vmem:[%s12642_s4 + $0x14] ss:$0 sm:$0xff] }
 0x8f5   :  { %10503 = vmatprep.subr.bf16.mxu0 %v10852_v3  ;;  %10520 = vmatpush3.bf16.msra.mxu1 %v10519_v24 }
 0x8f6   :  { %10521 = vmatprep.subr.bf16.mxu1 %v10852_v3  ;;  %9810 = vmatprep.mubr.msk.f32.mxu1 %vm10853_vm0, %v10854_v11 }
 0x8f8   :  { %10505 = vmatpush3.bf16.msra.mxu0 %v10504_v27 }
 0x8f9   :  { %10512 = vmatprep.subr.bf16.mxu0 %v10852_v3  ;;  %10523 = vmatpush3.bf16.msra.mxu1 %v10522_v30 }
 0x8fa   :  { %10530 = vmatprep.subr.bf16.mxu1 %v10852_v3 }
 0x8fb   :  { %9778 = vmatmul.mubr.msk.f32.vlgmr.msra.gmra.mrb[34].mxu0 %vm85_vm1, %v11037_v43 }
 0x8fc   :  { %10514 = vmatpush3.bf16.msra.mxu0 %v10513_v33  ;;  %9799 = vmatprep.mubr.msk.f32.mxu0 %vm10853_vm0, %v10854_v11 }
 0x8fd   :  { %10515 = vmatprep.subr.bf16.mxu0 %v10852_v3  ;;  %9811 = vmatmul.mubr.msk.f32.vlgmr.msra.gmra.mrb[30].mxu1 %vm85_vm1, %v11037_v43 }
 0x8fe   :  { %10532 = vmatpush3.bf16.msra.mxu1 %v10531_v36  ;;  %9832 = vmatprep.mubr.msk.f32.mxu1 %vm10853_vm0, %v10854_v11 }
 0x8ff   :  { %10533 = vmatprep.subr.bf16.mxu1 %v10852_v3 }
 0x900   :  { %10517 = vmatpush3.bf16.msra.mxu0 %v10516_v37  ;;  %v8851_v37 = vld [vmem:[%s12642_s4 + $0x15] ss:$0 sm:$0xff] }
 0x901   :  { %10524 = vmatprep.subr.bf16.mxu0 %v10852_v3 }
 0x902   :  { %10535 = vmatpush3.bf16.msra.mxu1 %v10534_v48 }
 0x903   :  { %9800 = vmatmul.mubr.msk.f32.vlgmr.msra.gmra.mrb[36].mxu0 %vm85_vm1, %v11037_v43  ;;  %9846 = vmatprep.subr.mxu1 %v10854_v11 }
 0x904   :  { %10526 = vmatpush3.bf16.msra.mxu0 %v10525_v18  ;;  %9821 = vmatprep.mubr.msk.f32.mxu0 %vm10853_vm0, %v10854_v11 }
 0x905   :  { %10527 = vmatprep.subr.bf16.mxu0 %v10852_v3  ;;  %9833 = vmatmul.mubr.msk.f32.vlgmr.msra.gmra.mrb[32].mxu1 %vm85_vm1, %v11037_v43 }
 0x906   :  { %9848 = vmatprep.mubr.msk.f32.mxu1 %vm10853_vm0, %v10854_v11 }
 0x908   :  { %10529 = vmatpush3.bf16.msra.mxu0 %v10528_v46 }
 0x909   :  { %10536 = vmatprep.subr.bf16.mxu0 %v10852_v3 }
 0x90b   :  { %9822 = vmatmul.mubr.msk.f32.vlgmr.msra.gmra.mrb[38].mxu0 %vm85_vm1, %v11037_v43 }
 0x90c   :  { %10538 = vmatpush3.bf16.msra.mxu0 %v10537_v50  ;;  %9843 = vmatprep.mubr.msk.f32.mxu0 %vm10853_vm0, %v10854_v11 }
 0x90d   :  { %10539 = vmatprep.subr.bf16.mxu0 %v10852_v3 }
 0x910   :  { %10541 = vmatpush3.bf16.msra.mxu0 %v10540_v53 }
 0x911   :  { %9856 = vmatprep.subr.mxu0 %v10854_v11 }
 0x913   :  { %9844 = vmatmul.mubr.msk.f32.vlgmr.msra.gmra.mrb[40].mxu0 %vm85_vm1, %v11037_v43 }
 0x914   :  { %9858 = vmatprep.mubr.msk.f32.mxu0 %vm10853_vm0, %v10854_v11 }
 0x9b6   :  { %v2319_v54 = vpop.f32.mrb[28].mxu0  ;;  %v2459_v57 = vpop.f32.mrb[24].mxu1 }
 0x9b7   :  { %v9724_v58 = vpop.f32.mrb[29].mxu0  ;;  %v9746_v59 = vpop.f32.mrb[25].mxu1  ;;  %v2320_v4 = vadd.f32 %v8794_v0, %v2319_v54  ;;  %v2460_v15 = vadd.f32 %v8796_v8, %v2459_v57 }
 0x9be   :  { %v2389_v62 = vpop.f32.mrb[30].mxu0  ;;  %v2645_v63 = vpop.f32.mrb[26].mxu1 }
 0x9bf   :  { %v2646_v1 = vadd.f32 %v8822_v60, %v2645_v63  ;;  %v9735_v2 = vpop.f32.mrb[31].mxu0  ;;  %v9768_v43 = vpop.f32.mrb[27].mxu1  ;;  %v2390_v28 = vadd.f32 %v8795_v21, %v2389_v62 }
 0x9c1   :  { %9847 = vmatpush3.xpose.msk.msra.mxu1 %vm1024_vm2, %v2646_v1 }
 0x9c2   :  { %9851 = vmatprep.subr.mxu1 %v10854_v11 }
 0x9c4   :  { %9849 = vmatmul.mubr.msk.f32.vlgmr.msra.gmra.mrb[34].mxu1 %vm1024_vm2, %v2320_v4 }
 0x9c5   :  { %9853 = vmatprep.mubr.msk.f32.mxu1 %vm10853_vm0, %v10854_v11 }
 0x9c6   :  { %v2529_v6 = vpop.f32.mrb[32].mxu0  ;;  %v2785_v7 = vpop.f32.mrb[28].mxu1 }
 0x9c7   :  { %v2786_v10 = vadd.f32 %v8824_v5, %v2785_v7  ;;  %v9757_v13 = vpop.f32.mrb[33].mxu0  ;;  %v9790_v14 = vpop.f32.mrb[29].mxu1  ;;  %v2530_v34 = vadd.f32 %v8797_v31, %v2529_v6 }
 0x9c9   :  { %9857 = vmatpush3.xpose.msk.msra.mxu0 %vm1024_vm2, %v2786_v10 }
 0x9ca   :  { %9866 = vmatprep.subr.mxu0 %v10854_v11 }
 0x9cc   :  { %9859 = vmatmul.mubr.msk.f32.vlgmr.msra.gmra.mrb[42].mxu0 %vm1024_vm2, %v2460_v15 }
 0x9cd   :  { %9868 = vmatprep.mubr.msk.f32.mxu0 %vm10853_vm0, %v10854_v11 }
 0x9ce   :  { %v2715_v17 = vpop.f32.mrb[34].mxu0 }
 0x9cf   :  { %v2716_v23 = vadd.f32 %v8823_v16, %v2715_v17  ;;  %v9779_v24 = vpop.f32.mrb[35].mxu0 }
 0x9d0   :  { %v2971_v25 = vpop.f32.mrb[30].mxu1 }
 0x9d1   :  { %9852 = vmatpush3.xpose.msk.msra.mxu1 %vm1024_vm2, %v2716_v23  ;;  %v2972_v26 = vadd.f32 %v8850_v20, %v2971_v25  ;;  %v9812_v27 = vpop.f32.mrb[31].mxu1 }
 0x9d2   :  { %9861 = vmatprep.subr.mxu1 %v10854_v11 }
 0x9d3   :  { %9867 = vmatpush3.msra.mxu0 %v2972_v26 }
 0x9d4   :  { %9854 = vmatmul.mubr.msk.f32.vlgmr.msra.gmra.mrb[36].mxu1 %vm1024_vm2, %v2390_v28  ;;  %9876 = vmatprep.subr.mxu0 %v10854_v11 }
 0x9d5   :  { %9863 = vmatprep.mubr.msk.f32.mxu1 %vm10853_vm0, %v10854_v11 }
 0x9d6   :  { %v2855_v30 = vpop.f32.mrb[36].mxu0 }
 0x9d7   :  { %v2856_v32 = vadd.f32 %v8825_v29, %v2855_v30  ;;  %v9801_v33 = vpop.f32.mrb[37].mxu0  ;;  %v8852_v30 = vld [vmem:[%s12642_s4 + $0x16] ss:$0 sm:$0xff] }
 0x9d8   :  { %v11631_v35 = vpop.f32.mrb[32].mxu1 }
 0x9d9   :  { %9862 = vmatpush3.xpose.msk.msra.mxu1 %vm1024_vm2, %v2856_v32  ;;  %v9834_v36 = vpop.f32.mrb[33].mxu1  ;;  %v3112_v33 = vadd.f32 %v8852_v30, %v11631_v35  ;;  %v8853_v35 = vld [vmem:[%s12642_s4 + $0x17] ss:$0 sm:$0xff] }
 0x9da   :  { %9871 = vmatprep.subr.mxu1 %v10854_v11 }
 0x9dc   :  { %9864 = vmatmul.mubr.msk.f32.vlgmr.msra.gmra.mrb[38].mxu1 %vm1024_vm2, %v2530_v34 }
 0x9dd   :  { %9873 = vmatprep.mubr.msk.f32.mxu1 %vm10853_vm0, %v10854_v11 }
 0x9de   :  { %v3041_v38 = vpop.f32.mrb[38].mxu0 }
 0x9df   :  { %v3042_v39 = vadd.f32 %v8851_v37, %v3041_v38  ;;  %v9823_v18 = vpop.f32.mrb[39].mxu0 }
 0x9e1   :  { %9872 = vmatpush3.msra.mxu1 %v3042_v39 }
 0x9e2   :  { %9881 = vmatprep.subr.mxu1 %v10854_v11 }
 0x9e6   :  { %v11637_v42 = vpop.f32.mrb[40].mxu0 }
 0x9e7   :  { %v9845_v44 = vpop.f32.mrb[41].mxu0 }
 0x9e8   :  { %v3182_v44 = vadd.f32 %v8853_v35, %v11637_v42  ;;  %v8871_v42 = vld [vmem:[%s12643_s5 + $0x28] sm:$0xff] }
 0x9e9   :  { %v8889_v35 = vld [vmem:[%s12646_s8 + $0x68] sm:$0xff] }
 0xa97   :  { %v3257_v45 = vpop.f32.mrb[34].mxu1 }
 0xa98   :  { %v3489_v46 = vmul.f32 0.35355338, %v3257_v45  ;;  %v9850_v47 = vpop.f32.mrb[35].mxu1 }
 0xa99   :  { %v8870_v47 = vld [vmem:[%s12643_s5 + $0x20] sm:$0xff] }
 0xa9a   :  { %v3493_v48 = vadd.f32 %v3489_v46, %v11204_v61 }
 0xa9c   :  { %v3497_v12 = vsel %vm1024_vm2, %v3493_v48, -inf }
 0xa9d   :  { %3498 = vmax.xlane.f32.xlu0 %v3497_v12 }
 0xa9f   :  { %v3409_v49 = vpop.f32.mrb[42].mxu0 }
 0xaa0   :  { %v3491_v50 = vmul.f32 0.35355338, %v3409_v49  ;;  %v9860_v51 = vpop.f32.mrb[43].mxu0 }
 0xaa2   :  { %v3495_v52 = vadd.f32 %v3491_v50, %v11204_v61 }
 0xaa4   :  { %v3503_v53 = vsel %vm1024_vm2, %v3495_v52, -inf }
 0xaa5   :  { %3504 = vmax.xlane.f32.xlu0 %v3503_v53 }
 0xaa7   :  { %v3333_v54 = vpop.f32.mrb[36].mxu1 }
 0xaa8   :  { %v3490_v57 = vmul.f32 0.35355338, %v3333_v54  ;;  %v9855_v58 = vpop.f32.mrb[37].mxu1 }
 0xaaa   :  { %v3494_v59 = vadd.f32 %v3490_v57, %v11204_v61 }
 0xaac   :  { %v3500_v60 = vsel %vm1024_vm2, %v3494_v59, -inf }
 0xaad   :  { %3501 = vmax.xlane.f32.xlu1 %v3500_v60 }
 0xaaf   :  { %v3485_v62 = vpop.f32.mrb[38].mxu1 }
 0xab0   :  { %v3492_v63 = vmul.f32 0.35355338, %v3485_v62  ;;  %v9865_v0 = vpop.f32.mrb[39].mxu1 }
 0xab2   :  { %v3496_v1 = vadd.f32 %v3492_v63, %v11204_v61 }
 0xab4   :  { %v3506_v2 = vsel %vm1024_vm2, %v3496_v1, -inf }
 0xab5   :  { %3507 = vmax.xlane.f32.xlu1 %v3506_v2 }
 0xb2a   :  { %v3499_v43 = vpop.xlane.xlu0 %3498 }
 0xb2b   :  { %v3509_v4 = vsub.f32 %v3493_v48, %v3499_v43  ;;  %v8872_v48 = vld [vmem:[%s12643_s5 + $0x30] sm:$0xff] }
 0xb2d   :  { %v3513_v5 = vmul.f32 1.442695, %v3509_v4 }
 0xb2f   :  { %10766 = vpow2.f32 %v3513_v5 }
 0xb32   :  { %v3505_v6 = vpop.xlane.xlu0 %3504 }
 0xb33   :  { %v3511_v7 = vsub.f32 %v3495_v52, %v3505_v6  ;;  %v8873_v52 = vld [vmem:[%s12643_s5 + $0x38] sm:$0xff] }
 0xb35   :  { %v3517_v8 = vmul.f32 1.442695, %v3511_v7  ;;  %v8772_v7 = vld [vmem:[%s12647_s9 + $0x8] sm:$0x3f] }
 0xb37   :  { %10768 = vpow2.f32 %v3517_v8 }
 0xb39   :  { %v10767_v10 = vpop.eup %10766 }
 0xb3a   :  { %v3502_v13 = vpop.xlane.xlu1 %3501  ;;  %v3521_v14 = vsel %vm1024_vm2, %v10767_v10, 0.0 }
 0xb3b   :  { %v3510_v15 = vsub.f32 %v3494_v59, %v3502_v13  ;;  %3522 = vadd.xlane.f32.xlu0 %v3521_v14 }
 0xb3d   :  { %v3515_v16 = vmul.f32 1.442695, %v3510_v15 }
 0xb3f   :  { %10770 = vpow2.f32 %v3515_v16 }
 0xb41   :  { %v10769_v61 = vpop.eup %10768 }
 0xb42   :  { %v3508_v17 = vpop.xlane.xlu1 %3507  ;;  %v3527_v20 = vsel %vm1024_vm2, %v10769_v61, 0.0 }
 0xb43   :  { %v3512_v21 = vsub.f32 %v3496_v1, %v3508_v17  ;;  %3528 = vadd.xlane.f32.xlu0 %v3527_v20 }
 0xb45   :  { %v3519_v23 = vmul.f32 1.442695, %v3512_v21 }
 0xb47   :  { %10772 = vpow2.f32 %v3519_v23 }
 0xb49   :  { %v10771_v24 = vpop.eup %10770 }
 0xb4a   :  { %v3524_v25 = vsel %vm1024_vm2, %v10771_v24, 0.0 }
 0xb4b   :  { %3525 = vadd.xlane.f32.xlu1 %v3524_v25 }
 0xb51   :  { %v10773_v26 = vpop.eup %10772 }
 0xb52   :  { %v3530_v27 = vsel %vm1024_vm2, %v10773_v26, 0.0 }
 0xb53   :  { %3531 = vadd.xlane.f32.xlu1 %v3530_v27  ;;  %v8879_v27 = vld [vmem:[%s12644_s6 + $0x28] sm:$0xff] }
 0xbc8   :  { %v3523_v28 = vpop.xlane.xlu0 %3522 }
 0xbc9   :  { %10774 = vrcp.f32 %v3523_v28 }
 0xbd0   :  { %v3529_v29 = vpop.xlane.xlu0 %3528 }
 0xbd1   :  { %10776 = vrcp.f32 %v3529_v29  ;;  %v8881_v29 = vld [vmem:[%s12644_s6 + $0x38] sm:$0xff] }
 0xbd3   :  { %v10775_v31 = vpop.eup %10774 }
 0xbd4   :  { %v3537_v32 = vmul.f32 %v10775_v31, %v10767_v10  ;;  %v4140_v10 = vrot.slane %v8772_v7, %v11273_v19  ;;  %v8884_v31 = vld [vmem:[%s12646_s8 + $0x40] sm:$0xff] }
 0xbd6   :  { %9869 = vmatmul.mubr.msk.f32.vlgmr.msra.gmra.mrb[44].mxu0 %vm1024_vm2, %v3537_v32  ;;  %v8885_v32 = vld [vmem:[%s12646_s8 + $0x48] sm:$0xff] }
 0xbd7   :  { %9877 = vmatpush3.msra.mxu0 %v3112_v33  ;;  %9878 = vmatprep.mubr.msk.f32.mxu0 %vm10853_vm0, %v10854_v11  ;;  %v10549_v33 = vpack.c.bf16 %v8885_v32, %v8884_v31 }
 0xbd8   :  { %v3526_v34 = vpop.xlane.xlu1 %3525  ;;  %9886 = vmatprep.subr.mxu0 %v10854_v11 }
 0xbd9   :  { %10778 = vrcp.f32 %v3526_v34  ;;  %v8886_v34 = vld [vmem:[%s12646_s8 + $0x50] sm:$0xff] }
 0xbdb   :  { %v10777_v36 = vpop.eup %10776 }
 0xbdc   :  { %v3539_v37 = vmul.f32 %v10777_v36, %v10769_v61  ;;  %v8887_v36 = vld [vmem:[%s12646_s8 + $0x58] sm:$0xff] }
 0xbde   :  { %9879 = vmatmul.mubr.msk.f32.vlgmr.msra.gmra.mrb[46].mxu0 %vm1024_vm2, %v3539_v37  ;;  %v10552_v37 = vpack.c.bf16 %v8887_v36, %v8886_v34 }
 0xbdf   :  { %9888 = vmatprep.mubr.msk.f32.mxu0 %vm10853_vm0, %v10854_v11  ;;  %9887 = vmatpush3.msra.mxu0 %v8870_v47 }
 0xbe0   :  { %v3532_v38 = vpop.xlane.xlu1 %3531  ;;  %9896 = vmatprep.subr.mxu0 %v10854_v11 }
 0xbe1   :  { %10780 = vrcp.f32 %v3532_v38  ;;  %v8888_v38 = vld [vmem:[%s12646_s8 + $0x60] sm:$0xff] }
 0xbe3   :  { %v10779_v39 = vpop.eup %10778 }
 0xbe4   :  { %v3538_v18 = vmul.f32 %v10779_v39, %v10771_v24  ;;  %v10555_v39 = vpack.c.bf16 %v8889_v35, %v8888_v38  ;;  %v4381_v38 = vld [vmem:[%s12641_s3 + $0x58] sm:$0xff] }
 0xbe6   :  { %9874 = vmatmul.mubr.msk.f32.vlgmr.msra.gmra.mrb[40].mxu1 %vm1024_vm2, %v3538_v18 }
 0xbe7   :  { %9882 = vmatpush3.msra.mxu1 %v3182_v44  ;;  %9883 = vmatprep.mubr.msk.f32.mxu1 %vm10853_vm0, %v10854_v11 }
 0xbe8   :  { %9891 = vmatprep.subr.mxu1 %v10854_v11 }
 0xbeb   :  { %v10781_v45 = vpop.eup %10780 }
 0xbec   :  { %v3540_v46 = vmul.f32 %v10781_v45, %v10773_v26  ;;  %v8878_v26 = vld [vmem:[%s12644_s6 + $0x20] sm:$0xff] }
 0xbed   :  { %v10543_v28 = vpack.c.bf16 %v8879_v27, %v8878_v26  ;;  %v8918_v26 = vld [vmem:[%s12641_s3 + $0xf0] sm:$0xff]  ;;  %v8919_v27 = vld [vmem:[%s12641_s3 + $0xf8] sm:$0xff] }
 0xbee   :  { %9884 = vmatmul.mubr.msk.f32.vlgmr.msra.gmra.mrb[42].mxu1 %vm1024_vm2, %v3540_v46  ;;  %v4159_v46 = vrot.slane %v8772_v7, %v11323_v55 }
 0xbef   :  { %9893 = vmatprep.mubr.msk.f32.mxu1 %vm10853_vm0, %v10854_v11  ;;  %9892 = vmatpush3.msra.mxu1 %v8871_v42 }
 0xbf0   :  { %9901 = vmatprep.subr.mxu1 %v10854_v11 }
 0xca9   :  { %v3610_v12 = vpop.f32.mrb[44].mxu0 }
 0xcaa   :  { %v9870_v49 = vpop.f32.mrb[45].mxu0  ;;  %9889 = vmatmul.mubr.msk.f32.vlgmr.msra.gmra.mrb[48].mxu0 %vm1024_vm2, %v3610_v12  ;;  %v4370_v12 = vld [vmem:[%s12641_s3] sm:$0xff] }
 0xcab   :  { %9897 = vmatpush3.msra.mxu0 %v8872_v48  ;;  %9898 = vmatprep.mubr.msk.f32.mxu0 %vm10853_vm0, %v10854_v11  ;;  %v4164_v48 = vrot.slane %v8772_v7, %v11326_v56  ;;  %v4371_v49 = vld [vmem:[%s12641_s3 + $0x8] sm:$0xff] }
 0xcac   :  { %10542 = vmatprep.subr.bf16.mxu0 %v10852_v3 }
 0xcb1   :  { %v3756_v50 = vpop.f32.mrb[46].mxu0 }
 0xcb2   :  { %v9880_v51 = vpop.f32.mrb[47].mxu0  ;;  %9899 = vmatmul.mubr.msk.f32.vlgmr.msra.gmra.mrb[50].mxu0 %vm1024_vm2, %v3756_v50 }
 0xcb3   :  { %9914 = vmatprep.mubr.msk.f32.mxu0 %vm10853_vm0, %v10854_v11  ;;  %10544 = vmatpush3.bf16.msra.mxu0 %v10543_v28  ;;  %v10561_v51 = vpack.c.bf16 %v4371_v49, %v4370_v12  ;;  %v10606_v28 = vpack.c.bf16 %v8919_v27, %v8918_v26  ;;  %v8912_v12 = vld [vmem:[%s12641_s3 + $0xc0] sm:$0xff]  ;;  %v8913_v49 = vld [vmem:[%s12641_s3 + $0xc8] sm:$0xff]  ;;  %v8946_v26 = vld [vmem:[%s12641_s3 + $0x170] sm:$0xff] }
 0xcb4   :  { %10545 = vmatprep.subr.bf16.mxu0 %v10852_v3  ;;  %v8947_v27 = vld [vmem:[%s12641_s3 + $0x178] sm:$0xff] }
 0xcb9   :  { %v3683_v53 = vpop.f32.mrb[40].mxu1 }
 0xcba   :  { %v9875_v54 = vpop.f32.mrb[41].mxu1  ;;  %9894 = vmatmul.mubr.msk.f32.vlgmr.msra.gmra.mrb[44].mxu1 %vm1024_vm2, %v3683_v53  ;;  %v4372_v53 = vld [vmem:[%s12641_s3 + $0x10] sm:$0xff] }
 0xcbb   :  { %9902 = vmatpush3.msra.mxu1 %v8873_v52  ;;  %9903 = vmatprep.mubr.msk.f32.mxu1 %vm10853_vm0, %v10854_v11  ;;  %v4373_v54 = vld [vmem:[%s12641_s3 + $0x18] sm:$0xff] }
 0xcbc   :  { %10548 = vmatprep.subr.bf16.mxu1 %v10852_v3 }
 0xcc1   :  { %v3829_v57 = vpop.f32.mrb[42].mxu1 }
 0xcc2   :  { %v9885_v58 = vpop.f32.mrb[43].mxu1  ;;  %9904 = vmatmul.mubr.msk.f32.vlgmr.msra.gmra.mrb[46].mxu1 %vm1024_vm2, %v3829_v57  ;;  %v10564_v57 = vpack.c.bf16 %v4373_v54, %v4372_v53  ;;  %v8915_v53 = vld [vmem:[%s12641_s3 + $0xd8] sm:$0xff] }
 0xcc3   :  { %9933 = vmatprep.mubr.msk.f32.mxu1 %vm10853_vm0, %v10854_v11  ;;  %10550 = vmatpush3.bf16.msra.mxu1 %v10549_v33  ;;  %v4374_v58 = vld [vmem:[%s12641_s3 + $0x20] sm:$0xff] }
 0xcc4   :  { %10551 = vmatprep.subr.bf16.mxu1 %v10852_v3 }
 0xcc7   :  { %10553 = vmatpush3.bf16.msra.mxu1 %v10552_v37  ;;  %v4380_v37 = vld [vmem:[%s12641_s3 + $0x50] sm:$0xff] }
 0xcc8   :  { %10554 = vmatprep.subr.bf16.mxu1 %v10852_v3  ;;  %v10576_v35 = vpack.c.bf16 %v4381_v38, %v4380_v37  ;;  %v8924_v37 = vld [vmem:[%s12642_s4 + $0x4] ss:$0 sm:$0xff] }
 0xccb   :  { %10556 = vmatpush3.bf16.msra.mxu1 %v10555_v39  ;;  %v8904_v39 = vld [vmem:[%s12641_s3 + $0x80] sm:$0xff] }
 0xccc   :  { %10557 = vmatprep.subr.bf16.mxu1 %v10852_v3 }
 0xd7d   :  { %v3907_v59 = vpop.f32.mrb[48].mxu0 }
 0xd7e   :  { %v9890_v60 = vpop.f32.mrb[49].mxu0  ;;  %v4130_v1 = vsel %vm85_vm1, %v3907_v59, 0.0  ;;  %v4375_v59 = vld [vmem:[%s12641_s3 + $0x28] sm:$0xff] }
 0xd7f   :  { %v11777_v60 = vld [vmem:[%s12639_s1 + $0x8] sm:$0xff] }
 0xd85   :  { %v4053_v62 = vpop.f32.mrb[50].mxu0 }
 0xd86   :  { %v9900_v63 = vpop.f32.mrb[51].mxu0  ;;  %v4133_v5 = vsel %vm85_vm1, %v4053_v62, 0.0  ;;  %v10567_v62 = vpack.c.bf16 %v4375_v59, %v4374_v58  ;;  %v8933_v58 = vld [vmem:[%s12641_s3 + $0x108] sm:$0xff] }
 0xd87   :  { %v8890_v63 = vld [vmem:[%s12646_s8 + $0x70] sm:$0xff] }
 0xd8d   :  { %v3980_v0 = vpop.f32.mrb[44].mxu1 }
 0xd8e   :  { %v4131_v2 = vsel %vm85_vm1, %v3980_v0, 0.0  ;;  %v9895_v43 = vpop.f32.mrb[45].mxu1  ;;  %v8891_v0 = vld [vmem:[%s12646_s8 + $0x78] sm:$0xff] }
 0xd8f   :  { %v4132_v4 = vadd.f32 %v4131_v2, %v4130_v1  ;;  %v4376_v1 = vld [vmem:[%s12641_s3 + $0x30] sm:$0xff]  ;;  %v10558_v2 = vpack.c.bf16 %v8891_v0, %v8890_v63  ;;  %v4377_v43 = vld [vmem:[%s12641_s3 + $0x38] sm:$0xff] }
 0xd90   :  { %v8935_v63 = vld [vmem:[%s12641_s3 + $0x118] sm:$0xff] }
 0xd91   :  { %v4134_v6 = vadd.f32 %v4133_v5, %v4132_v4  ;;  %v10570_v4 = vpack.c.bf16 %v4377_v43, %v4376_v1  ;;  %10559 = vmatpush3.bf16.msra.mxu1 %v10558_v2  ;;  %v4382_v5 = vld [vmem:[%s12641_s3 + $0x60] sm:$0xff]  ;;  %v8937_v43 = vld [vmem:[%s12641_s3 + $0x128] sm:$0xff] }
 0xd92   :  { %10572 = vmatprep.subr.bf16.mxu1 %v10852_v3  ;;  %v8936_v2 = vld [vmem:[%s12641_s3 + $0x120] sm:$0xff] }
 0xd95   :  { %v4126_v8 = vpop.f32.mrb[46].mxu1 }
 0xd96   :  { %v4135_v13 = vsel %vm85_vm1, %v4126_v8, 0.0  ;;  %v9905_v14 = vpop.f32.mrb[47].mxu1  ;;  %v4384_v8 = vld [vmem:[%s12641_s3 + $0x70] sm:$0xff] }
 0xd97   :  { %v4136_v15 = vadd.f32 %v4135_v13, %v4134_v6  ;;  %v4383_v6 = vld [vmem:[%s12641_s3 + $0x68] sm:$0xff]  ;;  %v8908_v14 = vld [vmem:[%s12641_s3 + $0xa0] sm:$0xff] }
 0xd98   :  { %v10579_v7 = vpack.c.bf16 %v4383_v6, %v4382_v5  ;;  %v10615_v5 = vpack.c.bf16 %v8937_v43, %v8936_v2  ;;  %v8940_v6 = vld [vmem:[%s12641_s3 + $0x140] sm:$0xff]  ;;  %v8953_v2 = vld [vmem:[%s12642_s4 + $0x9] ss:$0 sm:$0xff] }
 0xd99   :  { %v4141_v16 = vadd.f32 %v4140_v10, %v4136_v15  ;;  %v4385_v10 = vld [vmem:[%s12641_s3 + $0x78] sm:$0xff]  ;;  %v8909_v15 = vld [vmem:[%s12641_s3 + $0xa8] sm:$0xff] }
 0xd9a   :  { %v10582_v13 = vpack.c.bf16 %v4385_v10, %v4384_v8  ;;  %v8938_v10 = vld [vmem:[%s12641_s3 + $0x130] sm:$0xff] }
 0xd9b   :  { %v4142_v61 = vadd.f32 %v4141_v16, %v11408_v22  ;;  %v8880_v22 = vld [vmem:[%s12644_s6 + $0x30] sm:$0xff]  ;;  %v10591_v16 = vpack.c.bf16 %v8909_v15, %v8908_v14 }
 0xd9c   :  { %v10546_v30 = vpack.c.bf16 %v8881_v29, %v8880_v22  ;;  %v8882_v22 = vld [vmem:[%s12645_s7 + $0x1] ss:$0 sm:$0xff]  ;;  %v8942_v14 = vld [vmem:[%s12641_s3 + $0x150] sm:$0xff] }
 0xd9d   :  { %v4143_v17 = vsel %vm85_vm1, %v4142_v61, 0.0  ;;  %v4378_v29 = vld [vmem:[%s12641_s3 + $0x40] sm:$0xff] }
 0xd9e   :  { %4144 = vadd.xlane.f32.xlu0 %v4143_v17  ;;  %10547 = vmatpush3.bf16.msra.mxu0 %v10546_v30  ;;  %v8911_v17 = vld [vmem:[%s12641_s3 + $0xb8] sm:$0xff]  ;;  %v4379_v30 = vld [vmem:[%s12641_s3 + $0x48] sm:$0xff] }
 0xd9f   :  { %10560 = vmatprep.subr.bf16.mxu0 %v10852_v3  ;;  %v10573_v34 = vpack.c.bf16 %v4379_v30, %v4378_v29 }
 0xe2b   :  { %v4145_v20 = vpop.xlane.xlu0 %4144 }
 0xe2c   :  { %v4146_v21 = vmul.f32 0.03125, %v4145_v20 }
 0xe2e   :  { %v4147_v23 = vsub.f32 %v4142_v61, %v4146_v21  ;;  %v8910_v61 = vld [vmem:[%s12641_s3 + $0xb0] sm:$0xff]  ;;  %v11837_v21 = vld [vmem:[%s12638_s0 + $0x8] sm:$0xff] }
 0xe2f   :  { %v10594_v20 = vpack.c.bf16 %v8911_v17, %v8910_v61 }
 0xe30   :  { %v4148_v24 = vmul.f32 %v4147_v23, %v4147_v23 }
 0xe32   :  { %v4149_v25 = vsel %vm85_vm1, %v4148_v24, 0.0  ;;  %v8917_v24 = vld [vmem:[%s12641_s3 + $0xe8] sm:$0xff] }
 0xe33   :  { %4150 = vadd.xlane.f32.xlu1 %v4149_v25 }
 0xec0   :  { %v4151_v18 = vpop.xlane.xlu1 %4150 }
 0xec1   :  { %v4152_v44 = vmul.f32 0.03125, %v4151_v18  ;;  %v8905_v18 = vld [vmem:[%s12641_s3 + $0x88] sm:$0xff] }
 0xec3   :  { %v4153_v45 = vadd.f32 1e-05, %v4152_v44 }
 0xec5   :  { %10782 = vrsqrt.f32 %v4153_v45 }
 0xecf   :  { %v10783_v47 = vpop.eup %10782 }
 0xed0   :  { %v4155_v42 = vmul.f32 %v10783_v47, %v4147_v23  ;;  %v8916_v23 = vld [vmem:[%s12641_s3 + $0xe0] sm:$0xff]  ;;  %v8906_v47 = vld [vmem:[%s12641_s3 + $0x90] sm:$0xff] }
 0xed1   :  { %v10603_v25 = vpack.c.bf16 %v8917_v24, %v8916_v23  ;;  %v8945_v23 = vld [vmem:[%s12641_s3 + $0x168] sm:$0xff] }
 0xed2   :  { %v4160_v50 = vmul.f32 %v4159_v46, %v4155_v42  ;;  %v10585_v46 = vpack.c.bf16 %v8905_v18, %v8904_v39  ;;  %v8907_v42 = vld [vmem:[%s12641_s3 + $0x98] sm:$0xff]  ;;  %v8896_v39 = vld [vmem:[%s12642_s4] ss:$0 sm:$0xff] }
 0xed4   :  { %v11755_v52 = vadd.f32 %v4164_v48, %v4160_v50  ;;  %v10588_v48 = vpack.c.bf16 %v8907_v42, %v8906_v47  ;;  %v10597_v50 = vpack.c.bf16 %v8913_v49, %v8912_v12  ;;  %v8927_v42 = vld [vmem:[%s12642_s4 + $0x7] ss:$0 sm:$0xff]  ;;  %v8926_v12 = vld [vmem:[%s12642_s4 + $0x6] ss:$0 sm:$0xff] }
 0xed6   :  { %9915 = vmatmul.mubr.msk.f32.vlgmr.msra.gmra.mrb[52].mxu0 %vm85_vm1, %v11755_v52 }
 0xed7   :  { %10562 = vmatpush3.bf16.msra.mxu0 %v10561_v51  ;;  %9944 = vmatprep.mubr.msk.f32.mxu0 %vm10853_vm0, %v10854_v11  ;;  %v8914_v51 = vld [vmem:[%s12641_s3 + $0xd0] sm:$0xff] }
 0xed8   :  { %10563 = vmatprep.subr.bf16.mxu0 %v10852_v3  ;;  %v10600_v54 = vpack.c.bf16 %v8915_v53, %v8914_v51  ;;  %v8898_v51 = vld [vmem:[%s12642_s4 + $0x2] ss:$0 sm:$0xff]  ;;  %v8899_v53 = vld [vmem:[%s12642_s4 + $0x3] ss:$0 sm:$0xff] }
 0xedb   :  { %10565 = vmatpush3.bf16.msra.mxu0 %v10564_v57  ;;  %v8932_v57 = vld [vmem:[%s12641_s3 + $0x100] sm:$0xff] }
 0xedc   :  { %10566 = vmatprep.subr.bf16.mxu0 %v10852_v3  ;;  %v10609_v59 = vpack.c.bf16 %v8933_v58, %v8932_v57 }
 0xede   :  { %9945 = vmatmul.mubr.msk.f32.vlgmr.msra.gmra.mrb[54].mxu0 %vm85_vm1, %v11777_v60 }
 0xedf   :  { %10568 = vmatpush3.bf16.msra.mxu0 %v10567_v62  ;;  %9955 = vmatprep.mubr.msk.f32.mxu0 %vm10853_vm0, %v10854_v11  ;;  %v8934_v62 = vld [vmem:[%s12641_s3 + $0x110] sm:$0xff] }
 0xee0   :  { %10569 = vmatprep.subr.bf16.mxu0 %v10852_v3  ;;  %v10612_v0 = vpack.c.bf16 %v8935_v63, %v8934_v62  ;;  %v8952_v62 = vld [vmem:[%s12642_s4 + $0x8] ss:$0 sm:$0xff] }
 0xee3   :  { %10571 = vmatpush3.bf16.msra.mxu0 %v10570_v4 }
 0xee4   :  { %10578 = vmatprep.subr.bf16.mxu0 %v10852_v3 }
 0xee6   :  { %9956 = vmatmul.mubr.msk.f32.vlgmr.msra.gmra.mrb[56].mxu0 %vm85_vm1, %v11777_v60 }
 0xee7   :  { %10580 = vmatpush3.bf16.msra.mxu0 %v10579_v7  ;;  %9977 = vmatprep.mubr.msk.f32.mxu0 %vm10853_vm0, %v10854_v11  ;;  %v8941_v7 = vld [vmem:[%s12641_s3 + $0x148] sm:$0xff] }
 0xee8   :  { %10581 = vmatprep.subr.bf16.mxu0 %v10852_v3  ;;  %v10621_v8 = vpack.c.bf16 %v8941_v7, %v8940_v6 }
 0xeeb   :  { %10583 = vmatpush3.bf16.msra.mxu0 %v10582_v13  ;;  %v8939_v13 = vld [vmem:[%s12641_s3 + $0x138] sm:$0xff] }
 0xeec   :  { %10590 = vmatprep.subr.bf16.mxu0 %v10852_v3  ;;  %v10618_v15 = vpack.c.bf16 %v8939_v13, %v8938_v10 }
 0xeee   :  { %9978 = vmatmul.mubr.msk.f32.vlgmr.msra.gmra.mrb[58].mxu0 %vm85_vm1, %v11777_v60 }
 0xeef   :  { %10592 = vmatpush3.bf16.msra.mxu0 %v10591_v16  ;;  %9999 = vmatprep.mubr.msk.f32.mxu0 %vm10853_vm0, %v10854_v11  ;;  %v8943_v16 = vld [vmem:[%s12641_s3 + $0x158] sm:$0xff] }
 0xef0   :  { %10593 = vmatprep.subr.bf16.mxu0 %v10852_v3  ;;  %v10624_v17 = vpack.c.bf16 %v8943_v16, %v8942_v14  ;;  %v12061_v14 = vld [vmem:[%s12640_s2 + $0x8] sm:$0xff] }
 0xef3   :  { %10595 = vmatpush3.bf16.msra.mxu0 %v10594_v20  ;;  %v8944_v20 = vld [vmem:[%s12641_s3 + $0x160] sm:$0xff] }
 0xef4   :  { %10602 = vmatprep.subr.bf16.mxu0 %v10852_v3 }
 0xef6   :  { %10000 = vmatmul.mubr.msk.f32.vlgmr.msra.gmra.mrb[60].mxu0 %vm85_vm1, %v11837_v21 }
 0xef7   :  { %10604 = vmatpush3.bf16.msra.mxu0 %v10603_v25  ;;  %10021 = vmatprep.mubr.msk.f32.mxu0 %vm10853_vm0, %v10854_v11  ;;  %v10627_v25 = vpack.c.bf16 %v8945_v23, %v8944_v20 }
 0xef8   :  { %10605 = vmatprep.subr.bf16.mxu0 %v10852_v3 }
 0xefb   :  { %10607 = vmatpush3.bf16.msra.mxu0 %v10606_v28  ;;  %v10630_v28 = vpack.c.bf16 %v8947_v27, %v8946_v26 }
 0xefc   :  { %10614 = vmatprep.subr.bf16.mxu0 %v10852_v3 }
 0xefe   :  { %10022 = vmatmul.mubr.msk.f32.vlgmr.msra.gmra.mrb[62].mxu0 %vm85_vm1, %v11837_v21 }
 0xeff   :  { %10043 = vmatprep.mubr.msk.f32.mxu0 %vm10853_vm0, %v10854_v11  ;;  %10616 = vmatpush3.bf16.msra.mxu0 %v10615_v5 }
 0xf00   :  { %10617 = vmatprep.subr.bf16.mxu0 %v10852_v3 }
 0xf03   :  { %10619 = vmatpush3.bf16.msra.mxu0 %v10618_v15 }
 0xf04   :  { %10626 = vmatprep.subr.bf16.mxu0 %v10852_v3 }
 0xf06   :  { %10044 = vmatmul.mubr.msk.f32.vlgmr.msra.gmra.mrb[64].mxu0 %vm85_vm1, %v11837_v21 }
 0xf07   :  { %10628 = vmatpush3.bf16.msra.mxu0 %v10627_v25  ;;  %10065 = vmatprep.mubr.msk.f32.mxu0 %vm10853_vm0, %v10854_v11 }
 0xf08   :  { %10629 = vmatprep.subr.bf16.mxu0 %v10852_v3 }
 0xf0b   :  { %10631 = vmatpush3.bf16.msra.mxu0 %v10630_v28 }
 0xf0c   :  { %10078 = vmatprep.subr.mxu0 %v10854_v11 }
 0xf0e   :  { %10066 = vmatmul.mubr.msk.f32.vlgmr.msra.gmra.mrb[66].mxu0 %vm85_vm1, %v11837_v21 }
 0xf0f   :  { %10080 = vmatprep.mubr.msk.f32.mxu0 %vm10853_vm0, %v10854_v11 }
 0xfa9   :  { %v4246_v31 = vpop.f32.mrb[52].mxu0 }
 0xfaa   :  { %v4247_v32 = vadd.f32 %v8882_v22, %v4246_v31  ;;  %v9916_v33 = vpop.f32.mrb[53].mxu0 }
 0xfac   :  { %v4250_v36 = vmax.f32 %v4247_v32, 0.0 }
 0xfae   :  { %9934 = vmatmul.mubr.msk.f32.vlgmr.msra.gmra.mrb[48].mxu1 %vm2102_vm3, %v4250_v36 }
 0xfaf   :  { %10574 = vmatpush3.bf16.msra.mxu1 %v10573_v34  ;;  %9966 = vmatprep.mubr.msk.f32.mxu1 %vm10853_vm0, %v10854_v11 }
 0xfb0   :  { %10575 = vmatprep.subr.bf16.mxu1 %v10852_v3 }
 0xfb1   :  { %v11887_v44 = vpop.f32.mrb[54].mxu0 }
 0xfb2   :  { %v9946_v45 = vpop.f32.mrb[55].mxu0  ;;  %v4484_v47 = vadd.f32 %v8896_v39, %v11887_v44 }
 0xfb3   :  { %10577 = vmatpush3.bf16.msra.mxu1 %v10576_v35  ;;  %v8925_v35 = vld [vmem:[%s12642_s4 + $0x5] ss:$0 sm:$0xff] }
 0xfb4   :  { %10584 = vmatprep.subr.bf16.mxu1 %v10852_v3 }
 0xfb6   :  { %9967 = vmatmul.mubr.msk.f32.vlgmr.msra.gmra.mrb[50].mxu1 %vm85_vm1, %v11777_v60 }
 0xfb7   :  { %10586 = vmatpush3.bf16.msra.mxu1 %v10585_v46  ;;  %9988 = vmatprep.mubr.msk.f32.mxu1 %vm10853_vm0, %v10854_v11 }
 0xfb8   :  { %10587 = vmatprep.subr.bf16.mxu1 %v10852_v3 }
 0xfb9   :  { %v11937_v1 = vpop.f32.mrb[56].mxu0 }
 0xfba   :  { %v9957_v4 = vpop.f32.mrb[57].mxu0 }
 0xfbb   :  { %10589 = vmatpush3.bf16.msra.mxu1 %v10588_v48  ;;  %v8897_v48 = vld [vmem:[%s12642_s4 + $0x1] ss:$0 sm:$0xff] }
 0xfbc   :  { %10596 = vmatprep.subr.bf16.mxu1 %v10852_v3  ;;  %v4554_v44 = vadd.f32 %v8897_v48, %v11937_v1 }
 0xfbe   :  { %9989 = vmatmul.mubr.msk.f32.vlgmr.msra.gmra.mrb[52].mxu1 %vm85_vm1, %v11837_v21 }
 0xfbf   :  { %10598 = vmatpush3.bf16.msra.mxu1 %v10597_v50  ;;  %10010 = vmatprep.mubr.msk.f32.mxu1 %vm10853_vm0, %v10854_v11 }
 0xfc0   :  { %10599 = vmatprep.subr.bf16.mxu1 %v10852_v3 }
 0xfc1   :  { %v4693_v61 = vpop.f32.mrb[58].mxu0 }
 0xfc2   :  { %v9979_v24 = vpop.f32.mrb[59].mxu0 }
 0xfc3   :  { %10601 = vmatpush3.bf16.msra.mxu1 %v10600_v54 }
 0xfc4   :  { %10608 = vmatprep.subr.bf16.mxu1 %v10852_v3 }
 0xfc6   :  { %10011 = vmatmul.mubr.msk.f32.vlgmr.msra.gmra.mrb[54].mxu1 %vm85_vm1, %v11837_v21 }
 0xfc7   :  { %10610 = vmatpush3.bf16.msra.mxu1 %v10609_v59  ;;  %10032 = vmatprep.mubr.msk.f32.mxu1 %vm10853_vm0, %v10854_v11  ;;  %v4694_v59 = vadd.f32 %v8899_v53, %v4693_v61 }
 0xfc8   :  { %10611 = vmatprep.subr.bf16.mxu1 %v10852_v3 }
 0xfc9   :  { %v4880_v22 = vpop.f32.mrb[60].mxu0 }
 0xfca   :  { %v10001_v29 = vpop.f32.mrb[61].mxu0  ;;  %v4881_v46 = vadd.f32 %v8925_v35, %v4880_v22 }
 0xfcb   :  { %10613 = vmatpush3.bf16.msra.mxu1 %v10612_v0 }
 0xfcc   :  { %10620 = vmatprep.subr.bf16.mxu1 %v10852_v3 }
 0xfce   :  { %10033 = vmatmul.mubr.msk.f32.vlgmr.msra.gmra.mrb[56].mxu1 %vm85_vm1, %v11837_v21 }
 0xfcf   :  { %10622 = vmatpush3.bf16.msra.mxu1 %v10621_v8  ;;  %10054 = vmatprep.mubr.msk.f32.mxu1 %vm10853_vm0, %v10854_v11 }
 0xfd0   :  { %10623 = vmatprep.subr.bf16.mxu1 %v10852_v3 }
 0xfd1   :  { %v5020_v30 = vpop.f32.mrb[62].mxu0 }
 0xfd2   :  { %v10023_v31 = vpop.f32.mrb[63].mxu0  ;;  %v5021_v49 = vadd.f32 %v8927_v42, %v5020_v30 }
 0xfd3   :  { %10625 = vmatpush3.bf16.msra.mxu1 %v10624_v17 }
 0xfd4   :  { %10068 = vmatprep.subr.mxu1 %v10854_v11 }
 0xfd6   :  { %10055 = vmatmul.mubr.msk.f32.vlgmr.msra.gmra.mrb[58].mxu1 %vm85_vm1, %v11837_v21 }
 0xfd7   :  { %10070 = vmatprep.mubr.msk.f32.mxu1 %vm10853_vm0, %v10854_v11 }
 0xfd9   :  { %v5204_v43 = vpop.f32.mrb[64].mxu0 }
 0xfda   :  { %v5205_v4 = vadd.f32 %v8953_v2, %v5204_v43  ;;  %v10045_v5 = vpop.f32.mrb[65].mxu0  ;;  %v8954_v43 = vld [vmem:[%s12642_s4 + $0xa] ss:$0 sm:$0xff] }
 0xfe1   :  { %v12056_v8 = vpop.f32.mrb[66].mxu0 }
 0xfe2   :  { %v10067_v10 = vpop.f32.mrb[67].mxu0 }
 0xfe3   :  { %v8955_v10 = vld [vmem:[%s12642_s4 + $0xb] ss:$0 sm:$0xff] }
0x1081   :  { %v11998_v32 = vpop.f32.mrb[48].mxu1 }
0x1082   :  { %v9935_v33 = vpop.f32.mrb[49].mxu1 }
0x1089   :  { %v4623_v34 = vpop.f32.mrb[50].mxu1 }
0x108a   :  { %v9968_v36 = vpop.f32.mrb[51].mxu1  ;;  %v4624_v58 = vadd.f32 %v8898_v51, %v4623_v34 }
0x1091   :  { %v4810_v38 = vpop.f32.mrb[52].mxu1 }
0x1092   :  { %v4811_v18 = vadd.f32 %v8924_v37, %v4810_v38  ;;  %v9990_v45 = vpop.f32.mrb[53].mxu1 }
0x1094   :  { %10069 = vmatpush3.xpose.msk.msra.mxu1 %vm1024_vm2, %v4811_v18 }
0x1095   :  { %10073 = vmatprep.subr.mxu1 %v10854_v11 }
0x1097   :  { %10071 = vmatmul.mubr.msk.f32.vlgmr.msra.gmra.mrb[60].mxu1 %vm1024_vm2, %v4484_v47 }
0x1098   :  { %10074 = vmatpush3.xpose.msk.msra.mxu1 %vm1024_vm2, %v4881_v46  ;;  %10075 = vmatprep.mubr.msk.f32.mxu1 %vm10853_vm0, %v10854_v11 }
0x1099   :  { %v4950_v50 = vpop.f32.mrb[54].mxu1  ;;  %10083 = vmatprep.subr.mxu1 %v10854_v11 }
0x109a   :  { %v4951_v54 = vadd.f32 %v8926_v12, %v4950_v50  ;;  %v10012_v57 = vpop.f32.mrb[55].mxu1 }
0x109b   :  { %10076 = vmatmul.mubr.msk.f32.vlgmr.msra.gmra.mrb[62].mxu1 %vm1024_vm2, %v4554_v44 }
0x109c   :  { %10079 = vmatpush3.xpose.msk.msra.mxu0 %vm1024_vm2, %v4951_v54  ;;  %10084 = vmatpush3.xpose.msk.msra.mxu1 %vm1024_vm2, %v5021_v49 }
0x109d   :  { %10085 = vmatprep.mubr.msk.f32.mxu1 %vm10853_vm0, %v10854_v11  ;;  %10088 = vmatprep.subr.mxu0 %v10854_v11 }
0x109e   :  { %10093 = vmatprep.subr.mxu1 %v10854_v11 }
0x109f   :  { %10081 = vmatmul.mubr.msk.f32.vlgmr.msra.gmra.mrb[68].mxu0 %vm1024_vm2, %v4624_v58  ;;  %10086 = vmatmul.mubr.msk.f32.vlgmr.msra.gmra.mrb[64].mxu1 %vm1024_vm2, %v4694_v59 }
0x10a0   :  { %10090 = vmatprep.mubr.msk.f32.mxu0 %vm10853_vm0, %v10854_v11  ;;  %10095 = vmatprep.mubr.msk.f32.mxu1 %vm10853_vm0, %v10854_v11 }
0x10a1   :  { %v5134_v63 = vpop.f32.mrb[56].mxu1  ;;  %10094 = vmatpush3.msra.mxu1 %v5205_v4 }
0x10a2   :  { %v5135_v0 = vadd.f32 %v8952_v62, %v5134_v63  ;;  %v10034_v1 = vpop.f32.mrb[57].mxu1  ;;  %10103 = vmatprep.subr.mxu1 %v10854_v11 }
0x10a4   :  { %10089 = vmatpush3.msra.mxu0 %v5135_v0 }
0x10a5   :  { %10098 = vmatprep.subr.mxu0 %v10854_v11 }
0x10a9   :  { %v12053_v6 = vpop.f32.mrb[58].mxu1 }
0x10aa   :  { %v10056_v7 = vpop.f32.mrb[59].mxu1 }
0x10ab   :  { %v5275_v7 = vadd.f32 %v8954_v43, %v12053_v6 }
0x116a   :  { %v5420_v13 = vpop.f32.mrb[60].mxu1 }
0x116b   :  { %v5652_v15 = vmul.f32 0.35355338, %v5420_v13  ;;  %v10072_v16 = vpop.f32.mrb[61].mxu1 }
0x116c   :  { %v5345_v16 = vadd.f32 %v8955_v10, %v12056_v8  ;;  %v5996_v8 = vld [vmem:[%s12643_s5] sm:$0xff]  ;;  %v6413_v10 = vld [vmem:[%s12646_s8 + $0x8] sm:$0xff] }
0x116d   :  { %v5656_v61 = vadd.f32 %v12061_v14, %v5652_v15 }
0x116e   :  { %v5496_v17 = vpop.f32.mrb[62].mxu1 }
0x116f   :  { %v5653_v20 = vmul.f32 0.35355338, %v5496_v17  ;;  %v10077_v23 = vpop.f32.mrb[63].mxu1  ;;  %v5660_v24 = vsel %vm1024_vm2, %v5656_v61, -inf }
0x1170   :  { %5661 = vmax.xlane.f32.xlu0 %v5660_v24  ;;  %v5997_v23 = vld [vmem:[%s12643_s5 + $0x8] sm:$0xff]  ;;  %v5998_v24 = vld [vmem:[%s12643_s5 + $0x10] sm:$0xff] }
0x1171   :  { %v5657_v25 = vadd.f32 %v12061_v14, %v5653_v20 }
0x1172   :  { %v5572_v26 = vpop.f32.mrb[68].mxu0  ;;  %v5648_v27 = vpop.f32.mrb[64].mxu1 }
0x1173   :  { %v5654_v28 = vmul.f32 0.35355338, %v5572_v26  ;;  %v5655_v22 = vmul.f32 0.35355338, %v5648_v27  ;;  %v10082_v29 = vpop.f32.mrb[69].mxu0  ;;  %v10087_v30 = vpop.f32.mrb[65].mxu1 }
0x1174   :  { %v5663_v31 = vsel %vm1024_vm2, %v5657_v25, -inf  ;;  %v5999_v27 = vld [vmem:[%s12643_s5 + $0x18] sm:$0xff] }
0x1175   :  { %5664 = vmax.xlane.f32.xlu1 %v5663_v31  ;;  %v5659_v33 = vadd.f32 %v12061_v14, %v5655_v22  ;;  %v5658_v34 = vadd.f32 %v12061_v14, %v5654_v28 }
0x1177   :  { %v5669_v36 = vsel %vm1024_vm2, %v5659_v33, -inf  ;;  %v5666_v37 = vsel %vm1024_vm2, %v5658_v34, -inf }
0x1178   :  { %5667 = vmax.xlane.f32.xlu0 %v5666_v37 }
0x1179   :  { %5670 = vmax.xlane.f32.xlu1 %v5669_v36 }
0x11fd   :  { %v5662_v38 = vpop.xlane.xlu0 %5661 }
0x11fe   :  { %v5672_v35 = vsub.f32 %v5656_v61, %v5662_v38 }
0x1200   :  { %v5676_v39 = vmul.f32 1.442695, %v5672_v35 }
0x1202   :  { %10784 = vpow2.f32 %v5676_v39  ;;  %v5665_v18 = vpop.xlane.xlu1 %5664 }
0x1203   :  { %v5673_v45 = vsub.f32 %v5657_v25, %v5665_v18 }
0x1205   :  { %v5678_v46 = vmul.f32 1.442695, %v5673_v45  ;;  %v5668_v47 = vpop.xlane.xlu0 %5667  ;;  %v12130_v45 = vld [vmem:[%s12647_s9] sm:$0x3f] }
0x1206   :  { %v5671_v42 = vpop.xlane.xlu1 %5670  ;;  %v5674_v48 = vsub.f32 %v5658_v34, %v5668_v47 }
0x1207   :  { %10786 = vpow2.f32 %v5678_v46  ;;  %v5675_v12 = vsub.f32 %v5659_v33, %v5671_v42 }
0x1208   :  { %v5680_v49 = vmul.f32 1.442695, %v5674_v48 }
0x1209   :  { %v5682_v44 = vmul.f32 1.442695, %v5675_v12 }
0x120a   :  { %10788 = vpow2.f32 %v5680_v49  ;;  %v6302_v49 = vrot.slane %v12130_v45, %v11273_v19 }
0x120b   :  { %10790 = vpow2.f32 %v5682_v44 }
0x120c   :  { %v10785_v50 = vpop.eup %10784 }
0x120d   :  { %v5684_v51 = vsel %vm1024_vm2, %v10785_v50, 0.0 }
0x120e   :  { %5685 = vadd.xlane.f32.xlu0 %v5684_v51 }
0x1211   :  { %v10787_v53 = vpop.eup %10786 }
0x1212   :  { %v5687_v54 = vsel %vm1024_vm2, %v10787_v53, 0.0 }
0x1213   :  { %5688 = vadd.xlane.f32.xlu1 %v5687_v54 }
0x1214   :  { %v10789_v57 = vpop.eup %10788 }
0x1215   :  { %v10791_v58 = vpop.eup %10790  ;;  %v5690_v59 = vsel %vm1024_vm2, %v10789_v57, 0.0 }
0x1216   :  { %v5693_v62 = vsel %vm1024_vm2, %v10791_v58, 0.0  ;;  %5691 = vadd.xlane.f32.xlu0 %v5690_v59 }
0x1217   :  { %5694 = vadd.xlane.f32.xlu1 %v5693_v62 }
0x129b   :  { %v5686_v63 = vpop.xlane.xlu0 %5685 }
0x129c   :  { %10792 = vrcp.f32 %v5686_v63 }
0x12a0   :  { %v5689_v0 = vpop.xlane.xlu1 %5688 }
0x12a1   :  { %10794 = vrcp.f32 %v5689_v0 }
0x12a3   :  { %v5692_v1 = vpop.xlane.xlu0 %5691 }
0x12a4   :  { %v5695_v2 = vpop.xlane.xlu1 %5694  ;;  %10796 = vrcp.f32 %v5692_v1  ;;  %v6328_v1 = vld [vmem:[%s12644_s6] sm:$0xff] }
0x12a5   :  { %10798 = vrcp.f32 %v5695_v2  ;;  %v6329_v2 = vld [vmem:[%s12644_s6 + $0x8] sm:$0xff] }
0x12a6   :  { %v10793_v4 = vpop.eup %10792  ;;  %v10633_v43 = vpack.c.bf16 %v6329_v2, %v6328_v1  ;;  %v8991_v1 = vld [vmem:[%s12641_s3 + $0x1d0] sm:$0xff] }
0x12a7   :  { %v5700_v5 = vmul.f32 %v10793_v4, %v10785_v50  ;;  %v6331_v4 = vld [vmem:[%s12644_s6 + $0x18] sm:$0xff] }
0x12a9   :  { %10091 = vmatmul.mubr.msk.f32.vlgmr.msra.gmra.mrb[70].mxu0 %vm1024_vm2, %v5700_v5 }
0x12aa   :  { %10099 = vmatpush3.msra.mxu0 %v5275_v7  ;;  %10100 = vmatprep.mubr.msk.f32.mxu0 %vm10853_vm0, %v10854_v11  ;;  %v6412_v7 = vld [vmem:[%s12646_s8] sm:$0xff] }
0x12ab   :  { %v10795_v13 = vpop.eup %10794  ;;  %10108 = vmatprep.subr.mxu0 %v10854_v11 }
0x12ac   :  { %v5701_v15 = vmul.f32 %v10795_v13, %v10787_v53  ;;  %v6414_v13 = vld [vmem:[%s12646_s8 + $0x10] sm:$0xff] }
0x12ae   :  { %v10797_v61 = vpop.eup %10796  ;;  %10096 = vmatmul.mubr.msk.f32.vlgmr.msra.gmra.mrb[66].mxu1 %vm1024_vm2, %v5701_v15  ;;  %v10639_v15 = vpack.c.bf16 %v6413_v10, %v6412_v7  ;;  %v6514_v10 = vrot.slane %v12130_v45, %v11384_v40 }
0x12af   :  { %v10799_v6 = vpop.eup %10798  ;;  %v5702_v17 = vmul.f32 %v10797_v61, %v10789_v57  ;;  %10104 = vmatpush3.msra.mxu1 %v5345_v16  ;;  %10105 = vmatprep.mubr.msk.f32.mxu1 %vm10853_vm0, %v10854_v11  ;;  %v6415_v16 = vld [vmem:[%s12646_s8 + $0x18] sm:$0xff] }
0x12b0   :  { %v5703_v20 = vmul.f32 %v10799_v6, %v10791_v58  ;;  %10113 = vmatprep.subr.mxu1 %v10854_v11  ;;  %v10642_v61 = vpack.c.bf16 %v6415_v16, %v6414_v13  ;;  %v6416_v6 = vld [vmem:[%s12646_s8 + $0x20] sm:$0xff] }
0x12b1   :  { %10101 = vmatmul.mubr.msk.f32.vlgmr.msra.gmra.mrb[72].mxu0 %vm1024_vm2, %v5702_v17  ;;  %v6417_v17 = vld [vmem:[%s12646_s8 + $0x28] sm:$0xff] }
0x12b2   :  { %10106 = vmatmul.mubr.msk.f32.vlgmr.msra.gmra.mrb[68].mxu1 %vm1024_vm2, %v5703_v20  ;;  %10110 = vmatprep.mubr.msk.f32.mxu0 %vm10853_vm0, %v10854_v11  ;;  %v10645_v20 = vpack.c.bf16 %v6417_v17, %v6416_v6  ;;  %v8986_v6 = vld [vmem:[%s12641_s3 + $0x1a8] sm:$0xff]  ;;  %v9009_v17 = vld [vmem:[%s12641_s3 + $0x200] sm:$0xff] }
0x12b3   :  { %10115 = vmatprep.mubr.msk.f32.mxu1 %vm10853_vm0, %v10854_v11  ;;  %10109 = vmatpush3.msra.mxu0 %v5996_v8 }
0x12b4   :  { %10118 = vmatprep.subr.mxu0 %v10854_v11  ;;  %10114 = vmatpush3.msra.mxu1 %v5997_v23 }
0x12b5   :  { %10123 = vmatprep.subr.mxu1 %v10854_v11 }
0x137c   :  { %v5773_v25 = vpop.f32.mrb[70].mxu0 }
0x137d   :  { %v10092_v26 = vpop.f32.mrb[71].mxu0  ;;  %10111 = vmatmul.mubr.msk.f32.vlgmr.msra.gmra.mrb[74].mxu0 %vm1024_vm2, %v5773_v25  ;;  %v6321_v25 = vrot.slane %v12130_v45, %v11323_v55 }
0x137e   :  { %10119 = vmatpush3.msra.mxu0 %v5998_v24  ;;  %10120 = vmatprep.mubr.msk.f32.mxu0 %vm10853_vm0, %v10854_v11 }
0x137f   :  { %10632 = vmatprep.subr.bf16.mxu0 %v10852_v3 }
0x1381   :  { %v5846_v28 = vpop.f32.mrb[66].mxu1 }
0x1382   :  { %v10097_v22 = vpop.f32.mrb[67].mxu1  ;;  %10116 = vmatmul.mubr.msk.f32.vlgmr.msra.gmra.mrb[70].mxu1 %vm1024_vm2, %v5846_v28  ;;  %v6326_v28 = vrot.slane %v12130_v45, %v11326_v56 }
0x1383   :  { %10124 = vmatpush3.msra.mxu1 %v5999_v27  ;;  %10125 = vmatprep.mubr.msk.f32.mxu1 %vm10853_vm0, %v10854_v11 }
0x1384   :  { %v5919_v29 = vpop.f32.mrb[72].mxu0  ;;  %10638 = vmatprep.subr.bf16.mxu1 %v10852_v3 }
0x1385   :  { %v5992_v30 = vpop.f32.mrb[68].mxu1  ;;  %v10102_v31 = vpop.f32.mrb[73].mxu0  ;;  %10121 = vmatmul.mubr.msk.f32.vlgmr.msra.gmra.mrb[76].mxu0 %vm1024_vm2, %v5919_v29 }
0x1386   :  { %v10107_v33 = vpop.f32.mrb[69].mxu1  ;;  %10126 = vmatmul.mubr.msk.f32.vlgmr.msra.gmra.mrb[72].mxu1 %vm1024_vm2, %v5992_v30  ;;  %10136 = vmatprep.mubr.msk.f32.mxu0 %vm10853_vm0, %v10854_v11  ;;  %v6418_v30 = vld [vmem:[%s12646_s8 + $0x30] sm:$0xff]  ;;  %v6419_v31 = vld [vmem:[%s12646_s8 + $0x38] sm:$0xff] }
0x1387   :  { %10155 = vmatprep.mubr.msk.f32.mxu1 %vm10853_vm0, %v10854_v11  ;;  %10634 = vmatpush3.bf16.msra.mxu0 %v10633_v43  ;;  %v10648_v33 = vpack.c.bf16 %v6419_v31, %v6418_v30  ;;  %v8992_v43 = vld [vmem:[%s12641_s3 + $0x1d8] sm:$0xff]  ;;  %v8993_v30 = vld [vmem:[%s12641_s3 + $0x1e0] sm:$0xff]  ;;  %v8994_v31 = vld [vmem:[%s12641_s3 + $0x1e8] sm:$0xff] }
0x1388   :  { %10635 = vmatprep.subr.bf16.mxu0 %v10852_v3  ;;  %10640 = vmatpush3.bf16.msra.mxu1 %v10639_v15  ;;  %v8985_v15 = vld [vmem:[%s12641_s3 + $0x1a0] sm:$0xff] }
0x1389   :  { %10641 = vmatprep.subr.bf16.mxu1 %v10852_v3 }
0x138c   :  { %10643 = vmatpush3.bf16.msra.mxu1 %v10642_v61  ;;  %v6519_v61 = vrot.slane %v12130_v45, %v11387_v41 }
0x138d   :  { %10644 = vmatprep.subr.bf16.mxu1 %v10852_v3 }
0x1390   :  { %10646 = vmatpush3.bf16.msra.mxu1 %v10645_v20  ;;  %v9010_v20 = vld [vmem:[%s12641_s3 + $0x208] sm:$0xff] }
0x1391   :  { %10647 = vmatprep.subr.bf16.mxu1 %v10852_v3 }
0x1394   :  { %10649 = vmatpush3.bf16.msra.mxu1 %v10648_v33  ;;  %v9017_v33 = vld [vmem:[%s12641_s3 + $0x240] sm:$0xff] }
0x1395   :  { %10662 = vmatprep.subr.bf16.mxu1 %v10852_v3 }
0x1450   :  { %v6069_v34 = vpop.f32.mrb[74].mxu0 }
0x1451   :  { %v10112_v36 = vpop.f32.mrb[75].mxu0  ;;  %v6292_v38 = vsel %vm85_vm1, %v6069_v34, 0.0  ;;  %v8976_v34 = vld [vmem:[%s12645_s7] ss:$0 sm:$0xff] }
0x1455   :  { %v6142_v37 = vpop.f32.mrb[70].mxu1 }
0x1456   :  { %v6293_v35 = vsel %vm85_vm1, %v6142_v37, 0.0  ;;  %v10117_v39 = vpop.f32.mrb[71].mxu1 }
0x1457   :  { %v6294_v18 = vadd.f32 %v6293_v35, %v6292_v38  ;;  %v6423_v39 = vrot.slane %v12130_v45, %v11349_v9 }
0x1458   :  { %v6215_v46 = vpop.f32.mrb[76].mxu0 }
0x1459   :  { %v6295_v47 = vsel %vm85_vm1, %v6215_v46, 0.0  ;;  %v6288_v42 = vpop.f32.mrb[72].mxu1  ;;  %v10122_v48 = vpop.f32.mrb[77].mxu0 }
0x145a   :  { %v6296_v12 = vadd.f32 %v6295_v47, %v6294_v18  ;;  %v10127_v44 = vpop.f32.mrb[73].mxu1  ;;  %v6297_v50 = vsel %vm85_vm1, %v6288_v42, 0.0 }
0x145c   :  { %v6298_v51 = vadd.f32 %v6297_v50, %v6296_v12 }
0x145e   :  { %v6303_v53 = vadd.f32 %v6302_v49, %v6298_v51 }
0x1460   :  { %v6304_v54 = vadd.f32 %v11777_v60, %v6303_v53  ;;  %v6330_v60 = vld [vmem:[%s12644_s6 + $0x10] sm:$0xff]  ;;  %v8981_v53 = vld [vmem:[%s12641_s3 + $0x180] sm:$0xff] }
0x1461   :  { %v10636_v5 = vpack.c.bf16 %v6331_v4, %v6330_v60  ;;  %v10666_v60 = vpack.c.bf16 %v8992_v43, %v8991_v1  ;;  %v9046_v1 = vld [vmem:[%s12641_s3 + $0x2c8] sm:$0xff]  ;;  %v9023_v43 = vld [vmem:[%s12641_s3 + $0x270] sm:$0xff] }
0x1462   :  { %v6305_v57 = vsel %vm85_vm1, %v6304_v54, 0.0 }
0x1463   :  { %6306 = vadd.xlane.f32.xlu0 %v6305_v57  ;;  %10637 = vmatpush3.bf16.msra.mxu0 %v10636_v5  ;;  %v8989_v57 = vld [vmem:[%s12641_s3 + $0x1c0] sm:$0xff] }
0x1464   :  { %10650 = vmatprep.subr.bf16.mxu0 %v10852_v3 }
0x14f0   :  { %v6307_v58 = vpop.xlane.xlu0 %6306 }
0x14f1   :  { %v6308_v59 = vmul.f32 0.03125, %v6307_v58 }
0x14f3   :  { %v6309_v62 = vsub.f32 %v6304_v54, %v6308_v59  ;;  %v8982_v54 = vld [vmem:[%s12641_s3 + $0x188] sm:$0xff] }
0x14f4   :  { %v10651_v58 = vpack.c.bf16 %v8982_v54, %v8981_v53  ;;  %v8990_v59 = vld [vmem:[%s12641_s3 + $0x1c8] sm:$0xff]  ;;  %v9039_v54 = vld [vmem:[%s12641_s3 + $0x290] sm:$0xff] }
0x14f5   :  { %v6310_v63 = vmul.f32 %v6309_v62, %v6309_v62 }
0x14f7   :  { %v6311_v0 = vsel %vm85_vm1, %v6310_v63, 0.0  ;;  %v8983_v63 = vld [vmem:[%s12641_s3 + $0x190] sm:$0xff] }
0x14f8   :  { %6312 = vadd.xlane.f32.xlu1 %v6311_v0  ;;  %v8984_v0 = vld [vmem:[%s12641_s3 + $0x198] sm:$0xff] }
0x14f9   :  { %v10654_v2 = vpack.c.bf16 %v8984_v0, %v8983_v63  ;;  %v9045_v0 = vld [vmem:[%s12641_s3 + $0x2c0] sm:$0xff] }
0x1585   :  { %v6313_v8 = vpop.xlane.xlu1 %6312 }
0x1586   :  { %v6314_v23 = vmul.f32 0.03125, %v6313_v8 }
0x1588   :  { %v6315_v24 = vadd.f32 1e-05, %v6314_v23  ;;  %v10657_v23 = vpack.c.bf16 %v8986_v6, %v8985_v15  ;;  %v9043_v15 = vld [vmem:[%s12641_s3 + $0x2b0] sm:$0xff] }
0x158a   :  { %10800 = vrsqrt.f32 %v6315_v24  ;;  %v10675_v24 = vpack.c.bf16 %v9010_v20, %v9009_v17  ;;  %v9049_v17 = vld [vmem:[%s12641_s3 + $0x2e0] sm:$0xff] }
0x1594   :  { %v10801_v26 = vpop.eup %10800 }
0x1595   :  { %v6317_v27 = vmul.f32 %v10801_v26, %v6309_v62  ;;  %v10663_v62 = vpack.c.bf16 %v8990_v59, %v8989_v57  ;;  %v8988_v26 = vld [vmem:[%s12641_s3 + $0x1b8] sm:$0xff]  ;;  %v9021_v59 = vld [vmem:[%s12641_s3 + $0x260] sm:$0xff] }
0x1596   :  { %v9040_v57 = vld [vmem:[%s12641_s3 + $0x298] sm:$0xff] }
0x1597   :  { %v6322_v22 = vmul.f32 %v6321_v25, %v6317_v27  ;;  %v8987_v25 = vld [vmem:[%s12641_s3 + $0x1b0] sm:$0xff]  ;;  %v10702_v63 = vpack.c.bf16 %v9040_v57, %v9039_v54  ;;  %v9002_v54 = vld [vmem:[%s12642_s4 + $0xd] ss:$0 sm:$0xff] }
0x1598   :  { %v9011_v27 = vld [vmem:[%s12641_s3 + $0x210] sm:$0xff] }
0x1599   :  { %v6327_v29 = vadd.f32 %v6326_v28, %v6322_v22  ;;  %v9012_v28 = vld [vmem:[%s12641_s3 + $0x218] sm:$0xff]  ;;  %v10660_v22 = vpack.c.bf16 %v8988_v26, %v8987_v25  ;;  %v9051_v25 = vld [vmem:[%s12641_s3 + $0x2f0] sm:$0xff] }
0x159a   :  { %v9052_v26 = vld [vmem:[%s12641_s3 + $0x2f8] sm:$0xff] }
0x159b   :  { %10137 = vmatmul.mubr.msk.f32.vlgmr.msra.gmra.mrb[78].mxu0 %vm85_vm1, %v6327_v29 }
0x159c   :  { %10166 = vmatprep.mubr.msk.f32.mxu0 %vm10853_vm0, %v10854_v11  ;;  %10652 = vmatpush3.bf16.msra.mxu0 %v10651_v58 }
0x159d   :  { %10653 = vmatprep.subr.bf16.mxu0 %v10852_v3 }
0x15a0   :  { %10655 = vmatpush3.bf16.msra.mxu0 %v10654_v2 }
0x15a1   :  { %10656 = vmatprep.subr.bf16.mxu0 %v10852_v3 }
0x166e   :  { %v6407_v36 = vpop.f32.mrb[78].mxu0 }
0x166f   :  { %v6408_v37 = vadd.f32 %v8976_v34, %v6407_v36  ;;  %v10138_v38 = vpop.f32.mrb[79].mxu0  ;;  %v9018_v34 = vld [vmem:[%s12641_s3 + $0x248] sm:$0xff]  ;;  %v10669_v36 = vpack.c.bf16 %v8994_v31, %v8993_v30  ;;  %v9029_v31 = vld [vmem:[%s12642_s4 + $0x10] ss:$0 sm:$0xff] }
0x1670   :  { %v8995_v38 = vld [vmem:[%s12641_s3 + $0x1f0] sm:$0xff] }
0x1671   :  { %v6411_v35 = vmax.f32 %v6408_v37, 0.0  ;;  %v10687_v37 = vpack.c.bf16 %v9018_v34, %v9017_v33 }
0x1673   :  { %10156 = vmatmul.mubr.msk.f32.vlgmr.msra.gmra.mrb[74].mxu1 %vm2102_vm3, %v6411_v35  ;;  %v8996_v35 = vld [vmem:[%s12641_s3 + $0x1f8] sm:$0xff] }
0x1674   :  { %10188 = vmatprep.mubr.msk.f32.mxu1 %vm10853_vm0, %v10854_v11  ;;  %10664 = vmatpush3.bf16.msra.mxu1 %v10663_v62  ;;  %v9022_v62 = vld [vmem:[%s12641_s3 + $0x268] sm:$0xff] }
0x1675   :  { %10665 = vmatprep.subr.bf16.mxu1 %v10852_v3  ;;  %v10693_v2 = vpack.c.bf16 %v9022_v62, %v9021_v59 }
0x1678   :  { %10667 = vmatpush3.bf16.msra.mxu1 %v10666_v60  ;;  %v9024_v60 = vld [vmem:[%s12641_s3 + $0x278] sm:$0xff] }
0x1679   :  { %10674 = vmatprep.subr.bf16.mxu1 %v10852_v3 }
0x1746   :  { %v6493_v18 = vpop.f32.mrb[74].mxu1 }
0x1747   :  { %v6494_v46 = vadd.f32 %v6493_v18, %v6423_v39  ;;  %v10157_v47 = vpop.f32.mrb[75].mxu1  ;;  %v9019_v39 = vld [vmem:[%s12641_s3 + $0x250] sm:$0xff]  ;;  %v9020_v18 = vld [vmem:[%s12641_s3 + $0x258] sm:$0xff] }
0x1748   :  { %v10690_v47 = vpack.c.bf16 %v9020_v18, %v9019_v39  ;;  %v9031_v18 = vld [vmem:[%s12642_s4 + $0x12] ss:$0 sm:$0xff] }
0x1749   :  { %v6497_v42 = vadd.f32 %v6494_v46, %v6327_v29  ;;  %v10678_v29 = vpack.c.bf16 %v9012_v28, %v9011_v27  ;;  %v10672_v46 = vpack.c.bf16 %v8996_v35, %v8995_v38  ;;  %v10720_v27 = vpack.c.bf16 %v9052_v26, %v9051_v25 }
0x174b   :  { %v6498_v48 = vsel %vm85_vm1, %v6497_v42, 0.0 }
0x174c   :  { %6499 = vadd.xlane.f32.xlu0 %v6498_v48  ;;  %v9014_v48 = vld [vmem:[%s12641_s3 + $0x228] sm:$0xff] }
0x17d9   :  { %v6500_v12 = vpop.xlane.xlu0 %6499 }
0x17da   :  { %v6501_v49 = vmul.f32 0.03125, %v6500_v12  ;;  %v9037_v12 = vld [vmem:[%s12641_s3 + $0x280] sm:$0xff] }
0x17dc   :  { %v6502_v44 = vsub.f32 %v6497_v42, %v6501_v49  ;;  %v9013_v42 = vld [vmem:[%s12641_s3 + $0x220] sm:$0xff]  ;;  %v9038_v49 = vld [vmem:[%s12641_s3 + $0x288] sm:$0xff] }
0x17dd   :  { %v10699_v53 = vpack.c.bf16 %v9038_v49, %v9037_v12 }
0x17de   :  { %v6503_v50 = vmul.f32 %v6502_v44, %v6502_v44 }
0x17e0   :  { %v6504_v51 = vsel %vm85_vm1, %v6503_v50, 0.0  ;;  %v9015_v50 = vld [vmem:[%s12641_s3 + $0x230] sm:$0xff] }
0x17e1   :  { %6505 = vadd.xlane.f32.xlu1 %v6504_v51  ;;  %v9016_v51 = vld [vmem:[%s12641_s3 + $0x238] sm:$0xff] }
0x17e2   :  { %v10684_v58 = vpack.c.bf16 %v9016_v51, %v9015_v50  ;;  %v9030_v50 = vld [vmem:[%s12642_s4 + $0x11] ss:$0 sm:$0xff] }
0x186e   :  { %v6506_v4 = vpop.xlane.xlu1 %6505 }
0x186f   :  { %v6507_v5 = vmul.f32 0.03125, %v6506_v4  ;;  %v10711_v4 = vpack.c.bf16 %v9046_v1, %v9045_v0  ;;  %v9032_v1 = vld [vmem:[%s12642_s4 + $0x13] ss:$0 sm:$0xff] }
0x1871   :  { %v6508_v7 = vadd.f32 1e-05, %v6507_v5  ;;  %v10696_v5 = vpack.c.bf16 %v9024_v60, %v9023_v43  ;;  %v9004_v43 = vld [vmem:[%s12642_s4 + $0xf] ss:$0 sm:$0xff] }
0x1873   :  { %10802 = vrsqrt.f32 %v6508_v7  ;;  %v9041_v7 = vld [vmem:[%s12641_s3 + $0x2a0] sm:$0xff] }
0x187d   :  { %v10803_v13 = vpop.eup %10802 }
0x187e   :  { %v6510_v16 = vmul.f32 %v10803_v13, %v6502_v44  ;;  %v10681_v44 = vpack.c.bf16 %v9014_v48, %v9013_v42  ;;  %v9003_v42 = vld [vmem:[%s12642_s4 + $0xe] ss:$0 sm:$0xff] }
0x1880   :  { %v6515_v8 = vmul.f32 %v6514_v10, %v6510_v16  ;;  %v9042_v10 = vld [vmem:[%s12641_s3 + $0x2a8] sm:$0xff]  ;;  %v9044_v16 = vld [vmem:[%s12641_s3 + $0x2b8] sm:$0xff] }
0x1881   :  { %v10705_v13 = vpack.c.bf16 %v9042_v10, %v9041_v7  ;;  %v10708_v6 = vpack.c.bf16 %v9044_v16, %v9043_v15 }
0x1882   :  { %v12245_v45 = vadd.f32 %v6519_v61, %v6515_v8  ;;  %v9047_v61 = vld [vmem:[%s12641_s3 + $0x2d0] sm:$0xff]  ;;  %v9050_v8 = vld [vmem:[%s12641_s3 + $0x2e8] sm:$0xff] }
0x1884   :  { %10167 = vmatmul.mubr.msk.f32.vlgmr.msra.gmra.mrb[80].mxu0 %vm85_vm1, %v12245_v45  ;;  %10189 = vmatmul.mubr.msk.f32.vlgmr.msra.gmra.mrb[76].mxu1 %vm85_vm1, %v12245_v45 }
0x1885   :  { %10658 = vmatpush3.bf16.msra.mxu0 %v10657_v23  ;;  %10676 = vmatpush3.bf16.msra.mxu1 %v10675_v24  ;;  %v10717_v23 = vpack.c.bf16 %v9050_v8, %v9049_v17  ;;  %v10826_v24 = vld [vmem:[%s12638_s0 + $0x8] sm:$0xff] }
0x1886   :  { %10659 = vmatprep.subr.bf16.mxu0 %v10852_v3  ;;  %10677 = vmatprep.subr.bf16.mxu1 %v10852_v3 }
0x1887   :  { %10177 = vmatprep.mubr.msk.f32.mxu0 %vm10853_vm0, %v10854_v11  ;;  %10210 = vmatprep.mubr.msk.f32.mxu1 %vm10853_vm0, %v10854_v11 }
0x1889   :  { %10661 = vmatpush3.bf16.msra.mxu0 %v10660_v22  ;;  %10679 = vmatpush3.bf16.msra.mxu1 %v10678_v29 }
0x188a   :  { %10668 = vmatprep.subr.bf16.mxu0 %v10852_v3  ;;  %10686 = vmatprep.subr.bf16.mxu1 %v10852_v3 }
0x188c   :  { %10178 = vmatmul.mubr.msk.f32.vlgmr.msra.gmra.mrb[82].mxu0 %vm85_vm1, %v12245_v45  ;;  %10211 = vmatmul.mubr.msk.f32.vlgmr.msra.gmra.mrb[78].mxu1 %vm85_vm1, %v11837_v21 }
0x188d   :  { %10670 = vmatpush3.bf16.msra.mxu0 %v10669_v36  ;;  %10688 = vmatpush3.bf16.msra.mxu1 %v10687_v37  ;;  %v9001_v36 = vld [vmem:[%s12642_s4 + $0xc] ss:$0 sm:$0xff] }
0x188e   :  { %10671 = vmatprep.subr.bf16.mxu0 %v10852_v3  ;;  %10689 = vmatprep.subr.bf16.mxu1 %v10852_v3 }
0x188f   :  { %10199 = vmatprep.mubr.msk.f32.mxu0 %vm10853_vm0, %v10854_v11  ;;  %10232 = vmatprep.mubr.msk.f32.mxu1 %vm10853_vm0, %v10854_v11 }
0x1891   :  { %10673 = vmatpush3.bf16.msra.mxu0 %v10672_v46  ;;  %10691 = vmatpush3.bf16.msra.mxu1 %v10690_v47 }
0x1892   :  { %10680 = vmatprep.subr.bf16.mxu0 %v10852_v3  ;;  %10698 = vmatprep.subr.bf16.mxu1 %v10852_v3 }
0x1894   :  { %10200 = vmatmul.mubr.msk.f32.vlgmr.msra.gmra.mrb[84].mxu0 %vm85_vm1, %v12245_v45  ;;  %10233 = vmatmul.mubr.msk.f32.vlgmr.msra.gmra.mrb[80].mxu1 %vm85_vm1, %v11837_v21 }
0x1895   :  { %10682 = vmatpush3.bf16.msra.mxu0 %v10681_v44  ;;  %10221 = vmatprep.mubr.msk.f32.mxu0 %vm10853_vm0, %v10854_v11 }
0x1896   :  { %10683 = vmatprep.subr.bf16.mxu0 %v10852_v3  ;;  %10700 = vmatpush3.bf16.msra.mxu1 %v10699_v53  ;;  %v9057_v53 = vld [vmem:[%s12642_s4 + $0x14] ss:$0 sm:$0xff] }
0x1897   :  { %10701 = vmatprep.subr.bf16.mxu1 %v10852_v3  ;;  %10254 = vmatprep.mubr.msk.f32.mxu1 %vm10853_vm0, %v10854_v11 }
0x1899   :  { %10685 = vmatpush3.bf16.msra.mxu0 %v10684_v58 }
0x189a   :  { %10692 = vmatprep.subr.bf16.mxu0 %v10852_v3  ;;  %10703 = vmatpush3.bf16.msra.mxu1 %v10702_v63 }
0x189b   :  { %10710 = vmatprep.subr.bf16.mxu1 %v10852_v3 }
0x189c   :  { %10222 = vmatmul.mubr.msk.f32.vlgmr.msra.gmra.mrb[86].mxu0 %vm85_vm1, %v11837_v21 }
0x189d   :  { %10694 = vmatpush3.bf16.msra.mxu0 %v10693_v2  ;;  %10243 = vmatprep.mubr.msk.f32.mxu0 %vm10853_vm0, %v10854_v11 }
0x189e   :  { %10695 = vmatprep.subr.bf16.mxu0 %v10852_v3  ;;  %10255 = vmatmul.mubr.msk.f32.vlgmr.msra.gmra.mrb[82].mxu1 %vm85_vm1, %v11837_v21 }
0x189f   :  { %10712 = vmatpush3.bf16.msra.mxu1 %v10711_v4  ;;  %10276 = vmatprep.mubr.msk.f32.mxu1 %vm10853_vm0, %v10854_v11 }
0x18a0   :  { %10713 = vmatprep.subr.bf16.mxu1 %v10852_v3 }
0x18a1   :  { %10697 = vmatpush3.bf16.msra.mxu0 %v10696_v5 }
0x18a2   :  { %10704 = vmatprep.subr.bf16.mxu0 %v10852_v3 }
0x18a4   :  { %10244 = vmatmul.mubr.msk.f32.vlgmr.msra.gmra.mrb[88].mxu0 %vm85_vm1, %v11837_v21  ;;  %v9048_v21 = vld [vmem:[%s12641_s3 + $0x2d8] sm:$0xff] }
0x18a5   :  { %10706 = vmatpush3.bf16.msra.mxu0 %v10705_v13  ;;  %10265 = vmatprep.mubr.msk.f32.mxu0 %vm10853_vm0, %v10854_v11  ;;  %v10714_v20 = vpack.c.bf16 %v9048_v21, %v9047_v61  ;;  %v9058_v13 = vld [vmem:[%s12642_s4 + $0x15] ss:$0 sm:$0xff] }
0x18a6   :  { %10707 = vmatprep.subr.bf16.mxu0 %v10852_v3 }
0x18a7   :  { %10715 = vmatpush3.bf16.msra.mxu1 %v10714_v20 }
0x18a8   :  { %10290 = vmatprep.subr.mxu1 %v10854_v11 }
0x18a9   :  { %10709 = vmatpush3.bf16.msra.mxu0 %v10708_v6 }
0x18aa   :  { %10716 = vmatprep.subr.bf16.mxu0 %v10852_v3  ;;  %10277 = vmatmul.mubr.msk.f32.vlgmr.msra.gmra.mrb[84].mxu1 %vm85_vm1, %v10826_v24 }
0x18ab   :  { %10292 = vmatprep.mubr.msk.f32.mxu1 %vm10853_vm0, %v10854_v11 }
0x18ac   :  { %10266 = vmatmul.mubr.msk.f32.vlgmr.msra.gmra.mrb[90].mxu0 %vm85_vm1, %v10826_v24 }
0x18ad   :  { %10718 = vmatpush3.bf16.msra.mxu0 %v10717_v23  ;;  %10287 = vmatprep.mubr.msk.f32.mxu0 %vm10853_vm0, %v10854_v11 }
0x18ae   :  { %10719 = vmatprep.subr.bf16.mxu0 %v10852_v3 }
0x18b1   :  { %10721 = vmatpush3.bf16.msra.mxu0 %v10720_v27 }
0x18b2   :  { %10300 = vmatprep.subr.mxu0 %v10854_v11 }
0x18b4   :  { %10288 = vmatmul.mubr.msk.f32.vlgmr.msra.gmra.mrb[92].mxu0 %vm85_vm1, %v10826_v24 }
0x18b5   :  { %10302 = vmatprep.mubr.msk.f32.mxu0 %vm10853_vm0, %v10854_v11 }
0x1957   :  { %v6636_v28 = vpop.f32.mrb[80].mxu0  ;;  %v6776_v22 = vpop.f32.mrb[76].mxu1 }
0x1958   :  { %v10168_v29 = vpop.f32.mrb[81].mxu0  ;;  %v10190_v30 = vpop.f32.mrb[77].mxu1  ;;  %v6637_v39 = vadd.f32 %v9001_v36, %v6636_v28  ;;  %v6777_v44 = vadd.f32 %v9003_v42, %v6776_v22 }
0x195f   :  { %v6706_v33 = vpop.f32.mrb[82].mxu0  ;;  %v6960_v34 = vpop.f32.mrb[78].mxu1 }
0x1960   :  { %v6961_v37 = vadd.f32 %v9029_v31, %v6960_v34  ;;  %v10179_v38 = vpop.f32.mrb[83].mxu0  ;;  %v10212_v35 = vpop.f32.mrb[79].mxu1  ;;  %v6707_v0 = vadd.f32 %v9002_v54, %v6706_v33 }
0x1962   :  { %10291 = vmatpush3.xpose.msk.msra.mxu1 %vm1024_vm2, %v6961_v37 }
0x1963   :  { %10295 = vmatprep.subr.mxu1 %v10854_v11 }
0x1965   :  { %10293 = vmatmul.mubr.msk.f32.vlgmr.msra.gmra.mrb[86].mxu1 %vm1024_vm2, %v6637_v39 }
0x1966   :  { %10297 = vmatprep.mubr.msk.f32.mxu1 %vm10853_vm0, %v10854_v11 }
0x1967   :  { %v6846_v46 = vpop.f32.mrb[84].mxu0  ;;  %v7100_v47 = vpop.f32.mrb[80].mxu1 }
0x1968   :  { %v7101_v48 = vadd.f32 %v9031_v18, %v7100_v47  ;;  %v10201_v12 = vpop.f32.mrb[85].mxu0  ;;  %v10234_v49 = vpop.f32.mrb[81].mxu1  ;;  %v6847_v5 = vadd.f32 %v9004_v43, %v6846_v46 }
0x196a   :  { %10301 = vmatpush3.xpose.msk.msra.mxu0 %vm1024_vm2, %v7101_v48 }
0x196b   :  { %10310 = vmatprep.subr.mxu0 %v10854_v11 }
0x196d   :  { %10303 = vmatmul.mubr.msk.f32.vlgmr.msra.gmra.mrb[94].mxu0 %vm1024_vm2, %v6777_v44 }
0x196e   :  { %10312 = vmatprep.mubr.msk.f32.mxu0 %vm10853_vm0, %v10854_v11 }
0x196f   :  { %v7030_v51 = vpop.f32.mrb[86].mxu0 }
0x1970   :  { %v7031_v57 = vadd.f32 %v9030_v50, %v7030_v51  ;;  %v10223_v58 = vpop.f32.mrb[87].mxu0 }
0x1971   :  { %v7284_v59 = vpop.f32.mrb[82].mxu1 }
0x1972   :  { %10296 = vmatpush3.xpose.msk.msra.mxu1 %vm1024_vm2, %v7031_v57  ;;  %v7285_v62 = vadd.f32 %v9057_v53, %v7284_v59  ;;  %v10256_v63 = vpop.f32.mrb[83].mxu1 }
0x1973   :  { %10305 = vmatprep.subr.mxu1 %v10854_v11 }
0x1974   :  { %10311 = vmatpush3.msra.mxu0 %v7285_v62 }
0x1975   :  { %10298 = vmatmul.mubr.msk.f32.vlgmr.msra.gmra.mrb[88].mxu1 %vm1024_vm2, %v6707_v0  ;;  %10320 = vmatprep.subr.mxu0 %v10854_v11 }
0x1976   :  { %10307 = vmatprep.mubr.msk.f32.mxu1 %vm10853_vm0, %v10854_v11 }
0x1977   :  { %v7170_v2 = vpop.f32.mrb[88].mxu0 }
0x1978   :  { %v7171_v60 = vadd.f32 %v9032_v1, %v7170_v2  ;;  %v10245_v4 = vpop.f32.mrb[89].mxu0 }
0x197a   :  { %10306 = vmatpush3.xpose.msk.msra.mxu1 %vm1024_vm2, %v7171_v60  ;;  %v9059_v60 = vld [vmem:[%s12642_s4 + $0x16] ss:$0 sm:$0xff] }
0x197b   :  { %10315 = vmatprep.subr.mxu1 %v10854_v11 }
0x197d   :  { %10308 = vmatmul.mubr.msk.f32.vlgmr.msra.gmra.mrb[90].mxu1 %vm1024_vm2, %v6847_v5  ;;  %v12468_v7 = vpop.f32.mrb[84].mxu1 }
0x197e   :  { %10317 = vmatprep.mubr.msk.f32.mxu1 %vm10853_vm0, %v10854_v11  ;;  %v10278_v10 = vpop.f32.mrb[85].mxu1 }
0x197f   :  { %v7354_v15 = vpop.f32.mrb[90].mxu0  ;;  %v7425_v10 = vadd.f32 %v9059_v60, %v12468_v7  ;;  %v9060_v7 = vld [vmem:[%s12642_s4 + $0x17] ss:$0 sm:$0xff] }
0x1980   :  { %v7355_v16 = vadd.f32 %v9058_v13, %v7354_v15  ;;  %v10267_v61 = vpop.f32.mrb[91].mxu0 }
0x1982   :  { %10316 = vmatpush3.msra.mxu1 %v7355_v16 }
0x1983   :  { %10325 = vmatprep.subr.mxu1 %v10854_v11 }
0x1987   :  { %v12474_v6 = vpop.f32.mrb[92].mxu0 }
0x1988   :  { %v10289_v21 = vpop.f32.mrb[93].mxu0 }
0x1a38   :  { %v7570_v17 = vpop.f32.mrb[86].mxu1 }
0x1a39   :  { %v7802_v20 = vmul.f32 0.35355338, %v7570_v17  ;;  %v10294_v8 = vpop.f32.mrb[87].mxu1 }
0x1a3b   :  { %v7806_v23 = vadd.f32 %v12061_v14, %v7802_v20  ;;  %v7495_v20 = vadd.f32 %v9060_v7, %v12474_v6  ;;  %v9078_v6 = vld [vmem:[%s12643_s5 + $0x28] sm:$0xff] }
0x1a3d   :  { %v7810_v24 = vsel %vm1024_vm2, %v7806_v23, -inf }
0x1a3e   :  { %7811 = vmax.xlane.f32.xlu0 %v7810_v24  ;;  %v9077_v24 = vld [vmem:[%s12643_s5 + $0x20] sm:$0xff] }
0x1a40   :  { %v7722_v25 = vpop.f32.mrb[94].mxu0 }
0x1a41   :  { %v7804_v26 = vmul.f32 0.35355338, %v7722_v25  ;;  %v10304_v27 = vpop.f32.mrb[95].mxu0  ;;  %v9079_v25 = vld [vmem:[%s12643_s5 + $0x30] sm:$0xff] }
0x1a43   :  { %v7808_v28 = vadd.f32 %v12061_v14, %v7804_v26 }
0x1a45   :  { %v7816_v22 = vsel %vm1024_vm2, %v7808_v28, -inf }
0x1a46   :  { %7817 = vmax.xlane.f32.xlu0 %v7816_v22 }
0x1a48   :  { %v7646_v29 = vpop.f32.mrb[88].mxu1 }
0x1a49   :  { %v7803_v30 = vmul.f32 0.35355338, %v7646_v29  ;;  %v10299_v31 = vpop.f32.mrb[89].mxu1  ;;  %v9080_v29 = vld [vmem:[%s12643_s5 + $0x38] sm:$0xff] }
0x1a4b   :  { %v7807_v33 = vadd.f32 %v12061_v14, %v7803_v30 }
0x1a4d   :  { %v7813_v34 = vsel %vm1024_vm2, %v7807_v33, -inf }
0x1a4e   :  { %7814 = vmax.xlane.f32.xlu1 %v7813_v34 }
0x1a50   :  { %v7798_v36 = vpop.f32.mrb[90].mxu1 }
0x1a51   :  { %v7805_v37 = vmul.f32 0.35355338, %v7798_v36  ;;  %v10309_v38 = vpop.f32.mrb[91].mxu1 }
0x1a53   :  { %v7809_v35 = vadd.f32 %v12061_v14, %v7805_v37 }
0x1a55   :  { %v7819_v39 = vsel %vm1024_vm2, %v7809_v35, -inf }
0x1a56   :  { %7820 = vmax.xlane.f32.xlu1 %v7819_v39 }
0x1acb   :  { %v7812_v18 = vpop.xlane.xlu0 %7811 }
0x1acc   :  { %v7822_v46 = vsub.f32 %v7806_v23, %v7812_v18 }
0x1ace   :  { %v7826_v47 = vmul.f32 1.442695, %v7822_v46 }
0x1ad0   :  { %10804 = vpow2.f32 %v7826_v47 }
0x1ad3   :  { %v7818_v42 = vpop.xlane.xlu0 %7817 }
0x1ad4   :  { %v7824_v48 = vsub.f32 %v7808_v28, %v7818_v42 }
0x1ad6   :  { %v7830_v12 = vmul.f32 1.442695, %v7824_v48 }
0x1ad8   :  { %10806 = vpow2.f32 %v7830_v12 }
0x1ada   :  { %v10805_v49 = vpop.eup %10804 }
0x1adb   :  { %v7815_v44 = vpop.xlane.xlu1 %7814  ;;  %v7834_v50 = vsel %vm1024_vm2, %v10805_v49, 0.0 }
0x1adc   :  { %v7823_v51 = vsub.f32 %v7807_v33, %v7815_v44  ;;  %7835 = vadd.xlane.f32.xlu0 %v7834_v50 }
0x1ade   :  { %v7828_v53 = vmul.f32 1.442695, %v7823_v51 }
0x1ae0   :  { %10808 = vpow2.f32 %v7828_v53 }
0x1ae2   :  { %v10807_v14 = vpop.eup %10806 }
0x1ae3   :  { %v7821_v54 = vpop.xlane.xlu1 %7820  ;;  %v7840_v57 = vsel %vm1024_vm2, %v10807_v14, 0.0 }
0x1ae4   :  { %v7825_v58 = vsub.f32 %v7809_v35, %v7821_v54  ;;  %7841 = vadd.xlane.f32.xlu0 %v7840_v57 }
0x1ae6   :  { %v7832_v59 = vmul.f32 1.442695, %v7825_v58 }
0x1ae8   :  { %10810 = vpow2.f32 %v7832_v59 }
0x1aea   :  { %v10809_v62 = vpop.eup %10808 }
0x1aeb   :  { %v7837_v63 = vsel %vm1024_vm2, %v10809_v62, 0.0 }
0x1aec   :  { %7838 = vadd.xlane.f32.xlu1 %v7837_v63 }
0x1af2   :  { %v10811_v0 = vpop.eup %10810 }
0x1af3   :  { %v7843_v1 = vsel %vm1024_vm2, %v10811_v0, 0.0 }
0x1af4   :  { %7844 = vadd.xlane.f32.xlu1 %v7843_v1 }
0x1b69   :  { %v7836_v2 = vpop.xlane.xlu0 %7835 }
0x1b6a   :  { %10812 = vrcp.f32 %v7836_v2 }
0x1b71   :  { %v7842_v43 = vpop.xlane.xlu0 %7841 }
0x1b72   :  { %10814 = vrcp.f32 %v7842_v43 }
0x1b74   :  { %v10813_v4 = vpop.eup %10812 }
0x1b75   :  { %v7850_v5 = vmul.f32 %v10813_v4, %v10805_v49  ;;  %v12544_v49 = vld [vmem:[%s12647_s9 + $0x8] sm:$0x3f] }
0x1b76   :  { %v8452_v51 = vrot.slane %v12544_v49, %v11273_v19 }
0x1b77   :  { %10313 = vmatmul.mubr.msk.f32.vlgmr.msra.gmra.mrb[96].mxu0 %vm1024_vm2, %v7850_v5 }
0x1b78   :  { %10321 = vmatpush3.msra.mxu0 %v7425_v10  ;;  %10322 = vmatprep.mubr.msk.f32.mxu0 %vm10853_vm0, %v10854_v11 }
0x1b79   :  { %v7839_v13 = vpop.xlane.xlu1 %7838  ;;  %10330 = vmatprep.subr.mxu0 %v10854_v11 }
0x1b7a   :  { %10816 = vrcp.f32 %v7839_v13  ;;  %v9086_v13 = vld [vmem:[%s12644_s6 + $0x28] sm:$0xff] }
0x1b7c   :  { %v10815_v15 = vpop.eup %10814 }
0x1b7d   :  { %v7852_v16 = vmul.f32 %v10815_v15, %v10807_v14 }
0x1b7f   :  { %10323 = vmatmul.mubr.msk.f32.vlgmr.msra.gmra.mrb[98].mxu0 %vm1024_vm2, %v7852_v16  ;;  %v9087_v16 = vld [vmem:[%s12644_s6 + $0x30] sm:$0xff] }
0x1b80   :  { %10332 = vmatprep.mubr.msk.f32.mxu0 %vm10853_vm0, %v10854_v11  ;;  %10331 = vmatpush3.msra.mxu0 %v9077_v24 }
0x1b81   :  { %v7845_v61 = vpop.xlane.xlu1 %7844  ;;  %10340 = vmatprep.subr.mxu0 %v10854_v11 }
0x1b82   :  { %10818 = vrcp.f32 %v7845_v61  ;;  %v9088_v61 = vld [vmem:[%s12644_s6 + $0x38] sm:$0xff] }
0x1b83   :  { %v10726_v7 = vpack.c.bf16 %v9088_v61, %v9087_v16 }
0x1b84   :  { %v10817_v21 = vpop.eup %10816 }
0x1b85   :  { %v7851_v17 = vmul.f32 %v10817_v21, %v10809_v62  ;;  %v9091_v21 = vld [vmem:[%s12646_s8 + $0x40] sm:$0xff] }
0x1b87   :  { %10318 = vmatmul.mubr.msk.f32.vlgmr.msra.gmra.mrb[92].mxu1 %vm1024_vm2, %v7851_v17  ;;  %v9092_v17 = vld [vmem:[%s12646_s8 + $0x48] sm:$0xff] }
0x1b88   :  { %10326 = vmatpush3.msra.mxu1 %v7495_v20  ;;  %10327 = vmatprep.mubr.msk.f32.mxu1 %vm10853_vm0, %v10854_v11  ;;  %v9093_v20 = vld [vmem:[%s12646_s8 + $0x50] sm:$0xff] }
0x1b89   :  { %10335 = vmatprep.subr.mxu1 %v10854_v11 }
0x1b8c   :  { %v10819_v8 = vpop.eup %10818 }
0x1b8d   :  { %v7853_v23 = vmul.f32 %v10819_v8, %v10811_v0  ;;  %v10729_v8 = vpack.c.bf16 %v9092_v17, %v9091_v21 }
0x1b8f   :  { %10328 = vmatmul.mubr.msk.f32.vlgmr.msra.gmra.mrb[94].mxu1 %vm1024_vm2, %v7853_v23  ;;  %v9094_v23 = vld [vmem:[%s12646_s8 + $0x58] sm:$0xff] }
0x1b90   :  { %10337 = vmatprep.mubr.msk.f32.mxu1 %vm10853_vm0, %v10854_v11  ;;  %10336 = vmatpush3.msra.mxu1 %v9078_v6  ;;  %v10732_v24 = vpack.c.bf16 %v9094_v23, %v9093_v20  ;;  %v9095_v6 = vld [vmem:[%s12646_s8 + $0x60] sm:$0xff] }
0x1b91   :  { %10345 = vmatprep.subr.mxu1 %v10854_v11 }
0x1c4a   :  { %v7923_v26 = vpop.f32.mrb[96].mxu0 }
0x1c4b   :  { %v10314_v27 = vpop.f32.mrb[97].mxu0  ;;  %10333 = vmatmul.mubr.msk.f32.vlgmr.msra.gmra.mrb[100].mxu0 %vm1024_vm2, %v7923_v26 }
0x1c4c   :  { %10341 = vmatpush3.msra.mxu0 %v9079_v25  ;;  %10342 = vmatprep.mubr.msk.f32.mxu0 %vm10853_vm0, %v10854_v11  ;;  %v9096_v25 = vld [vmem:[%s12646_s8 + $0x68] sm:$0xff] }
0x1c4d   :  { %10722 = vmatprep.subr.bf16.mxu0 %v10852_v3  ;;  %v10735_v26 = vpack.c.bf16 %v9096_v25, %v9095_v6 }
0x1c52   :  { %v8069_v28 = vpop.f32.mrb[98].mxu0 }
0x1c53   :  { %v10324_v22 = vpop.f32.mrb[99].mxu0  ;;  %10343 = vmatmul.mubr.msk.f32.vlgmr.msra.gmra.mrb[102].mxu0 %vm1024_vm2, %v8069_v28 }
0x1c54   :  { %10358 = vmatprep.mubr.msk.f32.mxu0 %vm10853_vm0, %v10854_v11 }
0x1c5a   :  { %v7996_v30 = vpop.f32.mrb[92].mxu1 }
0x1c5b   :  { %v10319_v31 = vpop.f32.mrb[93].mxu1  ;;  %10338 = vmatmul.mubr.msk.f32.vlgmr.msra.gmra.mrb[96].mxu1 %vm1024_vm2, %v7996_v30 }
0x1c5c   :  { %10346 = vmatpush3.msra.mxu1 %v9080_v29  ;;  %10347 = vmatprep.mubr.msk.f32.mxu1 %vm10853_vm0, %v10854_v11 }
0x1c5d   :  { %10728 = vmatprep.subr.bf16.mxu1 %v10852_v3 }
0x1c62   :  { %v8142_v33 = vpop.f32.mrb[94].mxu1 }
0x1c63   :  { %v10329_v34 = vpop.f32.mrb[95].mxu1  ;;  %10348 = vmatmul.mubr.msk.f32.vlgmr.msra.gmra.mrb[98].mxu1 %vm1024_vm2, %v8142_v33  ;;  %v8471_v33 = vrot.slane %v12544_v49, %v11323_v55  ;;  %v9097_v55 = vld [vmem:[%s12646_s8 + $0x70] sm:$0xff] }
0x1c64   :  { %10377 = vmatprep.mubr.msk.f32.mxu1 %vm10853_vm0, %v10854_v11  ;;  %v12549_v11 = vld [vmem:[%s12647_s9 + $0x8] sm:$0x3f]  ;;  %10730 = vmatpush3.bf16.msra.mxu1 %v10729_v8 }
0x1c65   :  { %v4263_v44 = vrot.slane %v12549_v11, %v11349_v9  ;;  %10731 = vmatprep.subr.bf16.mxu1 %v10852_v3 }
0x1c67   :  { %v4334_v57 = vadd.f32 %v11998_v32, %v4263_v44 }
0x1c68   :  { %10733 = vmatpush3.bf16.msra.mxu1 %v10732_v24 }
0x1c69   :  { %v4337_v63 = vadd.f32 %v4334_v57, %v11755_v52  ;;  %v9085_v52 = vld [vmem:[%s12644_s6 + $0x20] sm:$0xff]  ;;  %10734 = vmatprep.subr.bf16.mxu1 %v10852_v3 }
0x1c6a   :  { %v10723_v15 = vpack.c.bf16 %v9086_v13, %v9085_v52 }
0x1c6b   :  { %v4338_v0 = vsel %vm85_vm1, %v4337_v63, 0.0 }
0x1c6c   :  { %10724 = vmatpush3.bf16.msra.mxu0 %v10723_v15  ;;  %10736 = vmatpush3.bf16.msra.mxu1 %v10735_v26 }
0x1c6d   :  { %10725 = vmatprep.subr.bf16.mxu0 %v10852_v3  ;;  %10737 = vmatprep.subr.bf16.mxu1 %v10852_v3  ;;  %v4354_v3 = vrot.slane %v12549_v11, %v11384_v40 }
0x1c70   :  { %10727 = vmatpush3.bf16.msra.mxu0 %v10726_v7 }
0x1d1e   :  { %v8219_v36 = vpop.f32.mrb[100].mxu0 }
0x1d1f   :  { %v10334_v37 = vpop.f32.mrb[101].mxu0  ;;  %v8442_v18 = vsel %vm85_vm1, %v8219_v36, 0.0 }
0x1d20   :  { %v8476_v37 = vrot.slane %v12544_v49, %v11326_v56  ;;  %v9098_v56 = vld [vmem:[%s12646_s8 + $0x78] sm:$0xff] }
0x1d26   :  { %v8365_v38 = vpop.f32.mrb[102].mxu0 }
0x1d27   :  { %v10344_v35 = vpop.f32.mrb[103].mxu0  ;;  %v8445_v48 = vsel %vm85_vm1, %v8365_v38, 0.0 }
0x1d2e   :  { %v8292_v39 = vpop.f32.mrb[96].mxu1 }
0x1d2f   :  { %v8443_v46 = vsel %vm85_vm1, %v8292_v39, 0.0  ;;  %v10339_v47 = vpop.f32.mrb[97].mxu1 }
0x1d30   :  { %v8444_v42 = vadd.f32 %v8443_v46, %v8442_v18  ;;  %v4359_v46 = vrot.slane %v12549_v11, %v11387_v41 }
0x1d32   :  { %v8446_v12 = vadd.f32 %v8445_v48, %v8444_v42  ;;  %v10738_v48 = vpack.c.bf16 %v9098_v56, %v9097_v55 }
0x1d34   :  { %10739 = vmatpush3.bf16.msra.mxu1 %v10738_v48 }
0x1d36   :  { %v8438_v50 = vpop.f32.mrb[98].mxu1 }
0x1d37   :  { %v8447_v53 = vsel %vm85_vm1, %v8438_v50, 0.0  ;;  %v10349_v14 = vpop.f32.mrb[99].mxu1 }
0x1d38   :  { %v8448_v54 = vadd.f32 %v8447_v53, %v8446_v12  ;;  %v9089_v12 = vld [vmem:[%s12645_s7 + $0x1] ss:$0 sm:$0xff]  ;;  %v8573_v53 = vrot.slane %v12544_v49, %v11349_v9  ;;  %v8664_v9 = vrot.slane %v12544_v49, %v11384_v40  ;;  %s10855_s7 = smov [#allocation2]  }
0x1d39   :  { %s8678_s8 = sshll.u32 %s10855_s7, 4  ;;  %s8679_s8 = int_to_ptr.vmem [resolvable:$true] %s8678_s8 }
0x1d3a   :  { %v8453_v58 = vadd.f32 %v8452_v51, %v8448_v54  ;;  %s10828_s18 = scalar_lea.vmem %s8679_s8, 256  ;;  %p10833_p1 = scmp.lt.s32.totalorder %s8679_s8, %s8679_s8 }
0x1d3b   :  { %p10829_p0 = scmp.ne.s32.totalorder %s8679_s8, %s10828_s18  ;;  %p10834_p2 = scmp.lt.s32.totalorder %s10828_s18, %s10828_s18 }
0x1d3c   :  { %v8454_v59 = vadd.f32 %v8453_v58, %v12245_v45 }
0x1d3d   :  { %p10835_p3 = por %p10834_p2, %p10833_p1 }
0x1d3e   :  { %v8455_v62 = vsel %vm85_vm1, %v8454_v59, 0.0 }
0x1d3f   :  { %8456 = vadd.xlane.f32.xlu0 %v8455_v62  ;;  %p10836_p4 = pnand %p10835_p3, %p10829_p0 }
0x1d43   :  { %4339 = vadd.xlane.f32.xlu0 %v4338_v0 }
0x1dcc   :  { %v8457_v1 = vpop.xlane.xlu0 %8456 }
0x1dcd   :  { %v8458_v2 = vmul.f32 0.03125, %v8457_v1 }
0x1dcf   :  { %v8459_v19 = vsub.f32 %v8454_v59, %v8458_v2 }
0x1dd0   :  { %v4340_v43 = vpop.xlane.xlu0 %4339 }
0x1dd1   :  { %v4341_v60 = vmul.f32 0.03125, %v4340_v43  ;;  %v8460_v4 = vmul.f32 %v8459_v19, %v8459_v19 }
0x1dd3   :  { %v4342_v5 = vsub.f32 %v4337_v63, %v4341_v60  ;;  %v8461_v32 = vsel %vm85_vm1, %v8460_v4, 0.0 }
0x1dd4   :  { %8462 = vadd.xlane.f32.xlu1 %v8461_v32  ;;  %v8669_v32 = vrot.slane %v12544_v49, %v11387_v41 }
0x1dd5   :  { %v4343_v10 = vmul.f32 %v4342_v5, %v4342_v5 }
0x1dd7   :  { %v4344_v45 = vsel %vm85_vm1, %v4343_v10, 0.0 }
0x1dd8   :  { %4345 = vadd.xlane.f32.xlu0 %v4344_v45 }
0x1e61   :  { %v8463_v27 = vpop.xlane.xlu1 %8462 }
0x1e62   :  { %v8464_v28 = vmul.f32 0.03125, %v8463_v27 }
0x1e64   :  { %v8465_v22 = vadd.f32 1e-05, %v8464_v28 }
0x1e65   :  { %v4346_v29 = vpop.xlane.xlu0 %4345 }
0x1e66   :  { %10820 = vrsqrt.f32 %v8465_v22  ;;  %v4347_v30 = vmul.f32 0.03125, %v4346_v29 }
0x1e68   :  { %v4348_v31 = vadd.f32 1e-05, %v4347_v30 }
0x1e6a   :  { %10822 = vrsqrt.f32 %v4348_v31 }
0x1e70   :  { %v10821_v34 = vpop.eup %10820 }
0x1e71   :  { %v8467_v36 = vmul.f32 %v10821_v34, %v8459_v19 }
0x1e73   :  { %v8472_v38 = vmul.f32 %v8471_v33, %v8467_v36 }
0x1e74   :  { %v10823_v35 = vpop.eup %10822 }
0x1e75   :  { %v4350_v39 = vmul.f32 %v10823_v35, %v4342_v5  ;;  %v8477_v18 = vadd.f32 %v8476_v37, %v8472_v38 }
0x1e77   :  { %10359 = vmatmul.mubr.msk.f32.vlgmr.msra.gmra.mrb[104].mxu0 %vm85_vm1, %v8477_v18  ;;  %v4355_v47 = vmul.f32 %v4354_v3, %v4350_v39 }
0x1e79   :  { %v4360_v42 = vadd.f32 %v4359_v46, %v4355_v47 }
0x1e7b   :  { %4361 = vst.msk [vmem:[#allocation2] sm:$0xff] %vm85_vm1, %v4360_v42 }
0x1f4a   :  { %v8557_v11 = vpop.f32.mrb[104].mxu0 }
0x1f4b   :  { %v8558_v44 = vadd.f32 %v9089_v12, %v8557_v11  ;;  %v10360_v50 = vpop.f32.mrb[105].mxu0 }
0x1f4d   :  { %v8561_v51 = vmax.f32 %v8558_v44, 0.0 }
0x1f4f   :  { %10378 = vmatmul.mubr.msk.f32.vlgmr.msra.gmra.mrb[100].mxu1 %vm2102_vm3, %v8561_v51 }
0x2022   :  { %v8643_v14 = vpop.f32.mrb[100].mxu1 }
0x2023   :  { %v8644_v54 = vadd.f32 %v8643_v14, %v8573_v53  ;;  %v10379_v57 = vpop.f32.mrb[101].mxu1 }
0x2025   :  { %v8647_v58 = vadd.f32 %v8644_v54, %v8477_v18 }
0x2027   :  { %v8648_v59 = vsel %vm85_vm1, %v8647_v58, 0.0 }
0x2028   :  { %8649 = vadd.xlane.f32.xlu1 %v8648_v59 }
0x20b5   :  { %v8650_v62 = vpop.xlane.xlu1 %8649 }
0x20b6   :  { %v8651_v63 = vmul.f32 0.03125, %v8650_v62 }
0x20b8   :  { %v8652_v0 = vsub.f32 %v8647_v58, %v8651_v63 }
0x20ba   :  { %v8653_v1 = vmul.f32 %v8652_v0, %v8652_v0 }
0x20bc   :  { %v8654_v2 = vsel %vm85_vm1, %v8653_v1, 0.0 }
0x20bd   :  { %8655 = vadd.xlane.f32.xlu1 %v8654_v2 }
0x214a   :  { %v8656_v19 = vpop.xlane.xlu1 %8655 }
0x214b   :  { %v8657_v43 = vmul.f32 0.03125, %v8656_v19 }
0x214d   :  { %v8658_v60 = vadd.f32 1e-05, %v8657_v43 }
0x214f   :  { %10824 = vrsqrt.f32 %v8658_v60 }
0x2159   :  { %v10825_v4 = vpop.eup %10824 }
0x215a   :  { %v8660_v5 = vmul.f32 %v10825_v4, %v8652_v0 }
0x215c   :  { %v8665_v10 = vmul.f32 %v8664_v9, %v8660_v5 }
0x215e   :  { %v8670_v45 = vadd.f32 %v8669_v32, %v8665_v10 }
0x2160   :  { %8672 = vst.msk [vmem:[#allocation2 + $0x8] sm:$0xff] %vm85_vm1, %v8670_v45 }
0x2161   :  { %10839 = shalt.err (!%p10836_p4)
}
0x2162   :  { %s10840_s20 = scalar_lea.hbm %s12648_s10, 256 }
0x2163   :  { %p10841_p5 = scmp.ne.s32.totalorder %s12648_s10, %s10840_s20  ;;  %p10844_p6 = scmp.lt.u32.totalorder %s10840_s20, %s12648_s10 }
0x2165   :  { %p10846_p7 = pnand %p10844_p6, %p10841_p5 }
0x2167   :  { %10849 = shalt.err (!%p10846_p7)
}
0x2168   :  { %s10856_s24 = smov 128   ;;  %s10857_s25 = smov 8  }
0x2169   :  { %8684 = dma.vmem_to_hbm [thread:$0]  %s8679_s8, 256, %s12648_s10, [#allocation3], %s10856_s24, %s10856_s24, %s10857_s25  }
0x216a   :  { %10850 = dma.done.wait [#allocation3], 256  }
0x216b   :  { %10851 = vsyncadd [#allocation3], 4294967040 }
0x216c   :  { %8688 = vsyncpa [#allocation3], 1 }

</bundles_post_ra>
